<compile_context>
chip_gen: v5e
topology: v5e:2x2
jax: 0.10.0
libtpu: 0.0.40
codegen_flags: <defaults>
</compile_context>

<pallas_src>
import jax
import jax.numpy as jnp
from jax.experimental import pallas as pl
from jax.experimental.pallas import tpu as pltpu

LRELU_SLOPE = 0.2
BN_EPS = 1e-5


# ----------------------------- helpers ---------------------------------------

def _round_up(x, m):
    return ((x + m - 1) // m) * m


def _pick_tile(dim, candidates):
    for t in candidates:
        if t <= dim and dim % t == 0:
            return t
    return dim


def _pad2d(x, rows, cols):
    r, c = x.shape
    if r == rows and c == cols:
        return x
    return jnp.pad(x, ((0, rows - r), (0, cols - c)))


# --------------------------- Pallas kernels ----------------------------------

def _mm_lrelu_kernel(a_ref, b_ref, o_ref, acc_ref):
    """Tiled matmul with LeakyReLU fused at the final-k store."""
    k = pl.program_id(2)

    @pl.when(k == 0)
    def _():
        acc_ref[...] = jnp.zeros_like(acc_ref)

    acc_ref[...] += jnp.dot(a_ref[...], b_ref[...],
                            preferred_element_type=jnp.float32)

    @pl.when(k == pl.num_programs(2) - 1)
    def _():
        acc = acc_ref[...]
        o_ref[...] = jnp.where(acc >= 0, acc, LRELU_SLOPE * acc)


def _mm_stats_kernel(a_ref, b_ref, y_ref, s_ref, acc_ref):
    """Tiled matmul (grid = (Ntiles, Mtiles, Ktiles)) that also accumulates
    per-output-channel sum / sum-of-squares into s_ref rows 0 and 1.
    The stats block index is constant over the (arbitrary) M and K axes, so it
    accumulates over *all* rows -> correct full-batch BN statistics."""
    i = pl.program_id(1)
    k = pl.program_id(2)

    @pl.when(k == 0)
    def _():
        acc_ref[...] = jnp.zeros_like(acc_ref)

    @pl.when(jnp.logical_and(i == 0, k == 0))
    def _():
        s_ref[...] = jnp.zeros_like(s_ref)

    acc_ref[...] += jnp.dot(a_ref[...], b_ref[...],
                            preferred_element_type=jnp.float32)

    @pl.when(k == pl.num_programs(2) - 1)
    def _():
        acc = acc_ref[...]
        y_ref[...] = acc
        col_sum = jnp.sum(acc, axis=0, keepdims=True)        # (1, tn)
        col_sq = jnp.sum(acc * acc, axis=0, keepdims=True)   # (1, tn)
        row = jax.lax.broadcasted_iota(jnp.int32, (8, 1), 0)
        upd = jnp.where(row == 0, col_sum,
                        jnp.where(row == 1, col_sq, jnp.float32(0.0)))
        s_ref[...] = s_ref[...] + upd


def _scale_shift_lrelu_kernel(y_ref, sc_ref, sh_ref, o_ref):
    """Apply precomputed BN scale/shift (per channel) + LeakyReLU, f32 math."""
    z = y_ref[...] * sc_ref[...] + sh_ref[...]
    o_ref[...] = jnp.where(z >= 0, z, LRELU_SLOPE * z)


# --------------------------- pallas_call wrappers -----------------------------

def matmul_lrelu(a, b):
    """a: (Mp, Kp) bf16, b: (Kp, Np) bf16, all dims multiples of 128."""
    Mp, Kp = a.shape
    _, Np = b.shape
    tm = _pick_tile(Mp, (512, 256, 128))
    tn = _pick_tile(Np, (256, 128))
    tk = _pick_tile(Kp, (512, 256, 128))
    grid = (Mp // tm, Np // tn, Kp // tk)
    cost = pl.CostEstimate(flops=2 * Mp * Np * Kp, transcendentals=0,
                           bytes_accessed=Mp * Kp * 2 + Kp * Np * 2 + Mp * Np * 4)
    return pl.pallas_call(
        _mm_lrelu_kernel,
        out_shape=jax.ShapeDtypeStruct((Mp, Np), jnp.float32),
        grid_spec=pltpu.PrefetchScalarGridSpec(
            num_scalar_prefetch=0,
            grid=grid,
            in_specs=[pl.BlockSpec((tm, tk), lambda i, j, k: (i, k)),
                      pl.BlockSpec((tk, tn), lambda i, j, k: (k, j))],
            out_specs=pl.BlockSpec((tm, tn), lambda i, j, k: (i, j)),
            scratch_shapes=[pltpu.VMEM((tm, tn), jnp.float32)]),
        compiler_params=pltpu.CompilerParams(
            dimension_semantics=("parallel", "parallel", "arbitrary")),
        cost_estimate=cost,
    )(a, b)


def matmul_stats(a, b):
    """Like matmul_lrelu but returns raw y plus (8, Np) stats (rows 0/1 =
    per-column sum / sum-of-squares). Grid is (N, M, K) so the stats block
    stays resident across the whole M*K reduction for each column tile."""
    Mp, Kp = a.shape
    _, Np = b.shape
    tm = _pick_tile(Mp, (512, 256, 128))
    tn = _pick_tile(Np, (256, 128))
    tk = _pick_tile(Kp, (512, 256, 128))
    grid = (Np // tn, Mp // tm, Kp // tk)
    cost = pl.CostEstimate(flops=2 * Mp * Np * Kp, transcendentals=0,
                           bytes_accessed=Mp * Kp * 2 + Kp * Np * 2 + Mp * Np * 4)
    return pl.pallas_call(
        _mm_stats_kernel,
        out_shape=(jax.ShapeDtypeStruct((Mp, Np), jnp.float32),
                   jax.ShapeDtypeStruct((8, Np), jnp.float32)),
        grid_spec=pltpu.PrefetchScalarGridSpec(
            num_scalar_prefetch=0,
            grid=grid,
            in_specs=[pl.BlockSpec((tm, tk), lambda j, i, k: (i, k)),
                      pl.BlockSpec((tk, tn), lambda j, i, k: (k, j))],
            out_specs=[pl.BlockSpec((tm, tn), lambda j, i, k: (i, j)),
                       pl.BlockSpec((8, tn), lambda j, i, k: (0, j))],
            scratch_shapes=[pltpu.VMEM((tm, tn), jnp.float32)]),
        compiler_params=pltpu.CompilerParams(
            dimension_semantics=("parallel", "arbitrary", "arbitrary")),
        cost_estimate=cost,
    )(a, b)


def scale_shift_lrelu(y, scale, shift):
    """y: (Mp, Np) f32; scale/shift: (1, Np) f32. Tiled over M rows."""
    Mp, Np = y.shape
    tm = _pick_tile(Mp, (512, 256, 128))
    grid = (Mp // tm,)
    return pl.pallas_call(
        _scale_shift_lrelu_kernel,
        out_shape=jax.ShapeDtypeStruct((Mp, Np), jnp.float32),
        grid_spec=pltpu.PrefetchScalarGridSpec(
            num_scalar_prefetch=0,
            grid=grid,
            in_specs=[pl.BlockSpec((tm, Np), lambda i: (i, 0)),
                      pl.BlockSpec((1, Np), lambda i: (0, 0)),
                      pl.BlockSpec((1, Np), lambda i: (0, 0))],
            out_specs=pl.BlockSpec((tm, Np), lambda i: (i, 0))),
        compiler_params=pltpu.CompilerParams(
            dimension_semantics=("parallel",)),
    )(y, scale, shift)


# ----------------------------- JAX glue ---------------------------------------

def im2col_nhwc(x, k, stride, pad):
    """x: (N, H, W, C) -> patches (N*OH*OW, k*k*C) with (kh, kw, c) column order."""
    # TODO(synk): build patches per output tile inside the kernel with strided
    # DMAs (memory_space=pl.ANY) to avoid materializing 4x-sized patches in HBM.
    N, H, W, C = x.shape
    if pad:
        x = jnp.pad(x, ((0, 0), (pad, pad), (pad, pad), (0, 0)))
    OH = (H + 2 * pad - k) // stride + 1
    OW = (W + 2 * pad - k) // stride + 1
    cols = []
    for kh in range(k):
        for kw in range(k):
            cols.append(x[:, kh:kh + stride * OH:stride,
                             kw:kw + stride * OW:stride, :])     # (N, OH, OW, C)
    p = jnp.stack(cols, axis=3)                                  # (N, OH, OW, k*k, C)
    return p.reshape(N * OH * OW, k * k * C), OH, OW


def _prep_conv(x_nhwc, w, stride, pad):
    """Build padded bf16 (patches, weight-matrix) operands for the Pallas matmul."""
    OC, _, k, _ = w.shape
    patches, OH, OW = im2col_nhwc(x_nhwc, k, stride, pad)
    M, K = patches.shape
    Mp, Kp, Np = _round_up(M, 128), _round_up(K, 128), _round_up(OC, 128)
    a = _pad2d(patches, Mp, Kp).astype(jnp.bfloat16)
    wm = w.transpose(2, 3, 1, 0).reshape(K, OC)      # (kh, kw, c) order -> matches patches
    b = _pad2d(wm, Kp, Np).astype(jnp.bfloat16)
    return a, b, (M, OC, OH, OW)


def conv_lrelu(x_nhwc, w, stride, pad):
    N = x_nhwc.shape[0]
    a, b, (M, OC, OH, OW) = _prep_conv(x_nhwc, w, stride, pad)
    y = matmul_lrelu(a, b)
    return y[:M, :OC].reshape(N, OH, OW, OC)


def conv_bn_lrelu(x_nhwc, w, gamma, beta, stride, pad):
    N = x_nhwc.shape[0]
    a, b, (M, OC, OH, OW) = _prep_conv(x_nhwc, w, stride, pad)
    y, stats = matmul_stats(a, b)                    # y: (Mp, Np) f32, stats: (8, Np)
    Np = y.shape[1]
    # Zero-padded rows/cols contribute nothing to the sums; divide by the true M.
    inv_m = jnp.float32(1.0 / M)
    mean = stats[0] * inv_m
    var = stats[1] * inv_m - mean * mean             # biased variance (PyTorch BN normalize)
    gamma_p = jnp.zeros((Np,), jnp.float32).at[:OC].set(gamma)
    beta_p = jnp.zeros((Np,), jnp.float32).at[:OC].set(beta)
    scale = gamma_p * jax.lax.rsqrt(var + BN_EPS)
    shift = beta_p - mean * scale
    z = scale_shift_lrelu(y, scale[None, :], shift[None, :])
    return z[:M, :OC].reshape(N, OH, OW, OC)


def init_params(key, n_channels, ndf):
    ks = jax.random.split(key, 5)

    def conv_w(k, oc, ic):
        return (0.02 * jax.random.normal(k, (oc, ic, 4, 4))).astype(jnp.float32)

    return {
        "w1": conv_w(ks[0], ndf, n_channels),
        "w2": conv_w(ks[1], ndf * 2, ndf),
        "g2": jnp.ones((ndf * 2,), jnp.float32), "b2": jnp.zeros((ndf * 2,), jnp.float32),
        "w3": conv_w(ks[2], ndf * 4, ndf * 2),
        "g3": jnp.ones((ndf * 4,), jnp.float32), "b3": jnp.zeros((ndf * 4,), jnp.float32),
        "w4": conv_w(ks[3], ndf * 8, ndf * 4),
        "g4": jnp.ones((ndf * 8,), jnp.float32), "b4": jnp.zeros((ndf * 8,), jnp.float32),
        "w5": conv_w(ks[4], 1, ndf * 8),
    }


def image_discriminator_forward(x_nchw, params):
    # Noise(use_noise=False) layers are identity and omitted.
    x = jnp.transpose(x_nchw, (0, 2, 3, 1))                       # NHWC once, stays NHWC
    # Block 1: conv -> LeakyReLU (fused into matmul epilogue)
    x = conv_lrelu(x, params["w1"], stride=2, pad=1)
    # Blocks 2-4: conv -> BatchNorm(batch stats) -> LeakyReLU
    x = conv_bn_lrelu(x, params["w2"], params["g2"], params["b2"], stride=2, pad=1)
    x = conv_bn_lrelu(x, params["w3"], params["g3"], params["b3"], stride=2, pad=1)
    x = conv_bn_lrelu(x, params["w4"], params["g4"], params["b4"], stride=2, pad=1)
    # Final 4x4 valid conv, OC=1: M=batch rows / 1 output lane -> skinny GEMV,
    # a dedicated Pallas call would be pure launch overhead; plain jnp.dot.
    patches, _, _ = im2col_nhwc(x, 4, 1, 0)                       # (N, 4*4*8ndf)
    wm = params["w5"].transpose(2, 3, 1, 0).reshape(-1, params["w5"].shape[0])
    h = patches @ wm                                              # (N, 1)
    h = jnp.squeeze(h)                                            # matches torch .squeeze()
    return h, None


if __name__ == "__main__":
    key = jax.random.PRNGKey(0)
    k_in, k_par = jax.random.split(key)

    n_channels, ndf = 3, 16          # compact test; shapes scale as the module
    batch, spatial = 2, 64           # 64 -> 32 -> 16 -> 8 -> 4 -> 1 (final 4x4 valid conv)

    x = jax.random.normal(k_in, (batch, n_channels, spatial, spatial), jnp.float32)
    params = init_params(k_par, n_channels, ndf)

    fwd = jax.jit(image_discriminator_forward)
    h, aux = fwd(x, params)
    jax.block_until_ready(h)

    assert h.shape == (batch,), h.shape
    assert aux is None
    print("KERNEL_OK")
</pallas_src>

<mosaic_0001>
module attributes {stable_mosaic.version = 11 : i64} {
  func.func @_mm_lrelu_kernel(%arg0: i32, %arg1: i32, %arg2: i32, %arg3: memref<512x128xbf16, #tpu.memory_space<vmem>>, %arg4: memref<128x128xbf16, #tpu.memory_space<vmem>>, %arg5: memref<512x128xf32, #tpu.memory_space<vmem>>, %arg6: memref<512x128xf32, #tpu.memory_space<vmem>>) attributes {dimension_semantics = [#tpu.dimension_semantics<parallel>, #tpu.dimension_semantics<parallel>, #tpu.dimension_semantics<arbitrary>], iteration_bounds = array<i64: 4, 1, 1>, scalar_prefetch = 0 : i64, scratch_operands = 1 : i64, tpu.core_type = #tpu.core_type<tc>, window_params = [{transform_indices = @transform_0, window_bounds = array<i64: 512, 128>}, {transform_indices = @transform_1, window_bounds = array<i64: 128, 128>}, {transform_indices = @transform_2, window_bounds = array<i64: 512, 128>}]} {
    %c0_i32 = arith.constant 0 : i32
    %0 = arith.cmpi eq, %arg2, %c0_i32 : i32
    %1 = arith.extui %0 : i1 to i32
    %c0_i32_0 = arith.constant 0 : i32
    %2 = arith.cmpi ne, %1, %c0_i32_0 : i32
    scf.if %2 {
      %cst_10 = arith.constant 0.000000e+00 : f32
      %12 = vector.broadcast %cst_10 : f32 to vector<512x128xf32>
      %c0_11 = arith.constant 0 : index
      %c0_12 = arith.constant 0 : index
      %13 = vector.load %arg6[%c0_11, %c0_12] : memref<512x128xf32, #tpu.memory_space<vmem>>, vector<512x128xf32>
      tpu.vector_store %arg6[%c0_11, %c0_12], %12 {strides = array<i32>} : memref<512x128xf32, #tpu.memory_space<vmem>>, vector<512x128xf32>,
    } else {
    }
    %c0 = arith.constant 0 : index
    %c0_1 = arith.constant 0 : index
    %3 = vector.load %arg6[%c0, %c0_1] : memref<512x128xf32, #tpu.memory_space<vmem>>, vector<512x128xf32>
    %c0_2 = arith.constant 0 : index
    %c0_3 = arith.constant 0 : index
    %4 = vector.load %arg3[%c0_2, %c0_3] : memref<512x128xbf16, #tpu.memory_space<vmem>>, vector<512x128xbf16>
    %c0_4 = arith.constant 0 : index
    %c0_5 = arith.constant 0 : index
    %5 = vector.load %arg4[%c0_4, %c0_5] : memref<128x128xbf16, #tpu.memory_space<vmem>>, vector<128x128xbf16>
    %cst = arith.constant dense<0.000000e+00> : vector<512x128xf32>
    %6 = tpu.matmul %4, %5, %cst {dimension_numbers = #tpu.dot_dimension_numbers<[1], [0], [0], [1], [0, 0, 1, 1], [], []>} : vector<512x128xbf16>, vector<128x128xbf16>, vector<512x128xf32> -> vector<512x128xf32>
    %7 = arith.addf %3, %6 : vector<512x128xf32>
    %c0_6 = arith.constant 0 : index
    %c0_7 = arith.constant 0 : index
    %8 = vector.load %arg6[%c0_6, %c0_7] : memref<512x128xf32, #tpu.memory_space<vmem>>, vector<512x128xf32>
    tpu.vector_store %arg6[%c0_6, %c0_7], %7 {strides = array<i32>} : memref<512x128xf32, #tpu.memory_space<vmem>>, vector<512x128xf32>,
    %c0_i32_8 = arith.constant 0 : i32
    %9 = arith.cmpi eq, %arg2, %c0_i32_8 : i32
    %10 = arith.extui %9 : i1 to i32
    %c0_i32_9 = arith.constant 0 : i32
    %11 = arith.cmpi ne, %10, %c0_i32_9 : i32
    scf.if %11 {
      %c0_10 = arith.constant 0 : index
      %c0_11 = arith.constant 0 : index
      %12 = vector.load %arg6[%c0_10, %c0_11] : memref<512x128xf32, #tpu.memory_space<vmem>>, vector<512x128xf32>
      %cst_12 = arith.constant 0.000000e+00 : f32
      %13 = vector.broadcast %cst_12 : f32 to vector<512x128xf32>
      %14 = arith.cmpf oge, %12, %13 : vector<512x128xf32>
      %cst_13 = arith.constant 2.000000e-01 : f32
      %15 = vector.broadcast %cst_13 : f32 to vector<512x128xf32>
      %16 = arith.mulf %15, %12 : vector<512x128xf32>
      %17 = arith.select %14, %12, %16 : vector<512x128xi1>, vector<512x128xf32>
      %c0_14 = arith.constant 0 : index
      %c0_15 = arith.constant 0 : index
      %18 = vector.load %arg5[%c0_14, %c0_15] : memref<512x128xf32, #tpu.memory_space<vmem>>, vector<512x128xf32>
      tpu.vector_store %arg5[%c0_14, %c0_15], %17 {strides = array<i32>} : memref<512x128xf32, #tpu.memory_space<vmem>>, vector<512x128xf32>,
    } else {
    }
    return
  }
  func.func @transform_0(%arg0: i32, %arg1: i32, %arg2: i32) -> (i32, i32) {
    %c0_i32 = arith.constant 0 : i32
    return %arg0, %arg2 : i32, i32
  }
  func.func @transform_1(%arg0: i32, %arg1: i32, %arg2: i32) -> (i32, i32) {
    %c0_i32 = arith.constant 0 : i32
    return %arg2, %arg1 : i32, i32
  }
  func.func @transform_2(%arg0: i32, %arg1: i32, %arg2: i32) -> (i32, i32) {
    %c0_i32 = arith.constant 0 : i32
    return %arg0, %arg1 : i32, i32
  }
}

module attributes {stable_mosaic.version = 11 : i64} {
  func.func @_mm_stats_kernel(%arg0: i32, %arg1: i32, %arg2: i32, %arg3: memref<512x256xbf16, #tpu.memory_space<vmem>>, %arg4: memref<256x128xbf16, #tpu.memory_space<vmem>>, %arg5: memref<512x128xf32, #tpu.memory_space<vmem>>, %arg6: memref<8x128xf32, #tpu.memory_space<vmem>>, %arg7: memref<512x128xf32, #tpu.memory_space<vmem>>) attributes {dimension_semantics = [#tpu.dimension_semantics<parallel>, #tpu.dimension_semantics<arbitrary>, #tpu.dimension_semantics<arbitrary>], iteration_bounds = array<i64: 1, 1, 1>, scalar_prefetch = 0 : i64, scratch_operands = 1 : i64, tpu.core_type = #tpu.core_type<tc>, window_params = [{transform_indices = @transform_0, window_bounds = array<i64: 512, 256>}, {transform_indices = @transform_1, window_bounds = array<i64: 256, 128>}, {transform_indices = @transform_2, window_bounds = array<i64: 512, 128>}, {transform_indices = @transform_3, window_bounds = array<i64: 8, 128>}]} {
    %c0_i32 = arith.constant 0 : i32
    %0 = arith.cmpi eq, %arg2, %c0_i32 : i32
    %1 = arith.extui %0 : i1 to i32
    %c0_i32_0 = arith.constant 0 : i32
    %2 = arith.cmpi ne, %1, %c0_i32_0 : i32
    scf.if %2 {
      %cst_13 = arith.constant 0.000000e+00 : f32
      %17 = vector.broadcast %cst_13 : f32 to vector<512x128xf32>
      %c0_14 = arith.constant 0 : index
      %c0_15 = arith.constant 0 : index
      %18 = vector.load %arg7[%c0_14, %c0_15] : memref<512x128xf32, #tpu.memory_space<vmem>>, vector<512x128xf32>
      tpu.vector_store %arg7[%c0_14, %c0_15], %17 {strides = array<i32>} : memref<512x128xf32, #tpu.memory_space<vmem>>, vector<512x128xf32>,
    } else {
    }
    %c0_i32_1 = arith.constant 0 : i32
    %3 = arith.cmpi eq, %arg1, %c0_i32_1 : i32
    %c0_i32_2 = arith.constant 0 : i32
    %4 = arith.cmpi eq, %arg2, %c0_i32_2 : i32
    %5 = arith.andi %3, %4 : i1
    %6 = arith.extui %5 : i1 to i32
    %c0_i32_3 = arith.constant 0 : i32
    %7 = arith.cmpi ne, %6, %c0_i32_3 : i32
    scf.if %7 {
      %cst_13 = arith.constant 0.000000e+00 : f32
      %17 = vector.broadcast %cst_13 : f32 to vector<8x128xf32>
      %c0_14 = arith.constant 0 : index
      %c0_15 = arith.constant 0 : index
      %18 = vector.load %arg6[%c0_14, %c0_15] : memref<8x128xf32, #tpu.memory_space<vmem>>, vector<8x128xf32>
      tpu.vector_store %arg6[%c0_14, %c0_15], %17 {strides = array<i32>} : memref<8x128xf32, #tpu.memory_space<vmem>>, vector<8x128xf32>,
    } else {
    }
    %c0 = arith.constant 0 : index
    %c0_4 = arith.constant 0 : index
    %8 = vector.load %arg7[%c0, %c0_4] : memref<512x128xf32, #tpu.memory_space<vmem>>, vector<512x128xf32>
    %c0_5 = arith.constant 0 : index
    %c0_6 = arith.constant 0 : index
    %9 = vector.load %arg3[%c0_5, %c0_6] : memref<512x256xbf16, #tpu.memory_space<vmem>>, vector<512x256xbf16>
    %c0_7 = arith.constant 0 : index
    %c0_8 = arith.constant 0 : index
    %10 = vector.load %arg4[%c0_7, %c0_8] : memref<256x128xbf16, #tpu.memory_space<vmem>>, vector<256x128xbf16>
    %cst = arith.constant dense<0.000000e+00> : vector<512x128xf32>
    %11 = tpu.matmul %9, %10, %cst {dimension_numbers = #tpu.dot_dimension_numbers<[1], [0], [0], [1], [0, 0, 1, 1], [], []>} : vector<512x256xbf16>, vector<256x128xbf16>, vector<512x128xf32> -> vector<512x128xf32>
    %12 = arith.addf %8, %11 : vector<512x128xf32>
    %c0_9 = arith.constant 0 : index
    %c0_10 = arith.constant 0 : index
    %13 = vector.load %arg7[%c0_9, %c0_10] : memref<512x128xf32, #tpu.memory_space<vmem>>, vector<512x128xf32>
    tpu.vector_store %arg7[%c0_9, %c0_10], %12 {strides = array<i32>} : memref<512x128xf32, #tpu.memory_space<vmem>>, vector<512x128xf32>,
    %c0_i32_11 = arith.constant 0 : i32
    %14 = arith.cmpi eq, %arg2, %c0_i32_11 : i32
    %15 = arith.extui %14 : i1 to i32
    %c0_i32_12 = arith.constant 0 : i32
    %16 = arith.cmpi ne, %15, %c0_i32_12 : i32
    scf.if %16 {
      %c0_13 = arith.constant 0 : index
      %c0_14 = arith.constant 0 : index
      %17 = vector.load %arg7[%c0_13, %c0_14] : memref<512x128xf32, #tpu.memory_space<vmem>>, vector<512x128xf32>
      %c0_15 = arith.constant 0 : index
      %c0_16 = arith.constant 0 : index
      %18 = vector.load %arg5[%c0_15, %c0_16] : memref<512x128xf32, #tpu.memory_space<vmem>>, vector<512x128xf32>
      tpu.vector_store %arg5[%c0_15, %c0_16], %17 {strides = array<i32>} : memref<512x128xf32, #tpu.memory_space<vmem>>, vector<512x128xf32>,
      %cst_17 = arith.constant dense<0.000000e+00> : vector<128xf32>
      %19 = vector.multi_reduction <add>, %17, %cst_17 [0] : vector<512x128xf32> to vector<128xf32>
      %20 = vector.shape_cast %19 : vector<128xf32> to vector<1x128xf32>
      %21 = arith.mulf %17, %17 : vector<512x128xf32>
      %cst_18 = arith.constant dense<0.000000e+00> : vector<128xf32>
      %22 = vector.multi_reduction <add>, %21, %cst_18 [0] : vector<512x128xf32> to vector<128xf32>
      %23 = vector.shape_cast %22 : vector<128xf32> to vector<1x128xf32>
      %24 = tpu.iota {dimensions = array<i32: 0>} : vector<8x1xi32>
      %c0_i32_19 = arith.constant 0 : i32
      %25 = vector.broadcast %c0_i32_19 : i32 to vector<8x1xi32>
      %26 = arith.cmpi eq, %24, %25 : vector<8x1xi32>
      %c1_i32 = arith.constant 1 : i32
      %27 = vector.broadcast %c1_i32 : i32 to vector<8x1xi32>
      %28 = arith.cmpi eq, %24, %27 : vector<8x1xi32>
      %cst_20 = arith.constant 0.000000e+00 : f32
      %29 = vector.shape_cast %28 : vector<8x1xi1> to vector<8x1xi1>
      %30 = vector.broadcast %29 : vector<8x1xi1> to vector<8x128xi1>
      %31 = vector.shape_cast %23 : vector<1x128xf32> to vector<1x128xf32>
      %32 = vector.broadcast %31 : vector<1x128xf32> to vector<8x128xf32>
      %33 = vector.broadcast %cst_20 : f32 to vector<8x128xf32>
      %34 = arith.select %30, %32, %33 : vector<8x128xi1>, vector<8x128xf32>
      %35 = vector.shape_cast %26 : vector<8x1xi1> to vector<8x1xi1>
      %36 = vector.broadcast %35 : vector<8x1xi1> to vector<8x128xi1>
      %37 = vector.shape_cast %20 : vector<1x128xf32> to vector<1x128xf32>
      %38 = vector.broadcast %37 : vector<1x128xf32> to vector<8x128xf32>
      %39 = arith.select %36, %38, %34 : vector<8x128xi1>, vector<8x128xf32>
      %c0_21 = arith.constant 0 : index
      %c0_22 = arith.constant 0 : index
      %40 = vector.load %arg6[%c0_21, %c0_22] : memref<8x128xf32, #tpu.memory_space<vmem>>, vector<8x128xf32>
      %41 = arith.addf %40, %39 : vector<8x128xf32>
      %c0_23 = arith.constant 0 : index
      %c0_24 = arith.constant 0 : index
      %42 = vector.load %arg6[%c0_23, %c0_24] : memref<8x128xf32, #tpu.memory_space<vmem>>, vector<8x128xf32>
      tpu.vector_store %arg6[%c0_23, %c0_24], %41 {strides = array<i32>} : memref<8x128xf32, #tpu.memory_space<vmem>>, vector<8x128xf32>,
    } else {
    }
    return
  }
  func.func @transform_0(%arg0: i32, %arg1: i32, %arg2: i32) -> (i32, i32) {
    %c0_i32 = arith.constant 0 : i32
    return %arg1, %arg2 : i32, i32
  }
  func.func @transform_1(%arg0: i32, %arg1: i32, %arg2: i32) -> (i32, i32) {
    %c0_i32 = arith.constant 0 : i32
    return %arg2, %arg0 : i32, i32
  }
  func.func @transform_2(%arg0: i32, %arg1: i32, %arg2: i32) -> (i32, i32) {
    %c0_i32 = arith.constant 0 : i32
    return %arg1, %arg0 : i32, i32
  }
  func.func @transform_3(%arg0: i32, %arg1: i32, %arg2: i32) -> (i32, i32) {
    %c0_i32 = arith.constant 0 : i32
    %c0_i32_0 = arith.constant 0 : i32
    return %c0_i32, %arg0 : i32, i32
  }
}

module attributes {stable_mosaic.version = 11 : i64} {
  func.func @_scale_shift_lrelu_kernel(%arg0: i32, %arg1: memref<512x128xf32, #tpu.memory_space<vmem>>, %arg2: memref<1x128xf32, #tpu.memory_space<vmem>>, %arg3: memref<1x128xf32, #tpu.memory_space<vmem>>, %arg4: memref<512x128xf32, #tpu.memory_space<vmem>>) attributes {dimension_semantics = [#tpu.dimension_semantics<parallel>], iteration_bounds = array<i64: 1>, scalar_prefetch = 0 : i64, scratch_operands = 0 : i64, tpu.core_type = #tpu.core_type<tc>, window_params = [{transform_indices = @transform_0, window_bounds = array<i64: 512, 128>}, {pipeline_mode = #tpu.pipeline_mode<synchronous>, transform_indices = @transform_1, window_bounds = array<i64: 1, 128>}, {pipeline_mode = #tpu.pipeline_mode<synchronous>, transform_indices = @transform_2, window_bounds = array<i64: 1, 128>}, {transform_indices = @transform_3, window_bounds = array<i64: 512, 128>}]} {
    %c0 = arith.constant 0 : index
    %c0_0 = arith.constant 0 : index
    %0 = vector.load %arg1[%c0, %c0_0] : memref<512x128xf32, #tpu.memory_space<vmem>>, vector<512x128xf32>
    %c0_1 = arith.constant 0 : index
    %c0_2 = arith.constant 0 : index
    %1 = vector.load %arg2[%c0_1, %c0_2] : memref<1x128xf32, #tpu.memory_space<vmem>>, vector<1x128xf32>
    %2 = vector.broadcast %1 : vector<1x128xf32> to vector<512x128xf32>
    %3 = arith.mulf %0, %2 : vector<512x128xf32>
    %c0_3 = arith.constant 0 : index
    %c0_4 = arith.constant 0 : index
    %4 = vector.load %arg3[%c0_3, %c0_4] : memref<1x128xf32, #tpu.memory_space<vmem>>, vector<1x128xf32>
    %5 = vector.broadcast %4 : vector<1x128xf32> to vector<512x128xf32>
    %6 = arith.addf %3, %5 : vector<512x128xf32>
    %cst = arith.constant 0.000000e+00 : f32
    %7 = vector.broadcast %cst : f32 to vector<512x128xf32>
    %8 = arith.cmpf oge, %6, %7 : vector<512x128xf32>
    %cst_5 = arith.constant 2.000000e-01 : f32
    %9 = vector.broadcast %cst_5 : f32 to vector<512x128xf32>
    %10 = arith.mulf %9, %6 : vector<512x128xf32>
    %11 = arith.select %8, %6, %10 : vector<512x128xi1>, vector<512x128xf32>
    %c0_6 = arith.constant 0 : index
    %c0_7 = arith.constant 0 : index
    %12 = vector.load %arg4[%c0_6, %c0_7] : memref<512x128xf32, #tpu.memory_space<vmem>>, vector<512x128xf32>
    tpu.vector_store %arg4[%c0_6, %c0_7], %11 {strides = array<i32>} : memref<512x128xf32, #tpu.memory_space<vmem>>, vector<512x128xf32>,
    return
  }
  func.func @transform_0(%arg0: i32) -> (i32, i32) {
    %c0_i32 = arith.constant 0 : i32
    %c0_i32_0 = arith.constant 0 : i32
    return %arg0, %c0_i32 : i32, i32
  }
  func.func @transform_1(%arg0: i32) -> (i32, i32) {
    %c0_i32 = arith.constant 0 : i32
    %c0_i32_0 = arith.constant 0 : i32
    %c0_i32_1 = arith.constant 0 : i32
    return %c0_i32, %c0_i32_0 : i32, i32
  }
  func.func @transform_2(%arg0: i32) -> (i32, i32) {
    %c0_i32 = arith.constant 0 : i32
    %c0_i32_0 = arith.constant 0 : i32
    %c0_i32_1 = arith.constant 0 : i32
    return %c0_i32, %c0_i32_0 : i32, i32
  }
  func.func @transform_3(%arg0: i32) -> (i32, i32) {
    %c0_i32 = arith.constant 0 : i32
    %c0_i32_0 = arith.constant 0 : i32
    return %arg0, %c0_i32 : i32, i32
  }
}

module attributes {stable_mosaic.version = 11 : i64} {
  func.func @_mm_stats_kernel(%arg0: i32, %arg1: i32, %arg2: i32, %arg3: memref<128x512xbf16, #tpu.memory_space<vmem>>, %arg4: memref<512x128xbf16, #tpu.memory_space<vmem>>, %arg5: memref<128x128xf32, #tpu.memory_space<vmem>>, %arg6: memref<8x128xf32, #tpu.memory_space<vmem>>, %arg7: memref<128x128xf32, #tpu.memory_space<vmem>>) attributes {dimension_semantics = [#tpu.dimension_semantics<parallel>, #tpu.dimension_semantics<arbitrary>, #tpu.dimension_semantics<arbitrary>], iteration_bounds = array<i64: 1, 1, 1>, scalar_prefetch = 0 : i64, scratch_operands = 1 : i64, tpu.core_type = #tpu.core_type<tc>, window_params = [{transform_indices = @transform_0, window_bounds = array<i64: 128, 512>}, {transform_indices = @transform_1, window_bounds = array<i64: 512, 128>}, {transform_indices = @transform_2, window_bounds = array<i64: 128, 128>}, {transform_indices = @transform_3, window_bounds = array<i64: 8, 128>}]} {
    %c0_i32 = arith.constant 0 : i32
    %0 = arith.cmpi eq, %arg2, %c0_i32 : i32
    %1 = arith.extui %0 : i1 to i32
    %c0_i32_0 = arith.constant 0 : i32
    %2 = arith.cmpi ne, %1, %c0_i32_0 : i32
    scf.if %2 {
      %cst_13 = arith.constant 0.000000e+00 : f32
      %17 = vector.broadcast %cst_13 : f32 to vector<128x128xf32>
      %c0_14 = arith.constant 0 : index
      %c0_15 = arith.constant 0 : index
      %18 = vector.load %arg7[%c0_14, %c0_15] : memref<128x128xf32, #tpu.memory_space<vmem>>, vector<128x128xf32>
      tpu.vector_store %arg7[%c0_14, %c0_15], %17 {strides = array<i32>} : memref<128x128xf32, #tpu.memory_space<vmem>>, vector<128x128xf32>,
    } else {
    }
    %c0_i32_1 = arith.constant 0 : i32
    %3 = arith.cmpi eq, %arg1, %c0_i32_1 : i32
    %c0_i32_2 = arith.constant 0 : i32
    %4 = arith.cmpi eq, %arg2, %c0_i32_2 : i32
    %5 = arith.andi %3, %4 : i1
    %6 = arith.extui %5 : i1 to i32
    %c0_i32_3 = arith.constant 0 : i32
    %7 = arith.cmpi ne, %6, %c0_i32_3 : i32
    scf.if %7 {
      %cst_13 = arith.constant 0.000000e+00 : f32
      %17 = vector.broadcast %cst_13 : f32 to vector<8x128xf32>
      %c0_14 = arith.constant 0 : index
      %c0_15 = arith.constant 0 : index
      %18 = vector.load %arg6[%c0_14, %c0_15] : memref<8x128xf32, #tpu.memory_space<vmem>>, vector<8x128xf32>
      tpu.vector_store %arg6[%c0_14, %c0_15], %17 {strides = array<i32>} : memref<8x128xf32, #tpu.memory_space<vmem>>, vector<8x128xf32>,
    } else {
    }
    %c0 = arith.constant 0 : index
    %c0_4 = arith.constant 0 : index
    %8 = vector.load %arg7[%c0, %c0_4] : memref<128x128xf32, #tpu.memory_space<vmem>>, vector<128x128xf32>
    %c0_5 = arith.constant 0 : index
    %c0_6 = arith.constant 0 : index
    %9 = vector.load %arg3[%c0_5, %c0_6] : memref<128x512xbf16, #tpu.memory_space<vmem>>, vector<128x512xbf16>
    %c0_7 = arith.constant 0 : index
    %c0_8 = arith.constant 0 : index
    %10 = vector.load %arg4[%c0_7, %c0_8] : memref<512x128xbf16, #tpu.memory_space<vmem>>, vector<512x128xbf16>
    %cst = arith.constant dense<0.000000e+00> : vector<128x128xf32>
    %11 = tpu.matmul %9, %10, %cst {dimension_numbers = #tpu.dot_dimension_numbers<[1], [0], [0], [1], [0, 0, 1, 1], [], []>} : vector<128x512xbf16>, vector<512x128xbf16>, vector<128x128xf32> -> vector<128x128xf32>
    %12 = arith.addf %8, %11 : vector<128x128xf32>
    %c0_9 = arith.constant 0 : index
    %c0_10 = arith.constant 0 : index
    %13 = vector.load %arg7[%c0_9, %c0_10] : memref<128x128xf32, #tpu.memory_space<vmem>>, vector<128x128xf32>
    tpu.vector_store %arg7[%c0_9, %c0_10], %12 {strides = array<i32>} : memref<128x128xf32, #tpu.memory_space<vmem>>, vector<128x128xf32>,
    %c0_i32_11 = arith.constant 0 : i32
    %14 = arith.cmpi eq, %arg2, %c0_i32_11 : i32
    %15 = arith.extui %14 : i1 to i32
    %c0_i32_12 = arith.constant 0 : i32
    %16 = arith.cmpi ne, %15, %c0_i32_12 : i32
    scf.if %16 {
      %c0_13 = arith.constant 0 : index
      %c0_14 = arith.constant 0 : index
      %17 = vector.load %arg7[%c0_13, %c0_14] : memref<128x128xf32, #tpu.memory_space<vmem>>, vector<128x128xf32>
      %c0_15 = arith.constant 0 : index
      %c0_16 = arith.constant 0 : index
      %18 = vector.load %arg5[%c0_15, %c0_16] : memref<128x128xf32, #tpu.memory_space<vmem>>, vector<128x128xf32>
      tpu.vector_store %arg5[%c0_15, %c0_16], %17 {strides = array<i32>} : memref<128x128xf32, #tpu.memory_space<vmem>>, vector<128x128xf32>,
      %cst_17 = arith.constant dense<0.000000e+00> : vector<128xf32>
      %19 = vector.multi_reduction <add>, %17, %cst_17 [0] : vector<128x128xf32> to vector<128xf32>
      %20 = vector.shape_cast %19 : vector<128xf32> to vector<1x128xf32>
      %21 = arith.mulf %17, %17 : vector<128x128xf32>
      %cst_18 = arith.constant dense<0.000000e+00> : vector<128xf32>
      %22 = vector.multi_reduction <add>, %21, %cst_18 [0] : vector<128x128xf32> to vector<128xf32>
      %23 = vector.shape_cast %22 : vector<128xf32> to vector<1x128xf32>
      %24 = tpu.iota {dimensions = array<i32: 0>} : vector<8x1xi32>
      %c0_i32_19 = arith.constant 0 : i32
      %25 = vector.broadcast %c0_i32_19 : i32 to vector<8x1xi32>
      %26 = arith.cmpi eq, %24, %25 : vector<8x1xi32>
      %c1_i32 = arith.constant 1 : i32
      %27 = vector.broadcast %c1_i32 : i32 to vector<8x1xi32>
      %28 = arith.cmpi eq, %24, %27 : vector<8x1xi32>
      %cst_20 = arith.constant 0.000000e+00 : f32
      %29 = vector.shape_cast %28 : vector<8x1xi1> to vector<8x1xi1>
      %30 = vector.broadcast %29 : vector<8x1xi1> to vector<8x128xi1>
      %31 = vector.shape_cast %23 : vector<1x128xf32> to vector<1x128xf32>
      %32 = vector.broadcast %31 : vector<1x128xf32> to vector<8x128xf32>
      %33 = vector.broadcast %cst_20 : f32 to vector<8x128xf32>
      %34 = arith.select %30, %32, %33 : vector<8x128xi1>, vector<8x128xf32>
      %35 = vector.shape_cast %26 : vector<8x1xi1> to vector<8x1xi1>
      %36 = vector.broadcast %35 : vector<8x1xi1> to vector<8x128xi1>
      %37 = vector.shape_cast %20 : vector<1x128xf32> to vector<1x128xf32>
      %38 = vector.broadcast %37 : vector<1x128xf32> to vector<8x128xf32>
      %39 = arith.select %36, %38, %34 : vector<8x128xi1>, vector<8x128xf32>
      %c0_21 = arith.constant 0 : index
      %c0_22 = arith.constant 0 : index
      %40 = vector.load %arg6[%c0_21, %c0_22] : memref<8x128xf32, #tpu.memory_space<vmem>>, vector<8x128xf32>
      %41 = arith.addf %40, %39 : vector<8x128xf32>
      %c0_23 = arith.constant 0 : index
      %c0_24 = arith.constant 0 : index
      %42 = vector.load %arg6[%c0_23, %c0_24] : memref<8x128xf32, #tpu.memory_space<vmem>>, vector<8x128xf32>
      tpu.vector_store %arg6[%c0_23, %c0_24], %41 {strides = array<i32>} : memref<8x128xf32, #tpu.memory_space<vmem>>, vector<8x128xf32>,
    } else {
    }
    return
  }
  func.func @transform_0(%arg0: i32, %arg1: i32, %arg2: i32) -> (i32, i32) {
    %c0_i32 = arith.constant 0 : i32
    return %arg1, %arg2 : i32, i32
  }
  func.func @transform_1(%arg0: i32, %arg1: i32, %arg2: i32) -> (i32, i32) {
    %c0_i32 = arith.constant 0 : i32
    return %arg2, %arg0 : i32, i32
  }
  func.func @transform_2(%arg0: i32, %arg1: i32, %arg2: i32) -> (i32, i32) {
    %c0_i32 = arith.constant 0 : i32
    return %arg1, %arg0 : i32, i32
  }
  func.func @transform_3(%arg0: i32, %arg1: i32, %arg2: i32) -> (i32, i32) {
    %c0_i32 = arith.constant 0 : i32
    %c0_i32_0 = arith.constant 0 : i32
    return %c0_i32, %arg0 : i32, i32
  }
}

module attributes {stable_mosaic.version = 11 : i64} {
  func.func @_scale_shift_lrelu_kernel(%arg0: i32, %arg1: memref<128x128xf32, #tpu.memory_space<vmem>>, %arg2: memref<1x128xf32, #tpu.memory_space<vmem>>, %arg3: memref<1x128xf32, #tpu.memory_space<vmem>>, %arg4: memref<128x128xf32, #tpu.memory_space<vmem>>) attributes {dimension_semantics = [#tpu.dimension_semantics<parallel>], iteration_bounds = array<i64: 1>, scalar_prefetch = 0 : i64, scratch_operands = 0 : i64, tpu.core_type = #tpu.core_type<tc>, window_params = [{transform_indices = @transform_0, window_bounds = array<i64: 128, 128>}, {pipeline_mode = #tpu.pipeline_mode<synchronous>, transform_indices = @transform_1, window_bounds = array<i64: 1, 128>}, {pipeline_mode = #tpu.pipeline_mode<synchronous>, transform_indices = @transform_2, window_bounds = array<i64: 1, 128>}, {transform_indices = @transform_3, window_bounds = array<i64: 128, 128>}]} {
    %c0 = arith.constant 0 : index
    %c0_0 = arith.constant 0 : index
    %0 = vector.load %arg1[%c0, %c0_0] : memref<128x128xf32, #tpu.memory_space<vmem>>, vector<128x128xf32>
    %c0_1 = arith.constant 0 : index
    %c0_2 = arith.constant 0 : index
    %1 = vector.load %arg2[%c0_1, %c0_2] : memref<1x128xf32, #tpu.memory_space<vmem>>, vector<1x128xf32>
    %2 = vector.broadcast %1 : vector<1x128xf32> to vector<128x128xf32>
    %3 = arith.mulf %0, %2 : vector<128x128xf32>
    %c0_3 = arith.constant 0 : index
    %c0_4 = arith.constant 0 : index
    %4 = vector.load %arg3[%c0_3, %c0_4] : memref<1x128xf32, #tpu.memory_space<vmem>>, vector<1x128xf32>
    %5 = vector.broadcast %4 : vector<1x128xf32> to vector<128x128xf32>
    %6 = arith.addf %3, %5 : vector<128x128xf32>
    %cst = arith.constant 0.000000e+00 : f32
    %7 = vector.broadcast %cst : f32 to vector<128x128xf32>
    %8 = arith.cmpf oge, %6, %7 : vector<128x128xf32>
    %cst_5 = arith.constant 2.000000e-01 : f32
    %9 = vector.broadcast %cst_5 : f32 to vector<128x128xf32>
    %10 = arith.mulf %9, %6 : vector<128x128xf32>
    %11 = arith.select %8, %6, %10 : vector<128x128xi1>, vector<128x128xf32>
    %c0_6 = arith.constant 0 : index
    %c0_7 = arith.constant 0 : index
    %12 = vector.load %arg4[%c0_6, %c0_7] : memref<128x128xf32, #tpu.memory_space<vmem>>, vector<128x128xf32>
    tpu.vector_store %arg4[%c0_6, %c0_7], %11 {strides = array<i32>} : memref<128x128xf32, #tpu.memory_space<vmem>>, vector<128x128xf32>,
    return
  }
  func.func @transform_0(%arg0: i32) -> (i32, i32) {
    %c0_i32 = arith.constant 0 : i32
    %c0_i32_0 = arith.constant 0 : i32
    return %arg0, %c0_i32 : i32, i32
  }
  func.func @transform_1(%arg0: i32) -> (i32, i32) {
    %c0_i32 = arith.constant 0 : i32
    %c0_i32_0 = arith.constant 0 : i32
    %c0_i32_1 = arith.constant 0 : i32
    return %c0_i32, %c0_i32_0 : i32, i32
  }
  func.func @transform_2(%arg0: i32) -> (i32, i32) {
    %c0_i32 = arith.constant 0 : i32
    %c0_i32_0 = arith.constant 0 : i32
    %c0_i32_1 = arith.constant 0 : i32
    return %c0_i32, %c0_i32_0 : i32, i32
  }
  func.func @transform_3(%arg0: i32) -> (i32, i32) {
    %c0_i32 = arith.constant 0 : i32
    %c0_i32_0 = arith.constant 0 : i32
    return %arg0, %c0_i32 : i32, i32
  }
}

module attributes {stable_mosaic.version = 11 : i64} {
  func.func @_mm_stats_kernel(%arg0: i32, %arg1: i32, %arg2: i32, %arg3: memref<128x512xbf16, #tpu.memory_space<vmem>>, %arg4: memref<512x128xbf16, #tpu.memory_space<vmem>>, %arg5: memref<128x128xf32, #tpu.memory_space<vmem>>, %arg6: memref<8x128xf32, #tpu.memory_space<vmem>>, %arg7: memref<128x128xf32, #tpu.memory_space<vmem>>) attributes {dimension_semantics = [#tpu.dimension_semantics<parallel>, #tpu.dimension_semantics<arbitrary>, #tpu.dimension_semantics<arbitrary>], iteration_bounds = array<i64: 1, 1, 2>, scalar_prefetch = 0 : i64, scratch_operands = 1 : i64, tpu.core_type = #tpu.core_type<tc>, window_params = [{transform_indices = @transform_0, window_bounds = array<i64: 128, 512>}, {transform_indices = @transform_1, window_bounds = array<i64: 512, 128>}, {transform_indices = @transform_2, window_bounds = array<i64: 128, 128>}, {transform_indices = @transform_3, window_bounds = array<i64: 8, 128>}]} {
    %c0_i32 = arith.constant 0 : i32
    %0 = arith.cmpi eq, %arg2, %c0_i32 : i32
    %1 = arith.extui %0 : i1 to i32
    %c0_i32_0 = arith.constant 0 : i32
    %2 = arith.cmpi ne, %1, %c0_i32_0 : i32
    scf.if %2 {
      %cst_12 = arith.constant 0.000000e+00 : f32
      %17 = vector.broadcast %cst_12 : f32 to vector<128x128xf32>
      %c0_13 = arith.constant 0 : index
      %c0_14 = arith.constant 0 : index
      %18 = vector.load %arg7[%c0_13, %c0_14] : memref<128x128xf32, #tpu.memory_space<vmem>>, vector<128x128xf32>
      tpu.vector_store %arg7[%c0_13, %c0_14], %17 {strides = array<i32>} : memref<128x128xf32, #tpu.memory_space<vmem>>, vector<128x128xf32>,
    } else {
    }
    %c0_i32_1 = arith.constant 0 : i32
    %3 = arith.cmpi eq, %arg1, %c0_i32_1 : i32
    %c0_i32_2 = arith.constant 0 : i32
    %4 = arith.cmpi eq, %arg2, %c0_i32_2 : i32
    %5 = arith.andi %3, %4 : i1
    %6 = arith.extui %5 : i1 to i32
    %c0_i32_3 = arith.constant 0 : i32
    %7 = arith.cmpi ne, %6, %c0_i32_3 : i32
    scf.if %7 {
      %cst_12 = arith.constant 0.000000e+00 : f32
      %17 = vector.broadcast %cst_12 : f32 to vector<8x128xf32>
      %c0_13 = arith.constant 0 : index
      %c0_14 = arith.constant 0 : index
      %18 = vector.load %arg6[%c0_13, %c0_14] : memref<8x128xf32, #tpu.memory_space<vmem>>, vector<8x128xf32>
      tpu.vector_store %arg6[%c0_13, %c0_14], %17 {strides = array<i32>} : memref<8x128xf32, #tpu.memory_space<vmem>>, vector<8x128xf32>,
    } else {
    }
    %c0 = arith.constant 0 : index
    %c0_4 = arith.constant 0 : index
    %8 = vector.load %arg7[%c0, %c0_4] : memref<128x128xf32, #tpu.memory_space<vmem>>, vector<128x128xf32>
    %c0_5 = arith.constant 0 : index
    %c0_6 = arith.constant 0 : index
    %9 = vector.load %arg3[%c0_5, %c0_6] : memref<128x512xbf16, #tpu.memory_space<vmem>>, vector<128x512xbf16>
    %c0_7 = arith.constant 0 : index
    %c0_8 = arith.constant 0 : index
    %10 = vector.load %arg4[%c0_7, %c0_8] : memref<512x128xbf16, #tpu.memory_space<vmem>>, vector<512x128xbf16>
    %cst = arith.constant dense<0.000000e+00> : vector<128x128xf32>
    %11 = tpu.matmul %9, %10, %cst {dimension_numbers = #tpu.dot_dimension_numbers<[1], [0], [0], [1], [0, 0, 1, 1], [], []>} : vector<128x512xbf16>, vector<512x128xbf16>, vector<128x128xf32> -> vector<128x128xf32>
    %12 = arith.addf %8, %11 : vector<128x128xf32>
    %c0_9 = arith.constant 0 : index
    %c0_10 = arith.constant 0 : index
    %13 = vector.load %arg7[%c0_9, %c0_10] : memref<128x128xf32, #tpu.memory_space<vmem>>, vector<128x128xf32>
    tpu.vector_store %arg7[%c0_9, %c0_10], %12 {strides = array<i32>} : memref<128x128xf32, #tpu.memory_space<vmem>>, vector<128x128xf32>,
    %c1_i32 = arith.constant 1 : i32
    %14 = arith.cmpi eq, %arg2, %c1_i32 : i32
    %15 = arith.extui %14 : i1 to i32
    %c0_i32_11 = arith.constant 0 : i32
    %16 = arith.cmpi ne, %15, %c0_i32_11 : i32
    scf.if %16 {
      %c0_12 = arith.constant 0 : index
      %c0_13 = arith.constant 0 : index
      %17 = vector.load %arg7[%c0_12, %c0_13] : memref<128x128xf32, #tpu.memory_space<vmem>>, vector<128x128xf32>
      %c0_14 = arith.constant 0 : index
      %c0_15 = arith.constant 0 : index
      %18 = vector.load %arg5[%c0_14, %c0_15] : memref<128x128xf32, #tpu.memory_space<vmem>>, vector<128x128xf32>
      tpu.vector_store %arg5[%c0_14, %c0_15], %17 {strides = array<i32>} : memref<128x128xf32, #tpu.memory_space<vmem>>, vector<128x128xf32>,
      %cst_16 = arith.constant dense<0.000000e+00> : vector<128xf32>
      %19 = vector.multi_reduction <add>, %17, %cst_16 [0] : vector<128x128xf32> to vector<128xf32>
      %20 = vector.shape_cast %19 : vector<128xf32> to vector<1x128xf32>
      %21 = arith.mulf %17, %17 : vector<128x128xf32>
      %cst_17 = arith.constant dense<0.000000e+00> : vector<128xf32>
      %22 = vector.multi_reduction <add>, %21, %cst_17 [0] : vector<128x128xf32> to vector<128xf32>
      %23 = vector.shape_cast %22 : vector<128xf32> to vector<1x128xf32>
      %24 = tpu.iota {dimensions = array<i32: 0>} : vector<8x1xi32>
      %c0_i32_18 = arith.constant 0 : i32
      %25 = vector.broadcast %c0_i32_18 : i32 to vector<8x1xi32>
      %26 = arith.cmpi eq, %24, %25 : vector<8x1xi32>
      %c1_i32_19 = arith.constant 1 : i32
      %27 = vector.broadcast %c1_i32_19 : i32 to vector<8x1xi32>
      %28 = arith.cmpi eq, %24, %27 : vector<8x1xi32>
      %cst_20 = arith.constant 0.000000e+00 : f32
      %29 = vector.shape_cast %28 : vector<8x1xi1> to vector<8x1xi1>
      %30 = vector.broadcast %29 : vector<8x1xi1> to vector<8x128xi1>
      %31 = vector.shape_cast %23 : vector<1x128xf32> to vector<1x128xf32>
      %32 = vector.broadcast %31 : vector<1x128xf32> to vector<8x128xf32>
      %33 = vector.broadcast %cst_20 : f32 to vector<8x128xf32>
      %34 = arith.select %30, %32, %33 : vector<8x128xi1>, vector<8x128xf32>
      %35 = vector.shape_cast %26 : vector<8x1xi1> to vector<8x1xi1>
      %36 = vector.broadcast %35 : vector<8x1xi1> to vector<8x128xi1>
      %37 = vector.shape_cast %20 : vector<1x128xf32> to vector<1x128xf32>
      %38 = vector.broadcast %37 : vector<1x128xf32> to vector<8x128xf32>
      %39 = arith.select %36, %38, %34 : vector<8x128xi1>, vector<8x128xf32>
      %c0_21 = arith.constant 0 : index
      %c0_22 = arith.constant 0 : index
      %40 = vector.load %arg6[%c0_21, %c0_22] : memref<8x128xf32, #tpu.memory_space<vmem>>, vector<8x128xf32>
      %41 = arith.addf %40, %39 : vector<8x128xf32>
      %c0_23 = arith.constant 0 : index
      %c0_24 = arith.constant 0 : index
      %42 = vector.load %arg6[%c0_23, %c0_24] : memref<8x128xf32, #tpu.memory_space<vmem>>, vector<8x128xf32>
      tpu.vector_store %arg6[%c0_23, %c0_24], %41 {strides = array<i32>} : memref<8x128xf32, #tpu.memory_space<vmem>>, vector<8x128xf32>,
    } else {
    }
    return
  }
  func.func @transform_0(%arg0: i32, %arg1: i32, %arg2: i32) -> (i32, i32) {
    %c0_i32 = arith.constant 0 : i32
    return %arg1, %arg2 : i32, i32
  }
  func.func @transform_1(%arg0: i32, %arg1: i32, %arg2: i32) -> (i32, i32) {
    %c0_i32 = arith.constant 0 : i32
    return %arg2, %arg0 : i32, i32
  }
  func.func @transform_2(%arg0: i32, %arg1: i32, %arg2: i32) -> (i32, i32) {
    %c0_i32 = arith.constant 0 : i32
    return %arg1, %arg0 : i32, i32
  }
  func.func @transform_3(%arg0: i32, %arg1: i32, %arg2: i32) -> (i32, i32) {
    %c0_i32 = arith.constant 0 : i32
    %c0_i32_0 = arith.constant 0 : i32
    return %c0_i32, %arg0 : i32, i32
  }
}

</mosaic_0001>

<bundles_post_ra>
// kernel: image_discriminator_forward.7
= control target key start
LH: loop header
LB: loop body
LE: loop exit
PB: predicated region body
PF: predicated region fallthrough
CT: control target
= control target key end

     0   :  { %s1688_s9 = smov 0   ;;  %s1690_s10 = smov 0   ;;  %s1852_s0 = inlined_call_operand.vmem [shape: bf16[2048,128], index: 0, kind: input, shape index: {}]   ;;  %s1853_s1 = inlined_call_operand.vmem [shape: bf16[128,128], index: 1, kind: input, shape index: {}]   ;;  %s1854_s2 = inlined_call_operand.vmem [shape: f32[2048,128], index: 2, kind: output, shape index: {}]  }
   0x1   :  { %s1692_s11 = smov 0  }
   0x2 LB: > { %s31_s12 = sadd.s32 1, %s1667_s10  ;;  %p1394_p0 = scmp.ge.s32.totalorder %s1671_s11, 1  ;;  %s1671_s11 = sphi %s1692_s11, %s12_s11   ;;  %s1667_s10 = sphi %s1690_s10, %s1856_s10   ;;  %s1663_s9 = sphi %s1688_s9, %s1855_s9  }
   0x3   : > { %p33_p1 = scmp.ge.s32.totalorder %s31_s12, 4  ;;  %p155_p2 = scmp.lt.s32.totalorder %s1671_s11, 5 }
   0x5   : > { %s1858_s12 = smov (%p33_p1, %s31_s12), 0  ;;  %p156_p3 = pnand %p1394_p0, %p155_p2 }
   0x6   : > { %s1395_s21 = sshll.u32 (!%p156_p3), %s1663_s9, 6 }
   0x7   : > { %159 = sbr.rel (%p156_p3) target bundleno = 302 (0x12e), region = 28  ;;  %p192_p4 = scmp.lt.s32.totalorder (!%p156_p3), %s1395_s21, 255 }
   0xc   : > { %v1600_v0 = vld [vmem:[%s1853_s1 + $0x38] sm:$0xff]  ;;  %v1599_v1 = vld [vmem:[%s1853_s1 + $0x30] sm:$0xff]  ;;  %v1598_v2 = vld [vmem:[%s1853_s1 + $0x28] sm:$0xff]  ;;  %s1860_s21 = smov (!%p192_p4, %s1395_s21), 255 }
   0xd   : > { %670 = vmatpush.bf16.msra.mxu0 %v1600_v0  ;;  %1601 = vmatpush.bf16.msra.mxu1 %v1600_v0  ;;  %v1597_v3 = vld [vmem:[%s1853_s1 + $0x20] sm:$0xff]  ;;  %v1596_v4 = vld [vmem:[%s1853_s1 + $0x18] sm:$0xff]  ;;  %v1595_v5 = vld [vmem:[%s1853_s1 + $0x10] sm:$0xff]  ;;  %s1396_s28 = sshll.u32 %s1860_s21, 2  ;;  %s1398_s6 = sshll.u32 %s1860_s21, 3 }
   0xe   : > { %1602 = vmatpush.bf16.msra.mxu2 %v1600_v0  ;;  %1603 = vmatpush.bf16.msra.mxu3 %v1600_v0  ;;  %v1594_v6 = vld [vmem:[%s1853_s1 + $0x8] sm:$0xff]  ;;  %v1593_v7 = vld [vmem:[%s1853_s1] sm:$0xff]  ;;  %s1739_s5 = scalar_lea.vmem %s1852_s0, %s1396_s28  ;;  %s1777_s9 = scalar_lea.vmem %s1854_s2, %s1398_s6 }
   0xf   : > { %v1561_v8 = vld [vmem:[%s1739_s5] sm:$0xff]  ;;  %v1562_v12 = vld [vmem:[%s1739_s5 + $0x8] sm:$0xff]  ;;  %v1563_v16 = vld [vmem:[%s1739_s5 + $0x10] sm:$0xff] }
  0x10   : > { %v1569_v9 = vld [vmem:[%s1739_s5 + $0x40] sm:$0xff]  ;;  %v1570_v13 = vld [vmem:[%s1739_s5 + $0x48] sm:$0xff]  ;;  %v1571_v17 = vld [vmem:[%s1739_s5 + $0x50] sm:$0xff] }
  0x11   : > { %671 = vmatpush.bf16.msra.mxu0 %v1599_v1  ;;  %1604 = vmatpush.bf16.msra.mxu1 %v1599_v1  ;;  %v1577_v10 = vld [vmem:[%s1739_s5 + $0x80] sm:$0xff]  ;;  %v1578_v14 = vld [vmem:[%s1739_s5 + $0x88] sm:$0xff]  ;;  %v1579_v18 = vld [vmem:[%s1739_s5 + $0x90] sm:$0xff] }
  0x12   : > { %1605 = vmatpush.bf16.msra.mxu2 %v1599_v1  ;;  %1606 = vmatpush.bf16.msra.mxu3 %v1599_v1  ;;  %v1585_v11 = vld [vmem:[%s1739_s5 + $0xc0] sm:$0xff]  ;;  %v1586_v15 = vld [vmem:[%s1739_s5 + $0xc8] sm:$0xff]  ;;  %v1587_v19 = vld [vmem:[%s1739_s5 + $0xd0] sm:$0xff] }
  0x13   : > { %v1564_v20 = vld [vmem:[%s1739_s5 + $0x18] sm:$0xff]  ;;  %v1565_v24 = vld [vmem:[%s1739_s5 + $0x20] sm:$0xff]  ;;  %v1566_v28 = vld [vmem:[%s1739_s5 + $0x28] sm:$0xff] }
  0x14   : > { %v1572_v21 = vld [vmem:[%s1739_s5 + $0x58] sm:$0xff]  ;;  %v1573_v25 = vld [vmem:[%s1739_s5 + $0x60] sm:$0xff]  ;;  %v1574_v29 = vld [vmem:[%s1739_s5 + $0x68] sm:$0xff] }
  0x15   : > { %672 = vmatpush.bf16.msra.mxu0 %v1598_v2  ;;  %1607 = vmatpush.bf16.msra.mxu1 %v1598_v2  ;;  %v1580_v22 = vld [vmem:[%s1739_s5 + $0x98] sm:$0xff]  ;;  %v1581_v26 = vld [vmem:[%s1739_s5 + $0xa0] sm:$0xff]  ;;  %v1582_v30 = vld [vmem:[%s1739_s5 + $0xa8] sm:$0xff] }
  0x16   : > { %1608 = vmatpush.bf16.msra.mxu2 %v1598_v2  ;;  %1609 = vmatpush.bf16.msra.mxu3 %v1598_v2  ;;  %v1588_v23 = vld [vmem:[%s1739_s5 + $0xd8] sm:$0xff]  ;;  %v1589_v27 = vld [vmem:[%s1739_s5 + $0xe0] sm:$0xff]  ;;  %v1590_v31 = vld [vmem:[%s1739_s5 + $0xe8] sm:$0xff] }
  0x17   : > { %v1567_v32 = vld [vmem:[%s1739_s5 + $0x30] sm:$0xff]  ;;  %v1568_v36 = vld [vmem:[%s1739_s5 + $0x38] sm:$0xff] }
  0x18   : > { %v1575_v33 = vld [vmem:[%s1739_s5 + $0x70] sm:$0xff]  ;;  %v1576_v37 = vld [vmem:[%s1739_s5 + $0x78] sm:$0xff] }
  0x19   : > { %673 = vmatpush.bf16.msra.mxu0 %v1597_v3  ;;  %1610 = vmatpush.bf16.msra.mxu1 %v1597_v3  ;;  %v1583_v34 = vld [vmem:[%s1739_s5 + $0xb0] sm:$0xff]  ;;  %v1584_v38 = vld [vmem:[%s1739_s5 + $0xb8] sm:$0xff] }
  0x1a   : > { %1611 = vmatpush.bf16.msra.mxu2 %v1597_v3  ;;  %1612 = vmatpush.bf16.msra.mxu3 %v1597_v3  ;;  %v1591_v35 = vld [vmem:[%s1739_s5 + $0xf0] sm:$0xff]  ;;  %v1592_v39 = vld [vmem:[%s1739_s5 + $0xf8] sm:$0xff] }
  0x1d   : > { %674 = vmatpush.bf16.msra.mxu0 %v1596_v4  ;;  %1613 = vmatpush.bf16.msra.mxu1 %v1596_v4 }
  0x1e   : > { %1614 = vmatpush.bf16.msra.mxu2 %v1596_v4  ;;  %1615 = vmatpush.bf16.msra.mxu3 %v1596_v4 }
  0x21   : > { %675 = vmatpush.bf16.msra.mxu0 %v1595_v5  ;;  %1616 = vmatpush.bf16.msra.mxu1 %v1595_v5 }
  0x22   : > { %1617 = vmatpush.bf16.msra.mxu2 %v1595_v5  ;;  %1618 = vmatpush.bf16.msra.mxu3 %v1595_v5 }
  0x25   : > { %676 = vmatpush.bf16.msra.mxu0 %v1594_v6  ;;  %1619 = vmatpush.bf16.msra.mxu1 %v1594_v6 }
  0x26   : > { %1620 = vmatpush.bf16.msra.mxu2 %v1594_v6  ;;  %1621 = vmatpush.bf16.msra.mxu3 %v1594_v6 }
  0x29   : > { %677 = vmatpush.bf16.msra.mxu0 %v1593_v7  ;;  %1622 = vmatpush.bf16.msra.mxu1 %v1593_v7 }
  0x2a   : > { %1623 = vmatpush.bf16.msra.mxu2 %v1593_v7  ;;  %1624 = vmatpush.bf16.msra.mxu3 %v1593_v7 }
  0x2c   : > { %678 = vmatmul.bf16.vlgmr.msra.gmra.mxu0 %v1561_v8  ;;  %718 = vmatmul.bf16.vlgmr.msra.gmra.mxu1 %v1569_v9 }
  0x2d   : > { %758 = vmatmul.bf16.vlgmr.msra.gmra.mxu2 %v1577_v10  ;;  %798 = vmatmul.bf16.vlgmr.msra.gmra.mxu3 %v1585_v11 }
  0x3c   : > { %683 = vmatmul.bf16.gmra.mxu0 %v1562_v12  ;;  %723 = vmatmul.bf16.gmra.mxu1 %v1570_v13 }
  0x3d   : > { %763 = vmatmul.bf16.gmra.mxu2 %v1578_v14  ;;  %803 = vmatmul.bf16.gmra.mxu3 %v1586_v15 }
  0x4c   : > { %688 = vmatmul.bf16.gmra.mxu0 %v1563_v16  ;;  %728 = vmatmul.bf16.gmra.mxu1 %v1571_v17 }
  0x4d   : > { %768 = vmatmul.bf16.gmra.mxu2 %v1579_v18  ;;  %808 = vmatmul.bf16.gmra.mxu3 %v1587_v19 }
  0x5c   : > { %693 = vmatmul.bf16.gmra.mxu0 %v1564_v20  ;;  %733 = vmatmul.bf16.gmra.mxu1 %v1572_v21 }
  0x5d   : > { %773 = vmatmul.bf16.gmra.mxu2 %v1580_v22  ;;  %813 = vmatmul.bf16.gmra.mxu3 %v1588_v23 }
  0x6c   : > { %698 = vmatmul.bf16.gmra.mxu0 %v1565_v24  ;;  %738 = vmatmul.bf16.gmra.mxu1 %v1573_v25 }
  0x6d   : > { %778 = vmatmul.bf16.gmra.mxu2 %v1581_v26  ;;  %818 = vmatmul.bf16.gmra.mxu3 %v1589_v27 }
  0x7c   : > { %703 = vmatmul.bf16.gmra.mxu0 %v1566_v28  ;;  %743 = vmatmul.bf16.gmra.mxu1 %v1574_v29 }
  0x7d   : > { %783 = vmatmul.bf16.gmra.mxu2 %v1582_v30  ;;  %823 = vmatmul.bf16.gmra.mxu3 %v1590_v31 }
  0x8c   : > { %708 = vmatmul.bf16.gmra.mxu0 %v1567_v32  ;;  %748 = vmatmul.bf16.gmra.mxu1 %v1575_v33 }
  0x8d   : > { %788 = vmatmul.bf16.gmra.mxu2 %v1583_v34  ;;  %828 = vmatmul.bf16.gmra.mxu3 %v1591_v35 }
  0x9c   : > { %713 = vmatmul.bf16.gmra.mxu0 %v1568_v36  ;;  %753 = vmatmul.bf16.gmra.mxu1 %v1576_v37 }
  0x9d   : > { %793 = vmatmul.bf16.gmra.mxu2 %v1584_v38  ;;  %833 = vmatmul.bf16.gmra.mxu3 %v1592_v39 }
  0xa9   : > { %v679_v40 = vpop.f32.mrf.mxu0  ;;  %v719_v41 = vpop.f32.mrf.mxu1 }
  0xaa   : > { %vm1034_vm0 = vcmp.ge.f32.partialorder %v679_v40, 0.0  ;;  %v1098_v42 = vmul.f32 0.2, %v679_v40  ;;  %vm1050_vm1 = vcmp.ge.f32.partialorder %v719_v41, 0.0  ;;  %v1114_v43 = vmul.f32 0.2, %v719_v41 }
  0xac   : > { %v1162_v44 = vsel %vm1034_vm0, %v679_v40, %v1098_v42  ;;  %v1178_v45 = vsel %vm1050_vm1, %v719_v41, %v1114_v43 }
  0xad   : > { %1226 = vst [vmem:[%s1777_s9] sm:$0xff] %v1162_v44 }
  0xae   : > { %1242 = vst [vmem:[%s1777_s9 + $0x80] sm:$0xff] %v1178_v45 }
  0xb0   : > { %v759_v46 = vpop.f32.mrf.mxu2  ;;  %v799_v47 = vpop.f32.mrf.mxu3 }
  0xb1   : > { %vm1066_vm2 = vcmp.ge.f32.partialorder %v759_v46, 0.0  ;;  %v1130_v48 = vmul.f32 0.2, %v759_v46  ;;  %vm1082_vm3 = vcmp.ge.f32.partialorder %v799_v47, 0.0  ;;  %v1146_v49 = vmul.f32 0.2, %v799_v47  ;;  %v681_v50 = vpop.f32.mrf.mxu0  ;;  %v721_v51 = vpop.f32.mrf.mxu1 }
  0xb2   : > { %vm1035_vm4 = vcmp.ge.f32.partialorder %v681_v50, 0.0  ;;  %v1099_v52 = vmul.f32 0.2, %v681_v50  ;;  %vm1051_vm5 = vcmp.ge.f32.partialorder %v721_v51, 0.0  ;;  %v1115_v53 = vmul.f32 0.2, %v721_v51 }
  0xb3   : > { %v1194_v54 = vsel %vm1066_vm2, %v759_v46, %v1130_v48  ;;  %v1210_v55 = vsel %vm1082_vm3, %v799_v47, %v1146_v49 }
  0xb4   : > { %1258 = vst [vmem:[%s1777_s9 + $0x100] sm:$0xff] %v1194_v54  ;;  %v1163_v56 = vsel %vm1035_vm4, %v681_v50, %v1099_v52  ;;  %v1179_v57 = vsel %vm1051_vm5, %v721_v51, %v1115_v53 }
  0xb5   : > { %1274 = vst [vmem:[%s1777_s9 + $0x180] sm:$0xff] %v1210_v55 }
  0xb6   : > { %1227 = vst [vmem:[%s1777_s9 + $0x8] sm:$0xff] %v1163_v56 }
  0xb7   : > { %1243 = vst [vmem:[%s1777_s9 + $0x88] sm:$0xff] %v1179_v57 }
  0xb8   : > { %v761_v58 = vpop.f32.mrf.mxu2  ;;  %v801_v59 = vpop.f32.mrf.mxu3 }
  0xb9   : > { %vm1067_vm6 = vcmp.ge.f32.partialorder %v761_v58, 0.0  ;;  %v1131_v60 = vmul.f32 0.2, %v761_v58  ;;  %vm1083_vm7 = vcmp.ge.f32.partialorder %v801_v59, 0.0  ;;  %v1147_v61 = vmul.f32 0.2, %v801_v59  ;;  %v684_v62 = vpop.f32.mrf.mxu0  ;;  %v724_v63 = vpop.f32.mrf.mxu1 }
  0xba   : > { %vm1036_vm8 = vcmp.ge.f32.partialorder %v684_v62, 0.0  ;;  %v1100_v0 = vmul.f32 0.2, %v684_v62  ;;  %vm1052_vm9 = vcmp.ge.f32.partialorder %v724_v63, 0.0  ;;  %v1116_v1 = vmul.f32 0.2, %v724_v63 }
  0xbb   : > { %v1195_v2 = vsel %vm1067_vm6, %v761_v58, %v1131_v60  ;;  %v1211_v3 = vsel %vm1083_vm7, %v801_v59, %v1147_v61 }
  0xbc   : > { %1259 = vst [vmem:[%s1777_s9 + $0x108] sm:$0xff] %v1195_v2  ;;  %v1164_v4 = vsel %vm1036_vm8, %v684_v62, %v1100_v0  ;;  %v1180_v5 = vsel %vm1052_vm9, %v724_v63, %v1116_v1 }
  0xbd   : > { %1275 = vst [vmem:[%s1777_s9 + $0x188] sm:$0xff] %v1211_v3 }
  0xbe   : > { %1228 = vst [vmem:[%s1777_s9 + $0x10] sm:$0xff] %v1164_v4 }
  0xbf   : > { %1244 = vst [vmem:[%s1777_s9 + $0x90] sm:$0xff] %v1180_v5 }
  0xc0   : > { %v764_v6 = vpop.f32.mrf.mxu2  ;;  %v804_v7 = vpop.f32.mrf.mxu3 }
  0xc1   : > { %vm1068_vm10 = vcmp.ge.f32.partialorder %v764_v6, 0.0  ;;  %v1132_v8 = vmul.f32 0.2, %v764_v6  ;;  %vm1084_vm11 = vcmp.ge.f32.partialorder %v804_v7, 0.0  ;;  %v1148_v9 = vmul.f32 0.2, %v804_v7  ;;  %v686_v10 = vpop.f32.mrf.mxu0  ;;  %v726_v11 = vpop.f32.mrf.mxu1 }
  0xc2   : > { %vm1037_vm12 = vcmp.ge.f32.partialorder %v686_v10, 0.0  ;;  %v1101_v12 = vmul.f32 0.2, %v686_v10  ;;  %vm1053_vm13 = vcmp.ge.f32.partialorder %v726_v11, 0.0  ;;  %v1117_v13 = vmul.f32 0.2, %v726_v11 }
  0xc3   : > { %v1196_v14 = vsel %vm1068_vm10, %v764_v6, %v1132_v8  ;;  %v1212_v15 = vsel %vm1084_vm11, %v804_v7, %v1148_v9 }
  0xc4   : > { %1260 = vst [vmem:[%s1777_s9 + $0x110] sm:$0xff] %v1196_v14  ;;  %v1165_v16 = vsel %vm1037_vm12, %v686_v10, %v1101_v12  ;;  %v1181_v17 = vsel %vm1053_vm13, %v726_v11, %v1117_v13 }
  0xc5   : > { %1276 = vst [vmem:[%s1777_s9 + $0x190] sm:$0xff] %v1212_v15 }
  0xc6   : > { %1229 = vst [vmem:[%s1777_s9 + $0x18] sm:$0xff] %v1165_v16 }
  0xc7   : > { %1245 = vst [vmem:[%s1777_s9 + $0x98] sm:$0xff] %v1181_v17 }
  0xc8   : > { %v766_v18 = vpop.f32.mrf.mxu2  ;;  %v806_v19 = vpop.f32.mrf.mxu3 }
  0xc9   : > { %vm1069_vm14 = vcmp.ge.f32.partialorder %v766_v18, 0.0  ;;  %v1133_v20 = vmul.f32 0.2, %v766_v18  ;;  %vm1085_vm15 = vcmp.ge.f32.partialorder %v806_v19, 0.0  ;;  %v1149_v21 = vmul.f32 0.2, %v806_v19  ;;  %v689_v22 = vpop.f32.mrf.mxu0  ;;  %v729_v23 = vpop.f32.mrf.mxu1 }
  0xca   : > { %vm1038_vm0 = vcmp.ge.f32.partialorder %v689_v22, 0.0  ;;  %v1102_v24 = vmul.f32 0.2, %v689_v22  ;;  %vm1054_vm1 = vcmp.ge.f32.partialorder %v729_v23, 0.0  ;;  %v1118_v25 = vmul.f32 0.2, %v729_v23 }
  0xcb   : > { %v1197_v26 = vsel %vm1069_vm14, %v766_v18, %v1133_v20  ;;  %v1213_v27 = vsel %vm1085_vm15, %v806_v19, %v1149_v21 }
  0xcc   : > { %1261 = vst [vmem:[%s1777_s9 + $0x118] sm:$0xff] %v1197_v26  ;;  %v1166_v28 = vsel %vm1038_vm0, %v689_v22, %v1102_v24  ;;  %v1182_v29 = vsel %vm1054_vm1, %v729_v23, %v1118_v25 }
  0xcd   : > { %1277 = vst [vmem:[%s1777_s9 + $0x198] sm:$0xff] %v1213_v27 }
  0xce   : > { %1230 = vst [vmem:[%s1777_s9 + $0x20] sm:$0xff] %v1166_v28 }
  0xcf   : > { %1246 = vst [vmem:[%s1777_s9 + $0xa0] sm:$0xff] %v1182_v29 }
  0xd0   : > { %v769_v30 = vpop.f32.mrf.mxu2  ;;  %v809_v31 = vpop.f32.mrf.mxu3 }
  0xd1   : > { %vm1070_vm2 = vcmp.ge.f32.partialorder %v769_v30, 0.0  ;;  %v1134_v32 = vmul.f32 0.2, %v769_v30  ;;  %vm1086_vm3 = vcmp.ge.f32.partialorder %v809_v31, 0.0  ;;  %v1150_v33 = vmul.f32 0.2, %v809_v31  ;;  %v691_v34 = vpop.f32.mrf.mxu0  ;;  %v731_v35 = vpop.f32.mrf.mxu1 }
  0xd2   : > { %vm1039_vm4 = vcmp.ge.f32.partialorder %v691_v34, 0.0  ;;  %v1103_v36 = vmul.f32 0.2, %v691_v34  ;;  %vm1055_vm5 = vcmp.ge.f32.partialorder %v731_v35, 0.0  ;;  %v1119_v37 = vmul.f32 0.2, %v731_v35 }
  0xd3   : > { %v1198_v38 = vsel %vm1070_vm2, %v769_v30, %v1134_v32  ;;  %v1214_v39 = vsel %vm1086_vm3, %v809_v31, %v1150_v33 }
  0xd4   : > { %1262 = vst [vmem:[%s1777_s9 + $0x120] sm:$0xff] %v1198_v38  ;;  %v1167_v40 = vsel %vm1039_vm4, %v691_v34, %v1103_v36  ;;  %v1183_v41 = vsel %vm1055_vm5, %v731_v35, %v1119_v37 }
  0xd5   : > { %1278 = vst [vmem:[%s1777_s9 + $0x1a0] sm:$0xff] %v1214_v39 }
  0xd6   : > { %1231 = vst [vmem:[%s1777_s9 + $0x28] sm:$0xff] %v1167_v40 }
  0xd7   : > { %1247 = vst [vmem:[%s1777_s9 + $0xa8] sm:$0xff] %v1183_v41 }
  0xd8   : > { %v771_v42 = vpop.f32.mrf.mxu2  ;;  %v811_v43 = vpop.f32.mrf.mxu3 }
  0xd9   : > { %vm1071_vm6 = vcmp.ge.f32.partialorder %v771_v42, 0.0  ;;  %v1135_v44 = vmul.f32 0.2, %v771_v42  ;;  %vm1087_vm7 = vcmp.ge.f32.partialorder %v811_v43, 0.0  ;;  %v1151_v45 = vmul.f32 0.2, %v811_v43  ;;  %v694_v46 = vpop.f32.mrf.mxu0  ;;  %v734_v47 = vpop.f32.mrf.mxu1 }
  0xda   : > { %vm1040_vm8 = vcmp.ge.f32.partialorder %v694_v46, 0.0  ;;  %v1104_v48 = vmul.f32 0.2, %v694_v46  ;;  %vm1056_vm9 = vcmp.ge.f32.partialorder %v734_v47, 0.0  ;;  %v1120_v49 = vmul.f32 0.2, %v734_v47 }
  0xdb   : > { %v1199_v50 = vsel %vm1071_vm6, %v771_v42, %v1135_v44  ;;  %v1215_v51 = vsel %vm1087_vm7, %v811_v43, %v1151_v45 }
  0xdc   : > { %1263 = vst [vmem:[%s1777_s9 + $0x128] sm:$0xff] %v1199_v50  ;;  %v1168_v52 = vsel %vm1040_vm8, %v694_v46, %v1104_v48  ;;  %v1184_v53 = vsel %vm1056_vm9, %v734_v47, %v1120_v49 }
  0xdd   : > { %1279 = vst [vmem:[%s1777_s9 + $0x1a8] sm:$0xff] %v1215_v51 }
  0xde   : > { %1232 = vst [vmem:[%s1777_s9 + $0x30] sm:$0xff] %v1168_v52 }
  0xdf   : > { %1248 = vst [vmem:[%s1777_s9 + $0xb0] sm:$0xff] %v1184_v53 }
  0xe0   : > { %v774_v54 = vpop.f32.mrf.mxu2  ;;  %v814_v55 = vpop.f32.mrf.mxu3 }
  0xe1   : > { %vm1072_vm10 = vcmp.ge.f32.partialorder %v774_v54, 0.0  ;;  %v1136_v56 = vmul.f32 0.2, %v774_v54  ;;  %vm1088_vm11 = vcmp.ge.f32.partialorder %v814_v55, 0.0  ;;  %v1152_v57 = vmul.f32 0.2, %v814_v55  ;;  %v696_v58 = vpop.f32.mrf.mxu0  ;;  %v736_v59 = vpop.f32.mrf.mxu1 }
  0xe2   : > { %vm1041_vm12 = vcmp.ge.f32.partialorder %v696_v58, 0.0  ;;  %v1105_v60 = vmul.f32 0.2, %v696_v58  ;;  %vm1057_vm13 = vcmp.ge.f32.partialorder %v736_v59, 0.0  ;;  %v1121_v61 = vmul.f32 0.2, %v736_v59 }
  0xe3   : > { %v1200_v62 = vsel %vm1072_vm10, %v774_v54, %v1136_v56  ;;  %v1216_v63 = vsel %vm1088_vm11, %v814_v55, %v1152_v57 }
  0xe4   : > { %1264 = vst [vmem:[%s1777_s9 + $0x130] sm:$0xff] %v1200_v62  ;;  %v1169_v0 = vsel %vm1041_vm12, %v696_v58, %v1105_v60  ;;  %v1185_v1 = vsel %vm1057_vm13, %v736_v59, %v1121_v61 }
  0xe5   : > { %1280 = vst [vmem:[%s1777_s9 + $0x1b0] sm:$0xff] %v1216_v63 }
  0xe6   : > { %1233 = vst [vmem:[%s1777_s9 + $0x38] sm:$0xff] %v1169_v0 }
  0xe7   : > { %1249 = vst [vmem:[%s1777_s9 + $0xb8] sm:$0xff] %v1185_v1 }
  0xe8   : > { %v776_v2 = vpop.f32.mrf.mxu2  ;;  %v816_v3 = vpop.f32.mrf.mxu3 }
  0xe9   : > { %vm1073_vm14 = vcmp.ge.f32.partialorder %v776_v2, 0.0  ;;  %v1137_v4 = vmul.f32 0.2, %v776_v2  ;;  %vm1089_vm15 = vcmp.ge.f32.partialorder %v816_v3, 0.0  ;;  %v1153_v5 = vmul.f32 0.2, %v816_v3  ;;  %v699_v6 = vpop.f32.mrf.mxu0  ;;  %v739_v7 = vpop.f32.mrf.mxu1 }
  0xea   : > { %vm1042_vm0 = vcmp.ge.f32.partialorder %v699_v6, 0.0  ;;  %v1106_v8 = vmul.f32 0.2, %v699_v6  ;;  %vm1058_vm1 = vcmp.ge.f32.partialorder %v739_v7, 0.0  ;;  %v1122_v9 = vmul.f32 0.2, %v739_v7 }
  0xeb   : > { %v1201_v10 = vsel %vm1073_vm14, %v776_v2, %v1137_v4  ;;  %v1217_v11 = vsel %vm1089_vm15, %v816_v3, %v1153_v5 }
  0xec   : > { %1265 = vst [vmem:[%s1777_s9 + $0x138] sm:$0xff] %v1201_v10  ;;  %v1170_v12 = vsel %vm1042_vm0, %v699_v6, %v1106_v8  ;;  %v1186_v13 = vsel %vm1058_vm1, %v739_v7, %v1122_v9 }
  0xed   : > { %1281 = vst [vmem:[%s1777_s9 + $0x1b8] sm:$0xff] %v1217_v11 }
  0xee   : > { %1234 = vst [vmem:[%s1777_s9 + $0x40] sm:$0xff] %v1170_v12 }
  0xef   : > { %1250 = vst [vmem:[%s1777_s9 + $0xc0] sm:$0xff] %v1186_v13 }
  0xf0   : > { %v779_v14 = vpop.f32.mrf.mxu2  ;;  %v819_v15 = vpop.f32.mrf.mxu3 }
  0xf1   : > { %vm1074_vm2 = vcmp.ge.f32.partialorder %v779_v14, 0.0  ;;  %v1138_v16 = vmul.f32 0.2, %v779_v14  ;;  %vm1090_vm3 = vcmp.ge.f32.partialorder %v819_v15, 0.0  ;;  %v1154_v17 = vmul.f32 0.2, %v819_v15  ;;  %v701_v18 = vpop.f32.mrf.mxu0  ;;  %v741_v19 = vpop.f32.mrf.mxu1 }
  0xf2   : > { %vm1043_vm4 = vcmp.ge.f32.partialorder %v701_v18, 0.0  ;;  %v1107_v20 = vmul.f32 0.2, %v701_v18  ;;  %vm1059_vm5 = vcmp.ge.f32.partialorder %v741_v19, 0.0  ;;  %v1123_v21 = vmul.f32 0.2, %v741_v19 }
  0xf3   : > { %v1202_v22 = vsel %vm1074_vm2, %v779_v14, %v1138_v16  ;;  %v1218_v23 = vsel %vm1090_vm3, %v819_v15, %v1154_v17 }
  0xf4   : > { %1266 = vst [vmem:[%s1777_s9 + $0x140] sm:$0xff] %v1202_v22  ;;  %v1171_v24 = vsel %vm1043_vm4, %v701_v18, %v1107_v20  ;;  %v1187_v25 = vsel %vm1059_vm5, %v741_v19, %v1123_v21 }
  0xf5   : > { %1282 = vst [vmem:[%s1777_s9 + $0x1c0] sm:$0xff] %v1218_v23 }
  0xf6   : > { %1235 = vst [vmem:[%s1777_s9 + $0x48] sm:$0xff] %v1171_v24 }
  0xf7   : > { %1251 = vst [vmem:[%s1777_s9 + $0xc8] sm:$0xff] %v1187_v25 }
  0xf8   : > { %v781_v26 = vpop.f32.mrf.mxu2  ;;  %v821_v27 = vpop.f32.mrf.mxu3 }
  0xf9   : > { %vm1075_vm6 = vcmp.ge.f32.partialorder %v781_v26, 0.0  ;;  %v1139_v28 = vmul.f32 0.2, %v781_v26  ;;  %vm1091_vm7 = vcmp.ge.f32.partialorder %v821_v27, 0.0  ;;  %v1155_v29 = vmul.f32 0.2, %v821_v27  ;;  %v704_v30 = vpop.f32.mrf.mxu0  ;;  %v744_v31 = vpop.f32.mrf.mxu1 }
  0xfa   : > { %vm1044_vm8 = vcmp.ge.f32.partialorder %v704_v30, 0.0  ;;  %v1108_v32 = vmul.f32 0.2, %v704_v30  ;;  %vm1060_vm9 = vcmp.ge.f32.partialorder %v744_v31, 0.0  ;;  %v1124_v33 = vmul.f32 0.2, %v744_v31 }
  0xfb   : > { %v1203_v34 = vsel %vm1075_vm6, %v781_v26, %v1139_v28  ;;  %v1219_v35 = vsel %vm1091_vm7, %v821_v27, %v1155_v29 }
  0xfc   : > { %1267 = vst [vmem:[%s1777_s9 + $0x148] sm:$0xff] %v1203_v34  ;;  %v1172_v36 = vsel %vm1044_vm8, %v704_v30, %v1108_v32  ;;  %v1188_v37 = vsel %vm1060_vm9, %v744_v31, %v1124_v33 }
  0xfd   : > { %1283 = vst [vmem:[%s1777_s9 + $0x1c8] sm:$0xff] %v1219_v35 }
  0xfe   : > { %1236 = vst [vmem:[%s1777_s9 + $0x50] sm:$0xff] %v1172_v36 }
  0xff   : > { %1252 = vst [vmem:[%s1777_s9 + $0xd0] sm:$0xff] %v1188_v37 }
 0x100   : > { %v784_v38 = vpop.f32.mrf.mxu2  ;;  %v824_v39 = vpop.f32.mrf.mxu3 }
 0x101   : > { %vm1076_vm10 = vcmp.ge.f32.partialorder %v784_v38, 0.0  ;;  %v1140_v40 = vmul.f32 0.2, %v784_v38  ;;  %vm1092_vm11 = vcmp.ge.f32.partialorder %v824_v39, 0.0  ;;  %v1156_v41 = vmul.f32 0.2, %v824_v39  ;;  %v706_v42 = vpop.f32.mrf.mxu0  ;;  %v746_v43 = vpop.f32.mrf.mxu1 }
 0x102   : > { %vm1045_vm12 = vcmp.ge.f32.partialorder %v706_v42, 0.0  ;;  %v1109_v44 = vmul.f32 0.2, %v706_v42  ;;  %vm1061_vm13 = vcmp.ge.f32.partialorder %v746_v43, 0.0  ;;  %v1125_v45 = vmul.f32 0.2, %v746_v43 }
 0x103   : > { %v1204_v46 = vsel %vm1076_vm10, %v784_v38, %v1140_v40  ;;  %v1220_v47 = vsel %vm1092_vm11, %v824_v39, %v1156_v41 }
 0x104   : > { %1268 = vst [vmem:[%s1777_s9 + $0x150] sm:$0xff] %v1204_v46  ;;  %v1173_v48 = vsel %vm1045_vm12, %v706_v42, %v1109_v44  ;;  %v1189_v49 = vsel %vm1061_vm13, %v746_v43, %v1125_v45 }
 0x105   : > { %1284 = vst [vmem:[%s1777_s9 + $0x1d0] sm:$0xff] %v1220_v47 }
 0x106   : > { %1237 = vst [vmem:[%s1777_s9 + $0x58] sm:$0xff] %v1173_v48 }
 0x107   : > { %1253 = vst [vmem:[%s1777_s9 + $0xd8] sm:$0xff] %v1189_v49 }
 0x108   : > { %v786_v50 = vpop.f32.mrf.mxu2  ;;  %v826_v51 = vpop.f32.mrf.mxu3 }
 0x109   : > { %vm1077_vm14 = vcmp.ge.f32.partialorder %v786_v50, 0.0  ;;  %v1141_v52 = vmul.f32 0.2, %v786_v50  ;;  %vm1093_vm15 = vcmp.ge.f32.partialorder %v826_v51, 0.0  ;;  %v1157_v53 = vmul.f32 0.2, %v826_v51  ;;  %v709_v54 = vpop.f32.mrf.mxu0  ;;  %v749_v55 = vpop.f32.mrf.mxu1 }
 0x10a   : > { %vm1046_vm0 = vcmp.ge.f32.partialorder %v709_v54, 0.0  ;;  %v1110_v56 = vmul.f32 0.2, %v709_v54  ;;  %vm1062_vm1 = vcmp.ge.f32.partialorder %v749_v55, 0.0  ;;  %v1126_v57 = vmul.f32 0.2, %v749_v55 }
 0x10b   : > { %v1205_v58 = vsel %vm1077_vm14, %v786_v50, %v1141_v52  ;;  %v1221_v59 = vsel %vm1093_vm15, %v826_v51, %v1157_v53 }
 0x10c   : > { %1269 = vst [vmem:[%s1777_s9 + $0x158] sm:$0xff] %v1205_v58  ;;  %v1174_v60 = vsel %vm1046_vm0, %v709_v54, %v1110_v56  ;;  %v1190_v61 = vsel %vm1062_vm1, %v749_v55, %v1126_v57 }
 0x10d   : > { %1285 = vst [vmem:[%s1777_s9 + $0x1d8] sm:$0xff] %v1221_v59 }
 0x10e   : > { %1238 = vst [vmem:[%s1777_s9 + $0x60] sm:$0xff] %v1174_v60 }
 0x10f   : > { %1254 = vst [vmem:[%s1777_s9 + $0xe0] sm:$0xff] %v1190_v61 }
 0x110   : > { %v789_v62 = vpop.f32.mrf.mxu2  ;;  %v829_v63 = vpop.f32.mrf.mxu3 }
 0x111   : > { %vm1078_vm2 = vcmp.ge.f32.partialorder %v789_v62, 0.0  ;;  %v1142_v0 = vmul.f32 0.2, %v789_v62  ;;  %vm1094_vm3 = vcmp.ge.f32.partialorder %v829_v63, 0.0  ;;  %v1158_v1 = vmul.f32 0.2, %v829_v63  ;;  %v711_v2 = vpop.f32.mrf.mxu0  ;;  %v751_v3 = vpop.f32.mrf.mxu1 }
 0x112   : > { %vm1047_vm4 = vcmp.ge.f32.partialorder %v711_v2, 0.0  ;;  %v1111_v4 = vmul.f32 0.2, %v711_v2  ;;  %vm1063_vm5 = vcmp.ge.f32.partialorder %v751_v3, 0.0  ;;  %v1127_v5 = vmul.f32 0.2, %v751_v3 }
 0x113   : > { %v1206_v6 = vsel %vm1078_vm2, %v789_v62, %v1142_v0  ;;  %v1222_v7 = vsel %vm1094_vm3, %v829_v63, %v1158_v1 }
 0x114   : > { %1270 = vst [vmem:[%s1777_s9 + $0x160] sm:$0xff] %v1206_v6  ;;  %v1175_v8 = vsel %vm1047_vm4, %v711_v2, %v1111_v4  ;;  %v1191_v9 = vsel %vm1063_vm5, %v751_v3, %v1127_v5 }
 0x115   : > { %1286 = vst [vmem:[%s1777_s9 + $0x1e0] sm:$0xff] %v1222_v7 }
 0x116   : > { %1239 = vst [vmem:[%s1777_s9 + $0x68] sm:$0xff] %v1175_v8 }
 0x117   : > { %1255 = vst [vmem:[%s1777_s9 + $0xe8] sm:$0xff] %v1191_v9 }
 0x118   : > { %v791_v10 = vpop.f32.mrf.mxu2  ;;  %v831_v11 = vpop.f32.mrf.mxu3 }
 0x119   : > { %vm1079_vm6 = vcmp.ge.f32.partialorder %v791_v10, 0.0  ;;  %v1143_v12 = vmul.f32 0.2, %v791_v10  ;;  %vm1095_vm7 = vcmp.ge.f32.partialorder %v831_v11, 0.0  ;;  %v1159_v13 = vmul.f32 0.2, %v831_v11  ;;  %v714_v14 = vpop.f32.mrf.mxu0  ;;  %v754_v15 = vpop.f32.mrf.mxu1 }
 0x11a   : > { %vm1048_vm8 = vcmp.ge.f32.partialorder %v714_v14, 0.0  ;;  %v1112_v16 = vmul.f32 0.2, %v714_v14  ;;  %vm1064_vm9 = vcmp.ge.f32.partialorder %v754_v15, 0.0  ;;  %v1128_v17 = vmul.f32 0.2, %v754_v15 }
 0x11b   : > { %v1207_v18 = vsel %vm1079_vm6, %v791_v10, %v1143_v12  ;;  %v1223_v19 = vsel %vm1095_vm7, %v831_v11, %v1159_v13 }
 0x11c   : > { %1271 = vst [vmem:[%s1777_s9 + $0x168] sm:$0xff] %v1207_v18  ;;  %v1176_v20 = vsel %vm1048_vm8, %v714_v14, %v1112_v16  ;;  %v1192_v21 = vsel %vm1064_vm9, %v754_v15, %v1128_v17 }
 0x11d   : > { %1287 = vst [vmem:[%s1777_s9 + $0x1e8] sm:$0xff] %v1223_v19 }
 0x11e   : > { %1240 = vst [vmem:[%s1777_s9 + $0x70] sm:$0xff] %v1176_v20 }
 0x11f   : > { %1256 = vst [vmem:[%s1777_s9 + $0xf0] sm:$0xff] %v1192_v21 }
 0x120   : > { %v794_v22 = vpop.f32.mrf.mxu2  ;;  %v834_v23 = vpop.f32.mrf.mxu3 }
 0x121   : > { %vm1080_vm10 = vcmp.ge.f32.partialorder %v794_v22, 0.0  ;;  %v1144_v24 = vmul.f32 0.2, %v794_v22  ;;  %vm1096_vm11 = vcmp.ge.f32.partialorder %v834_v23, 0.0  ;;  %v1160_v25 = vmul.f32 0.2, %v834_v23  ;;  %v716_v26 = vpop.f32.mrf.mxu0  ;;  %v756_v27 = vpop.f32.mrf.mxu1 }
 0x122   : > { %vm1049_vm12 = vcmp.ge.f32.partialorder %v716_v26, 0.0  ;;  %v1113_v28 = vmul.f32 0.2, %v716_v26  ;;  %vm1065_vm13 = vcmp.ge.f32.partialorder %v756_v27, 0.0  ;;  %v1129_v29 = vmul.f32 0.2, %v756_v27 }
 0x123   : > { %v1208_v30 = vsel %vm1080_vm10, %v794_v22, %v1144_v24  ;;  %v1224_v31 = vsel %vm1096_vm11, %v834_v23, %v1160_v25 }
 0x124   : > { %1272 = vst [vmem:[%s1777_s9 + $0x170] sm:$0xff] %v1208_v30  ;;  %v1177_v32 = vsel %vm1049_vm12, %v716_v26, %v1113_v28  ;;  %v1193_v33 = vsel %vm1065_vm13, %v756_v27, %v1129_v29 }
 0x125   : > { %1288 = vst [vmem:[%s1777_s9 + $0x1f0] sm:$0xff] %v1224_v31 }
 0x126   : > { %1241 = vst [vmem:[%s1777_s9 + $0x78] sm:$0xff] %v1177_v32 }
 0x127   : > { %1257 = vst [vmem:[%s1777_s9 + $0xf8] sm:$0xff] %v1193_v33 }
 0x128   : > { %v796_v34 = vpop.f32.mrf.mxu2  ;;  %v836_v35 = vpop.f32.mrf.mxu3 }
 0x129   : > { %vm1081_vm14 = vcmp.ge.f32.partialorder %v796_v34, 0.0  ;;  %v1145_v36 = vmul.f32 0.2, %v796_v34  ;;  %vm1097_vm15 = vcmp.ge.f32.partialorder %v836_v35, 0.0  ;;  %v1161_v37 = vmul.f32 0.2, %v836_v35 }
 0x12b   : > { %v1209_v38 = vsel %vm1081_vm14, %v796_v34, %v1145_v36  ;;  %v1225_v39 = vsel %vm1097_vm15, %v836_v35, %v1161_v37 }
 0x12c   : > { %1273 = vst [vmem:[%s1777_s9 + $0x178] sm:$0xff] %v1209_v38 }
 0x12d   : > { %1289 = vst [vmem:[%s1777_s9 + $0x1f8] sm:$0xff] %v1225_v39 }
 0x12e PF: > { %s12_s11 = sadd.s32 1, %s1671_s11   ;;  %s1855_s9 = smov %s1667_s10 }
 0x12f   : > { %p9_p5 = scmp.ge.s32.totalorder %s12_s11, 6   ;;  %s1856_s10 = smov %s1858_s12 }
 0x131   :  { %11 = sbr.rel (!%p9_p5) target bundleno = 2 (0x2), region = 69 }

// kernel: image_discriminator_forward.8
= control target key start
LH: loop header
LB: loop body
LE: loop exit
PB: predicated region body
PF: predicated region fallthrough
CT: control target
= control target key end

     0   :  { %s2745_s1 = inlined_call_operand.vmem [shape: bf16[256,128], index: 1, kind: input, shape index: {}]   ;;  %s2746_s0 = inlined_call_operand.vmem [shape: bf16[512,256], index: 0, kind: input, shape index: {}]   ;;  %s2747_s2 = inlined_call_operand.vmem [shape: f32[512,128], index: 2, kind: output, shape index: {0}]   ;;  %s2748_s3 = inlined_call_operand.vmem [shape: f32[8,128], index: 3, kind: output, shape index: {1}]  }
   0x1   :  { %v1874_v0 = vld [vmem:[%s2745_s1 + $0x38] sm:$0xff]  ;;  %v1873_v2 = vld [vmem:[%s2745_s1 + $0x30] sm:$0xff]  ;;  %v1872_v4 = vld [vmem:[%s2745_s1 + $0x28] sm:$0xff] }
   0x2   :  { %v1882_v1 = vld [vmem:[%s2745_s1 + $0x78] sm:$0xff]  ;;  %663 = vmatpush.bf16.msra.mxu0 %v1874_v0  ;;  %v1881_v3 = vld [vmem:[%s2745_s1 + $0x70] sm:$0xff]  ;;  %1883 = vmatpush.bf16.msra.mxu2 %v1874_v0  ;;  %v1880_v5 = vld [vmem:[%s2745_s1 + $0x68] sm:$0xff] }
   0x3   :  { %832 = vmatpush.bf16.msra.mxu1 %v1882_v1  ;;  %1891 = vmatpush.bf16.msra.mxu3 %v1882_v1  ;;  %v1871_v6 = vld [vmem:[%s2745_s1 + $0x20] sm:$0xff]  ;;  %v1870_v8 = vld [vmem:[%s2745_s1 + $0x18] sm:$0xff]  ;;  %v1869_v10 = vld [vmem:[%s2745_s1 + $0x10] sm:$0xff] }
   0x4   :  { %v1879_v7 = vld [vmem:[%s2745_s1 + $0x60] sm:$0xff]  ;;  %v1878_v9 = vld [vmem:[%s2745_s1 + $0x58] sm:$0xff]  ;;  %v1877_v11 = vld [vmem:[%s2745_s1 + $0x50] sm:$0xff] }
   0x5   :  { %v1868_v12 = vld [vmem:[%s2745_s1 + $0x8] sm:$0xff]  ;;  %v1867_v14 = vld [vmem:[%s2745_s1] sm:$0xff]  ;;  %v1493_v22 = vld [vmem:[%s2746_s0 + $0x10] sm:$0xf] }
   0x6   :  { %664 = vmatpush.bf16.msra.mxu0 %v1873_v2  ;;  %1884 = vmatpush.bf16.msra.mxu2 %v1873_v2  ;;  %v1876_v13 = vld [vmem:[%s2745_s1 + $0x48] sm:$0xff]  ;;  %v1875_v15 = vld [vmem:[%s2745_s1 + $0x40] sm:$0xff]  ;;  %v1806_v23 = vld [vmem:[%s2746_s0 + $0x14] sm:$0xf0] }
   0x7   :  { %833 = vmatpush.bf16.msra.mxu1 %v1881_v3  ;;  %1892 = vmatpush.bf16.msra.mxu3 %v1881_v3  ;;  %v1485_v16 = vld [vmem:[%s2746_s0] sm:$0xf]  ;;  %v1804_v17 = vld [vmem:[%s2746_s0 + $0x4] sm:$0xf0]  ;;  %v1803_v18 = vld [vmem:[%s2746_s0 + $0x4] sm:$0xf]  ;;  %v1494_v26 = vor.u32 %v1806_v23, %v1493_v22 }
   0x8   :  { %v1487_v19 = vld [vmem:[%s2746_s0 + $0x8] sm:$0xf0]  ;;  %v1486_v20 = vor.u32 %v1804_v17, %v1485_v16  ;;  %v1805_v24 = vld [vmem:[%s2746_s0 + $0x14] sm:$0xf]  ;;  %v1495_v25 = vld [vmem:[%s2746_s0 + $0x18] sm:$0xf0] }
   0x9   :  { %v1490_v21 = vor.u32 %v1803_v18, %v1487_v19  ;;  %v1498_v27 = vor.u32 %v1805_v24, %v1495_v25  ;;  %v1613_v28 = vld [vmem:[%s2746_s0 + $0x100] sm:$0xf]  ;;  %v1836_v29 = vld [vmem:[%s2746_s0 + $0x104] sm:$0xf0]  ;;  %v1835_v30 = vld [vmem:[%s2746_s0 + $0x104] sm:$0xf] }
   0xa   :  { %665 = vmatpush.bf16.msra.mxu0 %v1872_v4  ;;  %1885 = vmatpush.bf16.msra.mxu2 %v1872_v4  ;;  %v1614_v31 = vor.u32 %v1836_v29, %v1613_v28  ;;  %v1615_v32 = vld [vmem:[%s2746_s0 + $0x108] sm:$0xf0]  ;;  %v1501_v34 = vld [vmem:[%s2746_s0 + $0x20] sm:$0xf]  ;;  %v1808_v35 = vld [vmem:[%s2746_s0 + $0x24] sm:$0xf0] }
   0xb   :  { %834 = vmatpush.bf16.msra.mxu1 %v1880_v5  ;;  %1893 = vmatpush.bf16.msra.mxu3 %v1880_v5  ;;  %v1618_v33 = vor.u32 %v1835_v30, %v1615_v32  ;;  %v1807_v36 = vld [vmem:[%s2746_s0 + $0x24] sm:$0xf]  ;;  %v1503_v37 = vld [vmem:[%s2746_s0 + $0x28] sm:$0xf0]  ;;  %v1502_v38 = vor.u32 %v1808_v35, %v1501_v34  ;;  %v1621_v40 = vld [vmem:[%s2746_s0 + $0x110] sm:$0xf] }
   0xc   :  { %v1506_v39 = vor.u32 %v1807_v36, %v1503_v37  ;;  %v1838_v41 = vld [vmem:[%s2746_s0 + $0x114] sm:$0xf0]  ;;  %v1837_v42 = vld [vmem:[%s2746_s0 + $0x114] sm:$0xf]  ;;  %v1623_v44 = vld [vmem:[%s2746_s0 + $0x118] sm:$0xf0] }
   0xd   :  { %v1622_v43 = vor.u32 %v1838_v41, %v1621_v40  ;;  %v1626_v45 = vor.u32 %v1837_v42, %v1623_v44  ;;  %v1509_v46 = vld [vmem:[%s2746_s0 + $0x30] sm:$0xf]  ;;  %v1810_v47 = vld [vmem:[%s2746_s0 + $0x34] sm:$0xf0]  ;;  %v1809_v48 = vld [vmem:[%s2746_s0 + $0x34] sm:$0xf] }
   0xe   :  { %666 = vmatpush.bf16.msra.mxu0 %v1871_v6  ;;  %1886 = vmatpush.bf16.msra.mxu2 %v1871_v6  ;;  %v1511_v49 = vld [vmem:[%s2746_s0 + $0x38] sm:$0xf0]  ;;  %v1510_v50 = vor.u32 %v1810_v47, %v1509_v46  ;;  %v1629_v52 = vld [vmem:[%s2746_s0 + $0x120] sm:$0xf]  ;;  %v1840_v53 = vld [vmem:[%s2746_s0 + $0x124] sm:$0xf0] }
   0xf   :  { %835 = vmatpush.bf16.msra.mxu1 %v1879_v7  ;;  %1894 = vmatpush.bf16.msra.mxu3 %v1879_v7  ;;  %v1514_v51 = vor.u32 %v1809_v48, %v1511_v49  ;;  %v1839_v54 = vld [vmem:[%s2746_s0 + $0x124] sm:$0xf]  ;;  %v1630_v55 = vor.u32 %v1840_v53, %v1629_v52  ;;  %v1631_v56 = vld [vmem:[%s2746_s0 + $0x128] sm:$0xf0]  ;;  %v1517_v58 = vld [vmem:[%s2746_s0 + $0x40] sm:$0xf] }
  0x10   :  { %v1634_v57 = vor.u32 %v1839_v54, %v1631_v56  ;;  %v1812_v59 = vld [vmem:[%s2746_s0 + $0x44] sm:$0xf0]  ;;  %v1811_v60 = vld [vmem:[%s2746_s0 + $0x44] sm:$0xf]  ;;  %v1519_v61 = vld [vmem:[%s2746_s0 + $0x48] sm:$0xf0] }
  0x11   :  { %v1518_v62 = vor.u32 %v1812_v59, %v1517_v58  ;;  %v1522_v63 = vor.u32 %v1811_v60, %v1519_v61  ;;  %v1637_v0 = vld [vmem:[%s2746_s0 + $0x130] sm:$0xf]  ;;  %v1842_v1 = vld [vmem:[%s2746_s0 + $0x134] sm:$0xf0]  ;;  %v1841_v2 = vld [vmem:[%s2746_s0 + $0x134] sm:$0xf] }
  0x12   :  { %667 = vmatpush.bf16.msra.mxu0 %v1870_v8  ;;  %1887 = vmatpush.bf16.msra.mxu2 %v1870_v8  ;;  %v1638_v3 = vor.u32 %v1842_v1, %v1637_v0  ;;  %v1639_v4 = vld [vmem:[%s2746_s0 + $0x138] sm:$0xf0]  ;;  %v1525_v6 = vld [vmem:[%s2746_s0 + $0x50] sm:$0xf]  ;;  %v1814_v7 = vld [vmem:[%s2746_s0 + $0x54] sm:$0xf0] }
  0x13   :  { %836 = vmatpush.bf16.msra.mxu1 %v1878_v9  ;;  %1895 = vmatpush.bf16.msra.mxu3 %v1878_v9  ;;  %v1642_v5 = vor.u32 %v1841_v2, %v1639_v4  ;;  %v1813_v8 = vld [vmem:[%s2746_s0 + $0x54] sm:$0xf]  ;;  %v1527_v9 = vld [vmem:[%s2746_s0 + $0x58] sm:$0xf0]  ;;  %v1647_v16 = vld [vmem:[%s2746_s0 + $0x148] sm:$0xf0] }
  0x14   :  { %v1533_v18 = vld [vmem:[%s2746_s0 + $0x60] sm:$0xf]  ;;  %v1816_v19 = vld [vmem:[%s2746_s0 + $0x64] sm:$0xf0]  ;;  %v1653_v24 = vld [vmem:[%s2746_s0 + $0x150] sm:$0xf] }
  0x15   :  { %v1534_v22 = vor.u32 %v1816_v19, %v1533_v18  ;;  %v1846_v25 = vld [vmem:[%s2746_s0 + $0x154] sm:$0xf0]  ;;  %v1655_v28 = vld [vmem:[%s2746_s0 + $0x158] sm:$0xf0]  ;;  %v1541_v30 = vld [vmem:[%s2746_s0 + $0x70] sm:$0xf] }
  0x16   :  { %668 = vmatpush.bf16.msra.mxu0 %v1869_v10  ;;  %1888 = vmatpush.bf16.msra.mxu2 %v1869_v10  ;;  %v1526_v10 = vor.u32 %v1814_v7, %v1525_v6  ;;  %v1817_v32 = vld [vmem:[%s2746_s0 + $0x74] sm:$0xf]  ;;  %v1661_v36 = vld [vmem:[%s2746_s0 + $0x160] sm:$0xf]  ;;  %v1848_v37 = vld [vmem:[%s2746_s0 + $0x164] sm:$0xf0] }
  0x17   :  { %837 = vmatpush.bf16.msra.mxu1 %v1877_v11  ;;  %1896 = vmatpush.bf16.msra.mxu3 %v1877_v11  ;;  %v1530_v11 = vor.u32 %v1813_v8, %v1527_v9  ;;  %v1663_v40 = vld [vmem:[%s2746_s0 + $0x168] sm:$0xf0]  ;;  %v1549_v42 = vld [vmem:[%s2746_s0 + $0x80] sm:$0xf]  ;;  %v1819_v44 = vld [vmem:[%s2746_s0 + $0x84] sm:$0xf] }
  0x18   :  { %v1850_v52 = vld [vmem:[%s2746_s0 + $0x174] sm:$0xf0]  ;;  %v1849_v53 = vld [vmem:[%s2746_s0 + $0x174] sm:$0xf]  ;;  %v1559_v2 = vld [vmem:[%s2746_s0 + $0x98] sm:$0xf0] }
  0x19   :  { %v1822_v0 = vld [vmem:[%s2746_s0 + $0x94] sm:$0xf0]  ;;  %v1821_v1 = vld [vmem:[%s2746_s0 + $0x94] sm:$0xf]  ;;  %v1677_v9 = vld [vmem:[%s2746_s0 + $0x180] sm:$0xf] }
  0x1a   :  { %669 = vmatpush.bf16.msra.mxu0 %v1868_v12  ;;  %1889 = vmatpush.bf16.msra.mxu2 %v1868_v12  ;;  %v1645_v12 = vld [vmem:[%s2746_s0 + $0x140] sm:$0xf] }
  0x1b   :  { %838 = vmatpush.bf16.msra.mxu1 %v1876_v13  ;;  %1897 = vmatpush.bf16.msra.mxu3 %v1876_v13  ;;  %v1844_v13 = vld [vmem:[%s2746_s0 + $0x144] sm:$0xf0] }
  0x1e   :  { %670 = vmatpush.bf16.msra.mxu0 %v1867_v14  ;;  %1890 = vmatpush.bf16.msra.mxu2 %v1867_v14  ;;  %v1843_v14 = vld [vmem:[%s2746_s0 + $0x144] sm:$0xf] }
  0x1f   :  { %839 = vmatpush.bf16.msra.mxu1 %v1875_v15  ;;  %1898 = vmatpush.bf16.msra.mxu3 %v1875_v15  ;;  %v1646_v15 = vor.u32 %v1844_v13, %v1645_v12  ;;  %v1650_v17 = vor.u32 %v1843_v14, %v1647_v16 }
  0x21   :  { %671 = vmatmul.bf16.vlgmr.msra.gmra.mxu0 %v1486_v20  ;;  %751 = vmatmul.bf16.vlgmr.msra.gmra.mxu2 %v1614_v31  ;;  %v1815_v20 = vld [vmem:[%s2746_s0 + $0x64] sm:$0xf]  ;;  %v1818_v31 = vld [vmem:[%s2746_s0 + $0x74] sm:$0xf0] }
  0x22   :  { %840 = vmatmul.bf16.vlgmr.msra.gmra.mxu1 %v1490_v21  ;;  %920 = vmatmul.bf16.vlgmr.msra.gmra.mxu3 %v1618_v33  ;;  %v1535_v21 = vld [vmem:[%s2746_s0 + $0x68] sm:$0xf0]  ;;  %v1543_v33 = vld [vmem:[%s2746_s0 + $0x78] sm:$0xf0]  ;;  %v1542_v34 = vor.u32 %v1818_v31, %v1541_v30 }
  0x23   :  { %v1538_v23 = vor.u32 %v1815_v20, %v1535_v21  ;;  %v1546_v35 = vor.u32 %v1817_v32, %v1543_v33 }
  0x31   :  { %676 = vmatmul.bf16.gmra.mxu0 %v1494_v26  ;;  %756 = vmatmul.bf16.gmra.mxu2 %v1622_v43  ;;  %v1845_v26 = vld [vmem:[%s2746_s0 + $0x154] sm:$0xf]  ;;  %v1820_v43 = vld [vmem:[%s2746_s0 + $0x84] sm:$0xf0] }
  0x32   :  { %845 = vmatmul.bf16.gmra.mxu1 %v1498_v27  ;;  %925 = vmatmul.bf16.gmra.mxu3 %v1626_v45  ;;  %v1654_v27 = vor.u32 %v1846_v25, %v1653_v24  ;;  %v1658_v29 = vor.u32 %v1845_v26, %v1655_v28  ;;  %v1551_v45 = vld [vmem:[%s2746_s0 + $0x88] sm:$0xf0]  ;;  %v1550_v46 = vor.u32 %v1820_v43, %v1549_v42  ;;  %v1565_v25 = vld [vmem:[%s2746_s0 + $0xa0] sm:$0xf]  ;;  %v1824_v26 = vld [vmem:[%s2746_s0 + $0xa4] sm:$0xf0] }
  0x33   :  { %v1554_v47 = vor.u32 %v1819_v44, %v1551_v45  ;;  %v1567_v28 = vld [vmem:[%s2746_s0 + $0xa8] sm:$0xf0]  ;;  %v1566_v31 = vor.u32 %v1824_v26, %v1565_v25  ;;  %v1687_v45 = vld [vmem:[%s2746_s0 + $0x198] sm:$0xf0] }
  0x41   :  { %681 = vmatmul.bf16.gmra.mxu0 %v1502_v38  ;;  %761 = vmatmul.bf16.gmra.mxu2 %v1630_v55  ;;  %v1847_v38 = vld [vmem:[%s2746_s0 + $0x164] sm:$0xf]  ;;  %v1671_v55 = vld [vmem:[%s2746_s0 + $0x178] sm:$0xf0] }
  0x42   :  { %850 = vmatmul.bf16.gmra.mxu1 %v1506_v39  ;;  %930 = vmatmul.bf16.gmra.mxu3 %v1634_v57  ;;  %v1662_v39 = vor.u32 %v1848_v37, %v1661_v36  ;;  %v1666_v41 = vor.u32 %v1847_v38, %v1663_v40  ;;  %v1674_v56 = vor.u32 %v1849_v53, %v1671_v55  ;;  %v1854_v40 = vld [vmem:[%s2746_s0 + $0x194] sm:$0xf0]  ;;  %v1573_v55 = vld [vmem:[%s2746_s0 + $0xb0] sm:$0xf] }
  0x51   :  { %686 = vmatmul.bf16.gmra.mxu0 %v1510_v50  ;;  %766 = vmatmul.bf16.gmra.mxu2 %v1638_v3 }
  0x52   :  { %855 = vmatmul.bf16.gmra.mxu1 %v1514_v51  ;;  %935 = vmatmul.bf16.gmra.mxu3 %v1642_v5  ;;  %v1669_v51 = vld [vmem:[%s2746_s0 + $0x170] sm:$0xf]  ;;  %v1562_v5 = vor.u32 %v1821_v1, %v1559_v2 }
  0x53   :  { %v1670_v54 = vor.u32 %v1850_v52, %v1669_v51 }
  0x61   :  { %691 = vmatmul.bf16.gmra.mxu0 %v1518_v62  ;;  %771 = vmatmul.bf16.gmra.mxu2 %v1646_v15  ;;  %v1679_v15 = vld [vmem:[%s2746_s0 + $0x188] sm:$0xf0] }
  0x62   :  { %860 = vmatmul.bf16.gmra.mxu1 %v1522_v63  ;;  %940 = vmatmul.bf16.gmra.mxu3 %v1650_v17  ;;  %v1557_v63 = vld [vmem:[%s2746_s0 + $0x90] sm:$0xf] }
  0x63   :  { %v1558_v4 = vor.u32 %v1822_v0, %v1557_v63 }
  0x71   :  { %696 = vmatmul.bf16.gmra.mxu0 %v1526_v10  ;;  %776 = vmatmul.bf16.gmra.mxu2 %v1654_v27  ;;  %v1852_v10 = vld [vmem:[%s2746_s0 + $0x184] sm:$0xf0]  ;;  %v1823_v27 = vld [vmem:[%s2746_s0 + $0xa4] sm:$0xf] }
  0x72   :  { %865 = vmatmul.bf16.gmra.mxu1 %v1530_v11  ;;  %945 = vmatmul.bf16.gmra.mxu3 %v1658_v29  ;;  %v1851_v11 = vld [vmem:[%s2746_s0 + $0x184] sm:$0xf]  ;;  %v1678_v14 = vor.u32 %v1852_v10, %v1677_v9  ;;  %v1570_v32 = vor.u32 %v1823_v27, %v1567_v28 }
  0x73   :  { %v1682_v16 = vor.u32 %v1851_v11, %v1679_v15  ;;  %v1695_v11 = vld [vmem:[%s2746_s0 + $0x1a8] sm:$0xf0] }
  0x81   :  { %701 = vmatmul.bf16.gmra.mxu0 %v1534_v22  ;;  %781 = vmatmul.bf16.gmra.mxu2 %v1662_v39  ;;  %v1685_v39 = vld [vmem:[%s2746_s0 + $0x190] sm:$0xf] }
  0x82   :  { %870 = vmatmul.bf16.gmra.mxu1 %v1538_v23  ;;  %950 = vmatmul.bf16.gmra.mxu3 %v1666_v41  ;;  %v1853_v41 = vld [vmem:[%s2746_s0 + $0x194] sm:$0xf]  ;;  %v1686_v44 = vor.u32 %v1854_v40, %v1685_v39 }
  0x83   :  { %v1857_v39 = vld [vmem:[%s2746_s0 + $0x1b4] sm:$0xf] }
  0x91   :  { %706 = vmatmul.bf16.gmra.mxu0 %v1542_v34  ;;  %786 = vmatmul.bf16.gmra.mxu2 %v1670_v54 }
  0x92   :  { %875 = vmatmul.bf16.gmra.mxu1 %v1546_v35  ;;  %955 = vmatmul.bf16.gmra.mxu3 %v1674_v56  ;;  %v1826_v56 = vld [vmem:[%s2746_s0 + $0xb4] sm:$0xf0] }
  0x9e   :  { %v672_v48 = vpop.f32.mrf.mxu0 }
  0x9f   :  { %v841_v49 = vpop.f32.mrf.mxu1 }
  0xa0   :  { %v842_v50 = vadd.f32 %v841_v49, %v672_v48 }
  0xa1   :  { %711 = vmatmul.bf16.gmra.mxu0 %v1550_v46  ;;  %791 = vmatmul.bf16.gmra.mxu2 %v1678_v14  ;;  %v1690_v46 = vor.u32 %v1853_v41, %v1687_v45 }
  0xa2   :  { %1196 = vst [vmem:[%s2747_s2] sm:$0xff] %v842_v50  ;;  %880 = vmatmul.bf16.gmra.mxu1 %v1554_v47  ;;  %v1329_v60 = vmul.f32 %v842_v50, %v842_v50  ;;  %960 = vmatmul.bf16.gmra.mxu3 %v1682_v16 }
  0xa4   :  { %v752_v21 = vpop.f32.mrf.mxu2 }
  0xa5   :  { %v921_v22 = vpop.f32.mrf.mxu3 }
  0xa6   :  { %v674_v57 = vpop.f32.mrf.mxu0  ;;  %v2220_v30 = vadd.f32 %v921_v22, %v752_v21  ;;  %v1581_v21 = vld [vmem:[%s2746_s0 + $0xc0] sm:$0xf]  ;;  %v1828_v22 = vld [vmem:[%s2746_s0 + $0xc4] sm:$0xf0] }
  0xa7   :  { %v843_v58 = vpop.f32.mrf.mxu1  ;;  %v1582_v27 = vor.u32 %v1828_v22, %v1581_v21  ;;  %v1597_v21 = vld [vmem:[%s2746_s0 + $0xe0] sm:$0xf]  ;;  %v1832_v22 = vld [vmem:[%s2746_s0 + $0xe4] sm:$0xf0] }
  0xa8   :  { %v844_v59 = vadd.f32 %v843_v58, %v674_v57  ;;  %1228 = vst [vmem:[%s2747_s2 + $0x100] sm:$0xff] %v2220_v30  ;;  %v1825_v57 = vld [vmem:[%s2746_s0 + $0xb4] sm:$0xf]  ;;  %v1575_v58 = vld [vmem:[%s2746_s0 + $0xb8] sm:$0xf0] }
  0xaa   :  { %1197 = vst [vmem:[%s2747_s2 + $0x8] sm:$0xff] %v844_v59  ;;  %v1260_v61 = vadd.f32 %v844_v59, %v842_v50  ;;  %v1330_v62 = vmul.f32 %v844_v59, %v844_v59 }
  0xac   :  { %v1393_v3 = vadd.f32 %v1330_v62, %v1329_v60  ;;  %v754_v36 = vpop.f32.mrf.mxu2  ;;  %v1578_v62 = vor.u32 %v1825_v57, %v1575_v58 }
  0xad   :  { %v923_v37 = vpop.f32.mrf.mxu3 }
  0xae   :  { %v677_v6 = vpop.f32.mrf.mxu0  ;;  %v2226_v38 = vadd.f32 %v923_v37, %v754_v36  ;;  %v1701_v36 = vld [vmem:[%s2746_s0 + $0x1b0] sm:$0xf]  ;;  %v1858_v37 = vld [vmem:[%s2746_s0 + $0x1b4] sm:$0xf0] }
  0xaf   :  { %v846_v7 = vpop.f32.mrf.mxu1 }
  0xb0   :  { %v847_v8 = vadd.f32 %v846_v7, %v677_v6  ;;  %1229 = vst [vmem:[%s2747_s2 + $0x108] sm:$0xff] %v2226_v38  ;;  %v1856_v6 = vld [vmem:[%s2746_s0 + $0x1a4] sm:$0xf0]  ;;  %v1855_v7 = vld [vmem:[%s2746_s0 + $0x1a4] sm:$0xf] }
  0xb1   :  { %716 = vmatmul.bf16.gmra.mxu0 %v1558_v4  ;;  %796 = vmatmul.bf16.gmra.mxu2 %v1686_v44 }
  0xb2   :  { %1198 = vst [vmem:[%s2747_s2 + $0x10] sm:$0xff] %v847_v8  ;;  %v1261_v12 = vadd.f32 %v1260_v61, %v847_v8  ;;  %v1331_v13 = vmul.f32 %v847_v8, %v847_v8  ;;  %885 = vmatmul.bf16.gmra.mxu1 %v1562_v5  ;;  %965 = vmatmul.bf16.gmra.mxu3 %v1690_v46  ;;  %v1693_v5 = vld [vmem:[%s2746_s0 + $0x1a0] sm:$0xf] }
  0xb3   :  { %v1574_v61 = vor.u32 %v1826_v56, %v1573_v55  ;;  %v1694_v10 = vor.u32 %v1856_v6, %v1693_v5  ;;  %v1829_v55 = vld [vmem:[%s2746_s0 + $0xd4] sm:$0xf]  ;;  %v1591_v56 = vld [vmem:[%s2746_s0 + $0xd8] sm:$0xf0]  ;;  %v1709_v5 = vld [vmem:[%s2746_s0 + $0x1c0] sm:$0xf] }
  0xb4   :  { %v1394_v17 = vadd.f32 %v1393_v3, %v1331_v13  ;;  %v757_v51 = vpop.f32.mrf.mxu2  ;;  %v1860_v6 = vld [vmem:[%s2746_s0 + $0x1c4] sm:$0xf0] }
  0xb5   :  { %v926_v52 = vpop.f32.mrf.mxu3 }
  0xb6   :  { %v679_v18 = vpop.f32.mrf.mxu0  ;;  %v2262_v60 = vadd.f32 %v926_v52, %v757_v51 }
  0xb7   :  { %v848_v19 = vpop.f32.mrf.mxu1 }
  0xb8   :  { %v849_v20 = vadd.f32 %v848_v19, %v679_v18  ;;  %1230 = vst [vmem:[%s2747_s2 + $0x110] sm:$0xff] %v2262_v60 }
  0xba   :  { %1199 = vst [vmem:[%s2747_s2 + $0x18] sm:$0xff] %v849_v20  ;;  %v1262_v23 = vadd.f32 %v1261_v12, %v849_v20  ;;  %v1332_v24 = vmul.f32 %v849_v20, %v849_v20  ;;  %v1698_v12 = vor.u32 %v1855_v7, %v1695_v11  ;;  %v1859_v7 = vld [vmem:[%s2746_s0 + $0x1c4] sm:$0xf]  ;;  %v1711_v11 = vld [vmem:[%s2746_s0 + $0x1c8] sm:$0xf0] }
  0xbc   :  { %v1395_v29 = vadd.f32 %v1394_v17, %v1332_v24  ;;  %v759_v2 = vpop.f32.mrf.mxu2  ;;  %v1583_v24 = vld [vmem:[%s2746_s0 + $0xc8] sm:$0xf0] }
  0xbd   :  { %v928_v3 = vpop.f32.mrf.mxu3 }
  0xbe   :  { %v682_v33 = vpop.f32.mrf.mxu0  ;;  %v2268_v4 = vadd.f32 %v928_v3, %v759_v2 }
  0xbf   :  { %v851_v34 = vpop.f32.mrf.mxu1 }
  0xc0   :  { %v852_v35 = vadd.f32 %v851_v34, %v682_v33  ;;  %1231 = vst [vmem:[%s2747_s2 + $0x118] sm:$0xff] %v2268_v4 }
  0xc1   :  { %721 = vmatmul.bf16.gmra.mxu0 %v1566_v31  ;;  %801 = vmatmul.bf16.gmra.mxu2 %v1694_v10  ;;  %v1710_v10 = vor.u32 %v1860_v6, %v1709_v5 }
  0xc2   :  { %1200 = vst [vmem:[%s2747_s2 + $0x20] sm:$0xff] %v852_v35  ;;  %v1263_v42 = vadd.f32 %v1262_v23, %v852_v35  ;;  %v1333_v43 = vmul.f32 %v852_v35, %v852_v35  ;;  %890 = vmatmul.bf16.gmra.mxu1 %v1570_v32  ;;  %970 = vmatmul.bf16.gmra.mxu3 %v1698_v12  ;;  %v1827_v23 = vld [vmem:[%s2746_s0 + $0xc4] sm:$0xf] }
  0xc3   :  { %v1586_v28 = vor.u32 %v1827_v23, %v1583_v24  ;;  %v1714_v12 = vor.u32 %v1859_v7, %v1711_v11  ;;  %v1831_v23 = vld [vmem:[%s2746_s0 + $0xe4] sm:$0xf]  ;;  %v1599_v24 = vld [vmem:[%s2746_s0 + $0xe8] sm:$0xf0] }
  0xc4   :  { %v1396_v47 = vadd.f32 %v1395_v29, %v1333_v43  ;;  %v762_v17 = vpop.f32.mrf.mxu2  ;;  %v1703_v43 = vld [vmem:[%s2746_s0 + $0x1b8] sm:$0xf0]  ;;  %v1863_v11 = vld [vmem:[%s2746_s0 + $0x1e4] sm:$0xf] }
  0xc5   :  { %v931_v18 = vpop.f32.mrf.mxu3  ;;  %v1706_v44 = vor.u32 %v1857_v39, %v1703_v43  ;;  %v1717_v39 = vld [vmem:[%s2746_s0 + $0x1d0] sm:$0xf] }
  0xc6   :  { %v684_v48 = vpop.f32.mrf.mxu0  ;;  %v2304_v26 = vadd.f32 %v931_v18, %v762_v17 }
  0xc7   :  { %v853_v49 = vpop.f32.mrf.mxu1 }
  0xc8   :  { %v854_v50 = vadd.f32 %v853_v49, %v684_v48  ;;  %1232 = vst [vmem:[%s2747_s2 + $0x120] sm:$0xff] %v2304_v26 }
  0xca   :  { %1201 = vst [vmem:[%s2747_s2 + $0x28] sm:$0xff] %v854_v50  ;;  %v1264_v53 = vadd.f32 %v1263_v42, %v854_v50  ;;  %v1334_v54 = vmul.f32 %v854_v50, %v854_v50  ;;  %v1702_v42 = vor.u32 %v1858_v37, %v1701_v36 }
  0xcc   :  { %v1397_v59 = vadd.f32 %v1396_v47, %v1334_v54  ;;  %v764_v33 = vpop.f32.mrf.mxu2  ;;  %v1830_v54 = vld [vmem:[%s2746_s0 + $0xd4] sm:$0xf0] }
  0xcd   :  { %v933_v34 = vpop.f32.mrf.mxu3 }
  0xce   :  { %v687_v63 = vpop.f32.mrf.mxu0  ;;  %v2310_v35 = vadd.f32 %v933_v34, %v764_v33 }
  0xcf   :  { %v856_v0 = vpop.f32.mrf.mxu1 }
  0xd0   :  { %v857_v1 = vadd.f32 %v856_v0, %v687_v63  ;;  %1233 = vst [vmem:[%s2747_s2 + $0x128] sm:$0xff] %v2310_v35 }
  0xd1   :  { %726 = vmatmul.bf16.gmra.mxu0 %v1574_v61  ;;  %806 = vmatmul.bf16.gmra.mxu2 %v1702_v42  ;;  %v1594_v61 = vor.u32 %v1829_v55, %v1591_v56  ;;  %v1605_v55 = vld [vmem:[%s2746_s0 + $0xf0] sm:$0xf]  ;;  %v1834_v56 = vld [vmem:[%s2746_s0 + $0xf4] sm:$0xf0] }
  0xd2   :  { %1202 = vst [vmem:[%s2747_s2 + $0x30] sm:$0xff] %v857_v1  ;;  %v1265_v8 = vadd.f32 %v1264_v53, %v857_v1  ;;  %v1335_v9 = vmul.f32 %v857_v1, %v857_v1  ;;  %895 = vmatmul.bf16.gmra.mxu1 %v1578_v62  ;;  %975 = vmatmul.bf16.gmra.mxu3 %v1706_v44  ;;  %v1589_v53 = vld [vmem:[%s2746_s0 + $0xd0] sm:$0xf] }
  0xd4   :  { %v1398_v13 = vadd.f32 %v1397_v59, %v1335_v9  ;;  %v767_v49 = vpop.f32.mrf.mxu2  ;;  %v1590_v59 = vor.u32 %v1830_v54, %v1589_v53 }
  0xd5   :  { %v936_v50 = vpop.f32.mrf.mxu3 }
  0xd6   :  { %v689_v14 = vpop.f32.mrf.mxu0  ;;  %v2346_v58 = vadd.f32 %v936_v50, %v767_v49 }
  0xd7   :  { %v858_v15 = vpop.f32.mrf.mxu1 }
  0xd8   :  { %v859_v16 = vadd.f32 %v858_v15, %v689_v14  ;;  %1234 = vst [vmem:[%s2747_s2 + $0x130] sm:$0xff] %v2346_v58 }
  0xda   :  { %1203 = vst [vmem:[%s2747_s2 + $0x38] sm:$0xff] %v859_v16  ;;  %v1266_v19 = vadd.f32 %v1265_v8, %v859_v16  ;;  %v1336_v20 = vmul.f32 %v859_v16, %v859_v16 }
  0xdc   :  { %v1399_v25 = vadd.f32 %v1398_v13, %v1336_v20  ;;  %v769_v1 = vpop.f32.mrf.mxu2 }
  0xdd   :  { %v938_v2 = vpop.f32.mrf.mxu3 }
  0xde   :  { %v692_v29 = vpop.f32.mrf.mxu0  ;;  %v2352_v3 = vadd.f32 %v938_v2, %v769_v1 }
  0xdf   :  { %v861_v31 = vpop.f32.mrf.mxu1 }
  0xe0   :  { %v862_v32 = vadd.f32 %v861_v31, %v692_v29  ;;  %1235 = vst [vmem:[%s2747_s2 + $0x138] sm:$0xff] %v2352_v3  ;;  %v1602_v29 = vor.u32 %v1831_v23, %v1599_v24 }
  0xe1   :  { %731 = vmatmul.bf16.gmra.mxu0 %v1582_v27  ;;  %811 = vmatmul.bf16.gmra.mxu2 %v1710_v10  ;;  %v1864_v10 = vld [vmem:[%s2746_s0 + $0x1e4] sm:$0xf0] }
  0xe2   :  { %1204 = vst [vmem:[%s2747_s2 + $0x40] sm:$0xff] %v862_v32  ;;  %v1267_v40 = vadd.f32 %v1266_v19, %v862_v32  ;;  %v1337_v41 = vmul.f32 %v862_v32, %v862_v32  ;;  %900 = vmatmul.bf16.gmra.mxu1 %v1586_v28  ;;  %980 = vmatmul.bf16.gmra.mxu3 %v1714_v12 }
  0xe3   :  { %v1598_v28 = vor.u32 %v1832_v22, %v1597_v21 }
  0xe4   :  { %v1400_v45 = vadd.f32 %v1399_v25, %v1337_v41  ;;  %v772_v17 = vpop.f32.mrf.mxu2  ;;  %v1861_v41 = vld [vmem:[%s2746_s0 + $0x1d4] sm:$0xf] }
  0xe5   :  { %v941_v18 = vpop.f32.mrf.mxu3 }
  0xe6   :  { %v694_v46 = vpop.f32.mrf.mxu0  ;;  %v2388_v27 = vadd.f32 %v941_v18, %v772_v17 }
  0xe7   :  { %v863_v47 = vpop.f32.mrf.mxu1 }
  0xe8   :  { %v864_v48 = vadd.f32 %v863_v47, %v694_v46  ;;  %1236 = vst [vmem:[%s2747_s2 + $0x140] sm:$0xff] %v2388_v27 }
  0xea   :  { %1205 = vst [vmem:[%s2747_s2 + $0x48] sm:$0xff] %v864_v48  ;;  %v1268_v51 = vadd.f32 %v1267_v40, %v864_v48  ;;  %v1338_v52 = vmul.f32 %v864_v48, %v864_v48  ;;  %v1862_v40 = vld [vmem:[%s2746_s0 + $0x1d4] sm:$0xf0] }
  0xeb   :  { %v1718_v44 = vor.u32 %v1862_v40, %v1717_v39  ;;  %v1733_v39 = vld [vmem:[%s2746_s0 + $0x1f0] sm:$0xf]  ;;  %v1866_v40 = vld [vmem:[%s2746_s0 + $0x1f4] sm:$0xf0] }
  0xec   :  { %v1401_v57 = vadd.f32 %v1400_v45, %v1338_v52  ;;  %v774_v34 = vpop.f32.mrf.mxu2  ;;  %v1719_v45 = vld [vmem:[%s2746_s0 + $0x1d8] sm:$0xf0] }
  0xed   :  { %v943_v36 = vpop.f32.mrf.mxu3  ;;  %v1722_v46 = vor.u32 %v1861_v41, %v1719_v45  ;;  %v1865_v41 = vld [vmem:[%s2746_s0 + $0x1f4] sm:$0xf]  ;;  %v1735_v45 = vld [vmem:[%s2746_s0 + $0x1f8] sm:$0xf0] }
  0xee   :  { %v697_v62 = vpop.f32.mrf.mxu0  ;;  %v2394_v37 = vadd.f32 %v943_v36, %v774_v34 }
  0xef   :  { %v866_v63 = vpop.f32.mrf.mxu1 }
  0xf0   :  { %v867_v0 = vadd.f32 %v866_v63, %v697_v62  ;;  %1237 = vst [vmem:[%s2747_s2 + $0x148] sm:$0xff] %v2394_v37  ;;  %v1606_v63 = vor.u32 %v1834_v56, %v1605_v55 }
  0xf1   :  { %736 = vmatmul.bf16.gmra.mxu0 %v1590_v59  ;;  %816 = vmatmul.bf16.gmra.mxu2 %v1718_v44  ;;  %v1607_v59 = vld [vmem:[%s2746_s0 + $0xf8] sm:$0xf0]  ;;  %v1734_v44 = vor.u32 %v1866_v40, %v1733_v39 }
  0xf2   :  { %1206 = vst [vmem:[%s2747_s2 + $0x50] sm:$0xff] %v867_v0  ;;  %v1269_v8 = vadd.f32 %v1268_v51, %v867_v0  ;;  %v1339_v9 = vmul.f32 %v867_v0, %v867_v0  ;;  %905 = vmatmul.bf16.gmra.mxu1 %v1594_v61  ;;  %985 = vmatmul.bf16.gmra.mxu3 %v1722_v46 }
  0xf3   :  { %v1738_v46 = vor.u32 %v1865_v41, %v1735_v45 }
  0xf4   :  { %v1402_v13 = vadd.f32 %v1401_v57, %v1339_v9  ;;  %v777_v51 = vpop.f32.mrf.mxu2  ;;  %v1833_v57 = vld [vmem:[%s2746_s0 + $0xf4] sm:$0xf]  ;;  %v1725_v9 = vld [vmem:[%s2746_s0 + $0x1e0] sm:$0xf] }
  0xf5   :  { %v946_v52 = vpop.f32.mrf.mxu3  ;;  %v1610_v0 = vor.u32 %v1833_v57, %v1607_v59 }
  0xf6   :  { %v699_v14 = vpop.f32.mrf.mxu0  ;;  %v2430_v62 = vadd.f32 %v946_v52, %v777_v51 }
  0xf7   :  { %v868_v15 = vpop.f32.mrf.mxu1 }
  0xf8   :  { %v869_v16 = vadd.f32 %v868_v15, %v699_v14  ;;  %1238 = vst [vmem:[%s2747_s2 + $0x150] sm:$0xff] %v2430_v62  ;;  %v1726_v14 = vor.u32 %v1864_v10, %v1725_v9  ;;  %v1727_v15 = vld [vmem:[%s2746_s0 + $0x1e8] sm:$0xf0] }
  0xfa   :  { %1207 = vst [vmem:[%s2747_s2 + $0x58] sm:$0xff] %v869_v16  ;;  %v1270_v19 = vadd.f32 %v1269_v8, %v869_v16  ;;  %v1340_v20 = vmul.f32 %v869_v16, %v869_v16  ;;  %v1730_v16 = vor.u32 %v1863_v11, %v1727_v15 }
  0xfc   :  { %v1403_v25 = vadd.f32 %v1402_v13, %v1340_v20  ;;  %v779_v6 = vpop.f32.mrf.mxu2 }
  0xfd   :  { %v948_v7 = vpop.f32.mrf.mxu3 }
  0xfe   :  { %v702_v31 = vpop.f32.mrf.mxu0  ;;  %v2436_v8 = vadd.f32 %v948_v7, %v779_v6 }
  0xff   :  { %v871_v32 = vpop.f32.mrf.mxu1 }
 0x100   :  { %v872_v33 = vadd.f32 %v871_v32, %v702_v31  ;;  %1239 = vst [vmem:[%s2747_s2 + $0x158] sm:$0xff] %v2436_v8 }
 0x101   :  { %741 = vmatmul.bf16.gmra.mxu0 %v1598_v28  ;;  %821 = vmatmul.bf16.gmra.mxu2 %v1726_v14 }
 0x102   :  { %1208 = vst [vmem:[%s2747_s2 + $0x60] sm:$0xff] %v872_v33  ;;  %v1271_v42 = vadd.f32 %v1270_v19, %v872_v33  ;;  %v1341_v43 = vmul.f32 %v872_v33, %v872_v33  ;;  %910 = vmatmul.bf16.gmra.mxu1 %v1602_v29  ;;  %990 = vmatmul.bf16.gmra.mxu3 %v1730_v16 }
 0x104   :  { %v1404_v47 = vadd.f32 %v1403_v25, %v1341_v43  ;;  %v782_v21 = vpop.f32.mrf.mxu2 }
 0x105   :  { %v951_v22 = vpop.f32.mrf.mxu3 }
 0x106   :  { %v704_v48 = vpop.f32.mrf.mxu0  ;;  %v2460_v28 = vadd.f32 %v951_v22, %v782_v21 }
 0x107   :  { %v873_v49 = vpop.f32.mrf.mxu1 }
 0x108   :  { %v874_v50 = vadd.f32 %v873_v49, %v704_v48  ;;  %1240 = vst [vmem:[%s2747_s2 + $0x160] sm:$0xff] %v2460_v28 }
 0x10a   :  { %1209 = vst [vmem:[%s2747_s2 + $0x68] sm:$0xff] %v874_v50  ;;  %v1272_v53 = vadd.f32 %v1271_v42, %v874_v50  ;;  %v1342_v54 = vmul.f32 %v874_v50, %v874_v50 }
 0x10c   :  { %v1405_v61 = vadd.f32 %v1404_v47, %v1342_v54  ;;  %v784_v33 = vpop.f32.mrf.mxu2 }
 0x10d   :  { %v953_v34 = vpop.f32.mrf.mxu3 }
 0x10e   :  { %v707_v1 = vpop.f32.mrf.mxu0  ;;  %v2466_v36 = vadd.f32 %v953_v34, %v784_v33 }
 0x10f   :  { %v876_v2 = vpop.f32.mrf.mxu1 }
 0x110   :  { %v877_v5 = vadd.f32 %v876_v2, %v707_v1  ;;  %1241 = vst [vmem:[%s2747_s2 + $0x168] sm:$0xff] %v2466_v36 }
 0x111   :  { %746 = vmatmul.bf16.gmra.mxu0 %v1606_v63  ;;  %826 = vmatmul.bf16.gmra.mxu2 %v1734_v44 }
 0x112   :  { %1210 = vst [vmem:[%s2747_s2 + $0x70] sm:$0xff] %v877_v5  ;;  %v1273_v12 = vadd.f32 %v1272_v53, %v877_v5  ;;  %v1343_v13 = vmul.f32 %v877_v5, %v877_v5  ;;  %915 = vmatmul.bf16.gmra.mxu1 %v1610_v0  ;;  %995 = vmatmul.bf16.gmra.mxu3 %v1738_v46 }
 0x114   :  { %v1406_v17 = vadd.f32 %v1405_v61, %v1343_v13  ;;  %v787_v51 = vpop.f32.mrf.mxu2 }
 0x115   :  { %v956_v52 = vpop.f32.mrf.mxu3 }
 0x116   :  { %v709_v18 = vpop.f32.mrf.mxu0  ;;  %v2490_v56 = vadd.f32 %v956_v52, %v787_v51 }
 0x117   :  { %v878_v19 = vpop.f32.mrf.mxu1 }
 0x118   :  { %v879_v20 = vadd.f32 %v878_v19, %v709_v18  ;;  %1242 = vst [vmem:[%s2747_s2 + $0x170] sm:$0xff] %v2490_v56 }
 0x11a   :  { %1211 = vst [vmem:[%s2747_s2 + $0x78] sm:$0xff] %v879_v20  ;;  %v1274_v23 = vadd.f32 %v1273_v12, %v879_v20  ;;  %v1344_v24 = vmul.f32 %v879_v20, %v879_v20 }
 0x11c   :  { %v1407_v25 = vadd.f32 %v1406_v17, %v1344_v24  ;;  %v789_v63 = vpop.f32.mrf.mxu2 }
 0x11d   :  { %v958_v0 = vpop.f32.mrf.mxu3 }
 0x11e   :  { %v712_v29 = vpop.f32.mrf.mxu0  ;;  %v2496_v1 = vadd.f32 %v958_v0, %v789_v63 }
 0x11f   :  { %v881_v31 = vpop.f32.mrf.mxu1 }
 0x120   :  { %v882_v32 = vadd.f32 %v881_v31, %v712_v29  ;;  %1243 = vst [vmem:[%s2747_s2 + $0x178] sm:$0xff] %v2496_v1 }
 0x122   :  { %1212 = vst [vmem:[%s2747_s2 + $0x80] sm:$0xff] %v882_v32  ;;  %v1275_v42 = vadd.f32 %v1274_v23, %v882_v32  ;;  %v1345_v43 = vmul.f32 %v882_v32, %v882_v32 }
 0x124   :  { %v1408_v47 = vadd.f32 %v1407_v25, %v1345_v43  ;;  %v792_v11 = vpop.f32.mrf.mxu2 }
 0x125   :  { %v961_v12 = vpop.f32.mrf.mxu3 }
 0x126   :  { %v714_v48 = vpop.f32.mrf.mxu0  ;;  %v2508_v16 = vadd.f32 %v961_v12, %v792_v11 }
 0x127   :  { %v883_v49 = vpop.f32.mrf.mxu1 }
 0x128   :  { %v884_v50 = vadd.f32 %v883_v49, %v714_v48  ;;  %1244 = vst [vmem:[%s2747_s2 + $0x180] sm:$0xff] %v2508_v16 }
 0x12a   :  { %1213 = vst [vmem:[%s2747_s2 + $0x88] sm:$0xff] %v884_v50  ;;  %v1276_v53 = vadd.f32 %v1275_v42, %v884_v50  ;;  %v1346_v54 = vmul.f32 %v884_v50, %v884_v50 }
 0x12c   :  { %v1409_v55 = vadd.f32 %v1408_v47, %v1346_v54  ;;  %v794_v20 = vpop.f32.mrf.mxu2 }
 0x12d   :  { %v963_v21 = vpop.f32.mrf.mxu3 }
 0x12e   :  { %v717_v57 = vpop.f32.mrf.mxu0  ;;  %v2514_v22 = vadd.f32 %v963_v21, %v794_v20 }
 0x12f   :  { %v886_v59 = vpop.f32.mrf.mxu1 }
 0x130   :  { %v887_v61 = vadd.f32 %v886_v59, %v717_v57  ;;  %1245 = vst [vmem:[%s2747_s2 + $0x188] sm:$0xff] %v2514_v22 }
 0x132   :  { %1214 = vst [vmem:[%s2747_s2 + $0x90] sm:$0xff] %v887_v61  ;;  %v1277_v2 = vadd.f32 %v1276_v53, %v887_v61  ;;  %v1347_v5 = vmul.f32 %v887_v61, %v887_v61 }
 0x134   :  { %v1410_v6 = vadd.f32 %v1409_v55, %v1347_v5  ;;  %v797_v33 = vpop.f32.mrf.mxu2 }
 0x135   :  { %v966_v34 = vpop.f32.mrf.mxu3 }
 0x136   :  { %v719_v7 = vpop.f32.mrf.mxu0  ;;  %v2530_v40 = vadd.f32 %v966_v34, %v797_v33 }
 0x137   :  { %v888_v9 = vpop.f32.mrf.mxu1 }
 0x138   :  { %v889_v10 = vadd.f32 %v888_v9, %v719_v7  ;;  %1246 = vst [vmem:[%s2747_s2 + $0x190] sm:$0xff] %v2530_v40 }
 0x13a   :  { %1215 = vst [vmem:[%s2747_s2 + $0x98] sm:$0xff] %v889_v10  ;;  %v1278_v13 = vadd.f32 %v1277_v2, %v889_v10  ;;  %v1348_v14 = vmul.f32 %v889_v10, %v889_v10 }
 0x13c   :  { %v1411_v15 = vadd.f32 %v1410_v6, %v1348_v14  ;;  %v799_v44 = vpop.f32.mrf.mxu2 }
 0x13d   :  { %v968_v45 = vpop.f32.mrf.mxu3 }
 0x13e   :  { %v722_v17 = vpop.f32.mrf.mxu0  ;;  %v2536_v46 = vadd.f32 %v968_v45, %v799_v44 }
 0x13f   :  { %v891_v18 = vpop.f32.mrf.mxu1 }
 0x140   :  { %v892_v19 = vadd.f32 %v891_v18, %v722_v17  ;;  %1247 = vst [vmem:[%s2747_s2 + $0x198] sm:$0xff] %v2536_v46 }
 0x142   :  { %1216 = vst [vmem:[%s2747_s2 + $0xa0] sm:$0xff] %v892_v19  ;;  %v1279_v23 = vadd.f32 %v1278_v13, %v892_v19  ;;  %v1349_v24 = vmul.f32 %v892_v19, %v892_v19 }
 0x144   :  { %v2523_v25 = vadd.f32 %v1411_v15, %v1349_v24  ;;  %v802_v50 = vpop.f32.mrf.mxu2 }
 0x145   :  { %v971_v51 = vpop.f32.mrf.mxu3 }
 0x146   :  { %v724_v29 = vpop.f32.mrf.mxu0  ;;  %v2548_v52 = vadd.f32 %v971_v51, %v802_v50 }
 0x147   :  { %v893_v31 = vpop.f32.mrf.mxu1 }
 0x148   :  { %v894_v32 = vadd.f32 %v893_v31, %v724_v29  ;;  %1248 = vst [vmem:[%s2747_s2 + $0x1a0] sm:$0xff] %v2548_v52 }
 0x14a   :  { %1217 = vst [vmem:[%s2747_s2 + $0xa8] sm:$0xff] %v894_v32  ;;  %v2528_v39 = vadd.f32 %v1279_v23, %v894_v32 }
 0x14c   :  { %v804_v57 = vpop.f32.mrf.mxu2 }
 0x14d   :  { %v973_v59 = vpop.f32.mrf.mxu3 }
 0x14e   :  { %v727_v41 = vpop.f32.mrf.mxu0  ;;  %v2554_v61 = vadd.f32 %v973_v59, %v804_v57 }
 0x14f   :  { %v896_v42 = vpop.f32.mrf.mxu1 }
 0x150   :  { %v897_v43 = vadd.f32 %v896_v42, %v727_v41  ;;  %1249 = vst [vmem:[%s2747_s2 + $0x1a8] sm:$0xff] %v2554_v61  ;;  %v1350_v41 = vmul.f32 %v894_v32, %v894_v32 }
 0x152   :  { %1218 = vst [vmem:[%s2747_s2 + $0xb0] sm:$0xff] %v897_v43  ;;  %v1351_v42 = vmul.f32 %v897_v43, %v897_v43  ;;  %v1413_v44 = vadd.f32 %v2523_v25, %v1350_v41  ;;  %v1281_v50 = vadd.f32 %v2528_v39, %v897_v43 }
 0x154   :  { %v807_v5 = vpop.f32.mrf.mxu2 }
 0x155   :  { %v976_v6 = vpop.f32.mrf.mxu3 }
 0x156   :  { %v729_v47 = vpop.f32.mrf.mxu0  ;;  %v2566_v7 = vadd.f32 %v976_v6, %v807_v5 }
 0x157   :  { %v898_v48 = vpop.f32.mrf.mxu1 }
 0x158   :  { %v899_v49 = vadd.f32 %v898_v48, %v729_v47  ;;  %1250 = vst [vmem:[%s2747_s2 + $0x1b0] sm:$0xff] %v2566_v7 }
 0x15a   :  { %1219 = vst [vmem:[%s2747_s2 + $0xb8] sm:$0xff] %v899_v49  ;;  %v1352_v45 = vmul.f32 %v899_v49, %v899_v49  ;;  %v1282_v59 = vadd.f32 %v1281_v50, %v899_v49 }
 0x15c   :  { %v809_v12 = vpop.f32.mrf.mxu2 }
 0x15d   :  { %v978_v13 = vpop.f32.mrf.mxu3 }
 0x15e   :  { %v732_v53 = vpop.f32.mrf.mxu0  ;;  %v2572_v14 = vadd.f32 %v978_v13, %v809_v12 }
 0x15f   :  { %v901_v54 = vpop.f32.mrf.mxu1 }
 0x160   :  { %v902_v55 = vadd.f32 %v901_v54, %v732_v53  ;;  %1251 = vst [vmem:[%s2747_s2 + $0x1b8] sm:$0xff] %v2572_v14  ;;  %v1414_v54 = vadd.f32 %v1413_v44, %v1351_v42 }
 0x162   :  { %1220 = vst [vmem:[%s2747_s2 + $0xc0] sm:$0xff] %v902_v55  ;;  %v1353_v57 = vmul.f32 %v902_v55, %v902_v55  ;;  %v1283_v5 = vadd.f32 %v1282_v59, %v902_v55 }
 0x164   :  { %v812_v19 = vpop.f32.mrf.mxu2 }
 0x165   :  { %v981_v20 = vpop.f32.mrf.mxu3 }
 0x166   :  { %v734_v63 = vpop.f32.mrf.mxu0  ;;  %v2584_v29 = vadd.f32 %v981_v20, %v812_v19 }
 0x167   :  { %v903_v0 = vpop.f32.mrf.mxu1 }
 0x168   :  { %v904_v2 = vadd.f32 %v903_v0, %v734_v63  ;;  %1252 = vst [vmem:[%s2747_s2 + $0x1c0] sm:$0xff] %v2584_v29  ;;  %v1415_v63 = vadd.f32 %v1414_v54, %v1352_v45 }
 0x16a   :  { %1221 = vst [vmem:[%s2747_s2 + $0xc8] sm:$0xff] %v904_v2  ;;  %v1354_v0 = vmul.f32 %v904_v2, %v904_v2  ;;  %v1416_v6 = vadd.f32 %v1415_v63, %v1353_v57  ;;  %v1284_v25 = vadd.f32 %v1283_v5, %v904_v2  ;;  %v1361_v57 = vmul.f32 %v2220_v30, %v2220_v30 }
 0x16b   :  { %v1362_v63 = vmul.f32 %v2226_v38, %v2226_v38 }
 0x16c   :  { %v814_v31 = vpop.f32.mrf.mxu2 }
 0x16d   :  { %v983_v33 = vpop.f32.mrf.mxu3 }
 0x16e   :  { %v737_v9 = vpop.f32.mrf.mxu0  ;;  %v2586_v34 = vadd.f32 %v983_v33, %v814_v31 }
 0x16f   :  { %v906_v10 = vpop.f32.mrf.mxu1 }
 0x170   :  { %v907_v11 = vadd.f32 %v906_v10, %v737_v9  ;;  %1253 = vst [vmem:[%s2747_s2 + $0x1c8] sm:$0xff] %v2586_v34  ;;  %v1417_v10 = vadd.f32 %v1416_v6, %v1354_v0  ;;  %v1363_v6 = vmul.f32 %v2262_v60, %v2262_v60 }
 0x172   :  { %1222 = vst [vmem:[%s2747_s2 + $0xd0] sm:$0xff] %v907_v11  ;;  %v1355_v9 = vmul.f32 %v907_v11, %v907_v11  ;;  %v1285_v39 = vadd.f32 %v1284_v25, %v907_v11 }
 0x174   :  { %v817_v32 = vpop.f32.mrf.mxu2 }
 0x175   :  { %v986_v53 = vpop.f32.mrf.mxu3 }
 0x176   :  { %v739_v15 = vpop.f32.mrf.mxu0 }
 0x177   :  { %v908_v17 = vpop.f32.mrf.mxu1 }
 0x178   :  { %v909_v18 = vadd.f32 %v908_v17, %v739_v15  ;;  %v2604_v17 = vadd.f32 %v986_v53, %v817_v32 }
 0x17a   :  { %1223 = vst [vmem:[%s2747_s2 + $0xd8] sm:$0xff] %v909_v18  ;;  %v1356_v43 = vmul.f32 %v909_v18, %v909_v18 }
 0x17b   :  { %1254 = vst [vmem:[%s2747_s2 + $0x1d0] sm:$0xff] %v2604_v17 }
 0x17c   :  { %v819_v19 = vpop.f32.mrf.mxu2 }
 0x17d   :  { %v988_v49 = vpop.f32.mrf.mxu3 }
 0x17e   :  { %v742_v21 = vpop.f32.mrf.mxu0  ;;  %v2606_v20 = vadd.f32 %v988_v49, %v819_v19 }
 0x17f   :  { %v911_v23 = vpop.f32.mrf.mxu1 }
 0x180   :  { %v912_v24 = vadd.f32 %v911_v23, %v742_v21  ;;  %v1418_v21 = vadd.f32 %v1417_v10, %v1355_v9  ;;  %v1286_v23 = vadd.f32 %v1285_v39, %v909_v18  ;;  %1255 = vst [vmem:[%s2747_s2 + $0x1d8] sm:$0xff] %v2606_v20 }
 0x182   :  { %1224 = vst [vmem:[%s2747_s2 + $0xe0] sm:$0xff] %v912_v24  ;;  %v1357_v31 = vmul.f32 %v912_v24, %v912_v24  ;;  %v1419_v55 = vadd.f32 %v1418_v21, %v1356_v43  ;;  %v1287_v2 = vadd.f32 %v1286_v23, %v912_v24  ;;  %v1367_v23 = vmul.f32 %v2346_v58, %v2346_v58 }
 0x184   :  { %v1420_v33 = vadd.f32 %v1419_v55, %v1357_v31  ;;  %v822_v50 = vpop.f32.mrf.mxu2 }
 0x185   :  { %v991_v32 = vpop.f32.mrf.mxu3 }
 0x186   :  { %v744_v47 = vpop.f32.mrf.mxu0  ;;  %v2631_v10 = vadd.f32 %v991_v32, %v822_v50 }
 0x187   :  { %v913_v48 = vpop.f32.mrf.mxu1 }
 0x188   :  { %v914_v51 = vadd.f32 %v913_v48, %v744_v47  ;;  %1256 = vst [vmem:[%s2747_s2 + $0x1e0] sm:$0xff] %v2631_v10 }
 0x18a   :  { %1225 = vst [vmem:[%s2747_s2 + $0xe8] sm:$0xff] %v914_v51  ;;  %v1358_v11 = vmul.f32 %v914_v51, %v914_v51  ;;  %v1288_v18 = vadd.f32 %v1287_v2, %v914_v51 }
 0x18c   :  { %v1421_v45 = vadd.f32 %v1420_v33, %v1358_v11  ;;  %v1368_v33 = vmul.f32 %v2352_v3, %v2352_v3 }
 0x18e   :  { %v747_v12 = vpop.f32.mrf.mxu0 }
 0x18f   :  { %v916_v13 = vpop.f32.mrf.mxu1 }
 0x190   :  { %v917_v15 = vadd.f32 %v916_v13, %v747_v12  ;;  %v824_v12 = vpop.f32.mrf.mxu2  ;;  %v993_v13 = vpop.f32.mrf.mxu3 }
 0x191   :  { %v2633_v39 = vadd.f32 %v993_v13, %v824_v12 }
 0x192   :  { %1226 = vst [vmem:[%s2747_s2 + $0xf0] sm:$0xff] %v917_v15  ;;  %v1359_v41 = vmul.f32 %v917_v15, %v917_v15  ;;  %v1289_v47 = vadd.f32 %v1288_v18, %v917_v15 }
 0x193   :  { %1257 = vst [vmem:[%s2747_s2 + $0x1e8] sm:$0xff] %v2633_v39 }
 0x194   :  { %v1422_v53 = vadd.f32 %v1421_v45, %v1359_v41  ;;  %v1369_v41 = vmul.f32 %v2388_v27, %v2388_v27 }
 0x196   :  { %v749_v42 = vpop.f32.mrf.mxu0 }
 0x197   :  { %v918_v44 = vpop.f32.mrf.mxu1 }
 0x198   :  { %v919_v48 = vadd.f32 %v918_v44, %v749_v42  ;;  %v827_v2 = vpop.f32.mrf.mxu2  ;;  %v996_v11 = vpop.f32.mrf.mxu3  ;;  %v1370_v44 = vmul.f32 %v2394_v37, %v2394_v37 }
 0x19a   :  { %1227 = vst [vmem:[%s2747_s2 + $0xf8] sm:$0xff] %v919_v48  ;;  %v1290_v24 = vadd.f32 %v1289_v47, %v919_v48  ;;  %v1360_v54 = vmul.f32 %v919_v48, %v919_v48  ;;  %v1371_v47 = vmul.f32 %v2430_v62, %v2430_v62 }
 0x19c   :  { %v1291_v51 = vadd.f32 %v1290_v24, %v2220_v30  ;;  %v1423_v59 = vadd.f32 %v1422_v53, %v1360_v54  ;;  %v1364_v30 = vmul.f32 %v2268_v4, %v2268_v4 }
 0x19e   :  { %v1292_v0 = vadd.f32 %v1291_v51, %v2226_v38  ;;  %v1424_v5 = vadd.f32 %v1423_v59, %v1361_v57  ;;  %v1365_v38 = vmul.f32 %v2304_v26, %v2304_v26 }
 0x1a0   :  { %v1293_v25 = vadd.f32 %v1292_v0, %v2262_v60  ;;  %v1425_v9 = vadd.f32 %v1424_v5, %v1362_v63  ;;  %v829_v32 = vpop.f32.mrf.mxu2  ;;  %v998_v53 = vpop.f32.mrf.mxu3  ;;  %v1375_v0 = vmul.f32 %v2490_v56, %v2490_v56 }
 0x1a1   :  { %v2669_v24 = vadd.f32 %v998_v53, %v829_v32  ;;  %v1390_v32 = vmul.f32 %v2633_v39, %v2633_v39 }
 0x1a2   :  { %v1294_v43 = vadd.f32 %v1293_v25, %v2268_v4  ;;  %v1426_v15 = vadd.f32 %v1425_v9, %v1363_v6  ;;  %v1366_v4 = vmul.f32 %v2310_v35, %v2310_v35  ;;  %v1376_v25 = vmul.f32 %v2496_v1, %v2496_v1 }
 0x1a3   :  { %1259 = vst [vmem:[%s2747_s2 + $0x1f8] sm:$0xff] %v2669_v24 }
 0x1a4   :  { %v1295_v60 = vadd.f32 %v1294_v43, %v2304_v26  ;;  %v1427_v19 = vadd.f32 %v1426_v15, %v1364_v30 }
 0x1a6   :  { %v1296_v49 = vadd.f32 %v1295_v60, %v2310_v35  ;;  %v1428_v21 = vadd.f32 %v1427_v19, %v1365_v38 }
 0x1a8   :  { %v1297_v31 = vadd.f32 %v1296_v49, %v2346_v58  ;;  %v1429_v55 = vadd.f32 %v1428_v21, %v1366_v4 }
 0x1aa   :  { %v1298_v26 = vadd.f32 %v1297_v31, %v2352_v3  ;;  %v1430_v18 = vadd.f32 %v1429_v55, %v1367_v23  ;;  %v2667_v3 = vadd.f32 %v996_v11, %v827_v2 }
 0x1ac   :  { %v1299_v35 = vadd.f32 %v1298_v26, %v2388_v27  ;;  %v1431_v42 = vadd.f32 %v1430_v18, %v1368_v33  ;;  %v1372_v27 = vmul.f32 %v2436_v8, %v2436_v8  ;;  %1258 = vst [vmem:[%s2747_s2 + $0x1f0] sm:$0xff] %v2667_v3  ;;  %v1385_v26 = vmul.f32 %v2584_v29, %v2584_v29 }
 0x1ae   :  { %v1300_v58 = vadd.f32 %v1299_v35, %v2394_v37  ;;  %v1432_v45 = vadd.f32 %v1431_v42, %v1369_v41  ;;  %v1373_v37 = vmul.f32 %v2460_v28, %v2460_v28  ;;  %v1386_v35 = vmul.f32 %v2586_v34, %v2586_v34 }
 0x1b0   :  { %v1301_v48 = vadd.f32 %v1300_v58, %v2430_v62  ;;  %v1433_v50 = vadd.f32 %v1432_v45, %v1370_v44  ;;  %v1387_v44 = vmul.f32 %v2604_v17, %v2604_v17  ;;  %v1388_v45 = vmul.f32 %v2606_v20, %v2606_v20 }
 0x1b2   :  { %v1302_v54 = vadd.f32 %v1301_v48, %v2436_v8  ;;  %v1434_v57 = vadd.f32 %v1433_v50, %v1371_v47  ;;  %v1374_v8 = vmul.f32 %v2466_v36, %v2466_v36  ;;  %v1389_v48 = vmul.f32 %v2631_v10, %v2631_v10 }
 0x1b4   :  { %v1435_v62 = vadd.f32 %v1434_v57, %v1372_v27  ;;  %v1303_v51 = vadd.f32 %v1302_v54, %v2460_v28  ;;  %v1377_v28 = vmul.f32 %v2508_v16, %v2508_v16  ;;  %v1391_v27 = vmul.f32 %v2667_v3, %v2667_v3 }
 0x1b5   :  { %v1392_v57 = vmul.f32 %v2669_v24, %v2669_v24 }
 0x1b6   :  { %v1304_v59 = vadd.f32 %v1303_v51, %v2466_v36  ;;  %v1436_v63 = vadd.f32 %v1435_v62, %v1373_v37  ;;  %v1378_v36 = vmul.f32 %v2514_v22, %v2514_v22 }
 0x1b8   :  { %v1305_v5 = vadd.f32 %v1304_v59, %v2490_v56  ;;  %v1437_v6 = vadd.f32 %v1436_v63, %v1374_v8  ;;  %v1379_v56 = vmul.f32 %v2530_v40, %v2530_v40  ;;  %v1462_v8 = vlaneseq }
 0x1ba   :  { %v1306_v9 = vadd.f32 %v1305_v5, %v2496_v1  ;;  %v1438_v12 = vadd.f32 %v1437_v6, %v1375_v0  ;;  %v1380_v1 = vmul.f32 %v2536_v46, %v2536_v46  ;;  %v1463_v5 = vshrl.u32 %v1462_v8, 7 }
 0x1bc   :  { %v1307_v13 = vadd.f32 %v1306_v9, %v2508_v16  ;;  %v1439_v30 = vadd.f32 %v1438_v12, %v1376_v25  ;;  %v1381_v16 = vmul.f32 %v2548_v52, %v2548_v52  ;;  %vm1465_vm0 = vcmp.eq.s32.totalorder %v1463_v5, 1 }
 0x1bd   :  { %vm1464_vm1 = vcmp.eq.s32.totalorder %v1463_v5, 0 }
 0x1be   :  { %v1308_v43 = vadd.f32 %v1307_v13, %v2514_v22  ;;  %v1440_v15 = vadd.f32 %v1439_v30, %v1377_v28  ;;  %v1382_v22 = vmul.f32 %v2554_v61, %v2554_v61 }
 0x1c0   :  { %v1309_v38 = vadd.f32 %v1308_v43, %v2530_v40  ;;  %v1441_v60 = vadd.f32 %v1440_v15, %v1378_v36  ;;  %v1383_v40 = vmul.f32 %v2566_v7, %v2566_v7 }
 0x1c2   :  { %v1310_v19 = vadd.f32 %v1309_v38, %v2536_v46  ;;  %v1442_v4 = vadd.f32 %v1441_v60, %v1379_v56  ;;  %v1384_v46 = vmul.f32 %v2572_v14, %v2572_v14 }
 0x1c4   :  { %v1311_v49 = vadd.f32 %v1310_v19, %v2548_v52  ;;  %v1443_v21 = vadd.f32 %v1442_v4, %v1380_v1 }
 0x1c6   :  { %v1312_v23 = vadd.f32 %v1311_v49, %v2554_v61  ;;  %v1444_v31 = vadd.f32 %v1443_v21, %v1381_v16 }
 0x1c8   :  { %v1313_v55 = vadd.f32 %v1312_v23, %v2566_v7  ;;  %v1445_v2 = vadd.f32 %v1444_v31, %v1382_v22 }
 0x1ca   :  { %v1314_v11 = vadd.f32 %v1313_v55, %v2572_v14  ;;  %v1446_v33 = vadd.f32 %v1445_v2, %v1383_v40 }
 0x1cc   :  { %v1315_v52 = vadd.f32 %v1314_v11, %v2584_v29  ;;  %v1447_v18 = vadd.f32 %v1446_v33, %v1384_v46 }
 0x1ce   :  { %v1448_v61 = vadd.f32 %v1447_v18, %v1385_v26  ;;  %v1316_v41 = vadd.f32 %v1315_v52, %v2586_v34 }
 0x1d0   :  { %v1449_v7 = vadd.f32 %v1448_v61, %v1386_v35  ;;  %v1317_v42 = vadd.f32 %v1316_v41, %v2604_v17 }
 0x1d2   :  { %v1450_v14 = vadd.f32 %v1449_v7, %v1387_v44  ;;  %v1318_v58 = vadd.f32 %v1317_v42, %v2606_v20 }
 0x1d4   :  { %v1451_v29 = vadd.f32 %v1450_v14, %v1388_v45  ;;  %v1319_v47 = vadd.f32 %v1318_v58, %v2631_v10 }
 0x1d6   :  { %v1452_v50 = vadd.f32 %v1451_v29, %v1389_v48  ;;  %v1320_v34 = vadd.f32 %v1319_v47, %v2633_v39 }
 0x1d8   :  { %v1453_v53 = vadd.f32 %v1452_v50, %v1390_v32  ;;  %v1321_v17 = vadd.f32 %v1320_v34, %v2667_v3 }
 0x1da   :  { %v1454_v54 = vadd.f32 %v1453_v53, %v1391_v27  ;;  %v1322_v20 = vadd.f32 %v1321_v17, %v2669_v24 }
 0x1dc   :  { %v1323_v37 = vrot.slane %v1322_v20, 4  ;;  %v1455_v10 = vadd.f32 %v1454_v54, %v1392_v57 }
 0x1de   :  { %v1324_v62 = vadd.f32 %v1323_v37, %v1322_v20  ;;  %v1456_v51 = vrot.slane %v1455_v10, 4 }
 0x1e0   :  { %v1325_v59 = vrot.slane %v1324_v62, 2  ;;  %v1457_v63 = vadd.f32 %v1456_v51, %v1455_v10 }
 0x1e2   :  { %v1326_v39 = vadd.f32 %v1325_v59, %v1324_v62  ;;  %v1458_v0 = vrot.slane %v1457_v63, 2 }
 0x1e4   :  { %v1459_v6 = vadd.f32 %v1458_v0, %v1457_v63  ;;  %v1327_v25 = vrot.slane %v1326_v39, 1 }
 0x1e6   :  { %v1460_v9 = vrot.slane %v1459_v6, 1  ;;  %v1328_v12 = vadd.f32 %v1327_v25, %v1326_v39 }
 0x1e8   :  { %v1461_v3 = vadd.f32 %v1460_v9, %v1459_v6 }
 0x1ea   :  { %v1468_v28 = vsel %vm1465_vm0, %v1461_v3, 0.0 }
 0x1eb   :  { %v1471_v13 = vsel %vm1464_vm1, %v1328_v12, %v1468_v28 }
 0x1ec   :  { %1474 = vst [vmem:[%s2748_s3] sm:$0xff] %v1471_v13 }

// kernel: image_discriminator_forward.9
= control target key start
LH: loop header
LB: loop body
LE: loop exit
PB: predicated region body
PF: predicated region fallthrough
CT: control target
= control target key end

     0   :  { %s1020_s0 = inlined_call_operand.vmem [shape: f32[512,128], index: 0, kind: input, shape index: {}]   ;;  %s1021_s1 = inlined_call_operand.vmem [shape: f32[1,128], index: 1, kind: input, shape index: {}]   ;;  %s1022_s2 = inlined_call_operand.vmem [shape: f32[1,128], index: 2, kind: input, shape index: {}]   ;;  %s1023_s3 = inlined_call_operand.vmem [shape: f32[512,128], index: 3, kind: output, shape index: {}]  }
   0x1   :  { %v14_v0 = vld [vmem:[%s1020_s0] sm:$0xff]  ;;  %v15_v3 = vld [vmem:[%s1020_s0 + $0x8] sm:$0xff]  ;;  %v16_v6 = vld [vmem:[%s1020_s0 + $0x10] sm:$0xff] }
   0x2   :  { %v502_v1 = vld [vmem:[%s1021_s1] ss:$0 sm:$0xff]  ;;  %v17_v7 = vld [vmem:[%s1020_s0 + $0x18] sm:$0xff]  ;;  %v19_v12 = vld [vmem:[%s1020_s0 + $0x28] sm:$0xff] }
   0x3   :  { %v507_v2 = vld [vmem:[%s1022_s2] ss:$0 sm:$0xff]  ;;  %v82_v4 = vmul.f32 %v502_v1, %v14_v0  ;;  %v83_v5 = vmul.f32 %v502_v1, %v15_v3  ;;  %v84_v9 = vmul.f32 %v502_v1, %v16_v6  ;;  %v85_v10 = vmul.f32 %v502_v1, %v17_v7  ;;  %v20_v13 = vld [vmem:[%s1020_s0 + $0x30] sm:$0xff]  ;;  %v21_v14 = vld [vmem:[%s1020_s0 + $0x38] sm:$0xff] }
   0x4   :  { %v18_v8 = vld [vmem:[%s1020_s0 + $0x20] sm:$0xff]  ;;  %v87_v17 = vmul.f32 %v502_v1, %v19_v12  ;;  %v88_v18 = vmul.f32 %v502_v1, %v20_v13  ;;  %v89_v22 = vmul.f32 %v502_v1, %v21_v14  ;;  %v23_v24 = vld [vmem:[%s1020_s0 + $0x48] sm:$0xff]  ;;  %v24_v32 = vld [vmem:[%s1020_s0 + $0x50] sm:$0xff] }
   0x5   :  { %v86_v11 = vmul.f32 %v502_v1, %v18_v8  ;;  %v150_v15 = vadd.f32 %v507_v2, %v82_v4  ;;  %v151_v16 = vadd.f32 %v507_v2, %v83_v5  ;;  %v152_v19 = vadd.f32 %v507_v2, %v84_v9  ;;  %v22_v23 = vld [vmem:[%s1020_s0 + $0x40] sm:$0xff]  ;;  %v25_v41 = vld [vmem:[%s1020_s0 + $0x58] sm:$0xff]  ;;  %v27_v52 = vld [vmem:[%s1020_s0 + $0x68] sm:$0xff] }
   0x6   :  { %v153_v20 = vadd.f32 %v507_v2, %v85_v10  ;;  %v155_v35 = vadd.f32 %v507_v2, %v87_v17  ;;  %v156_v36 = vadd.f32 %v507_v2, %v88_v18  ;;  %v157_v38 = vadd.f32 %v507_v2, %v89_v22  ;;  %v26_v51 = vld [vmem:[%s1020_s0 + $0x60] sm:$0xff]  ;;  %v28_v56 = vld [vmem:[%s1020_s0 + $0x70] sm:$0xff]  ;;  %v29_v59 = vld [vmem:[%s1020_s0 + $0x78] sm:$0xff] }
   0x7   :  { %v154_v21 = vadd.f32 %v507_v2, %v86_v11  ;;  %vm214_vm0 = vcmp.ge.f32.partialorder %v150_v15, 0.0  ;;  %v278_v25 = vmul.f32 0.2, %v150_v15  ;;  %vm215_vm1 = vcmp.ge.f32.partialorder %v151_v16, 0.0  ;;  %v30_v0 = vld [vmem:[%s1020_s0 + $0x80] sm:$0xff]  ;;  %v31_v3 = vld [vmem:[%s1020_s0 + $0x88] sm:$0xff] }
   0x8   :  { %v279_v26 = vmul.f32 0.2, %v151_v16  ;;  %vm216_vm2 = vcmp.ge.f32.partialorder %v152_v19, 0.0  ;;  %v280_v27 = vmul.f32 0.2, %v152_v19  ;;  %vm217_vm3 = vcmp.ge.f32.partialorder %v153_v20, 0.0 }
   0x9   :  { %v281_v28 = vmul.f32 0.2, %v153_v20  ;;  %v342_v29 = vsel %vm214_vm0, %v150_v15, %v278_v25  ;;  %vm218_vm4 = vcmp.ge.f32.partialorder %v154_v21, 0.0  ;;  %v282_v31 = vmul.f32 0.2, %v154_v21  ;;  %v34_v25 = vld [vmem:[%s1020_s0 + $0xa0] sm:$0xff] }
   0xa   :  { %v343_v30 = vsel %vm215_vm1, %v151_v16, %v279_v26  ;;  %406 = vst [vmem:[%s1023_s3] sm:$0xff] %v342_v29  ;;  %v344_v33 = vsel %vm216_vm2, %v152_v19, %v280_v27  ;;  %v90_v39 = vmul.f32 %v502_v1, %v22_v23  ;;  %v91_v40 = vmul.f32 %v502_v1, %v23_v24  ;;  %v33_v24 = vld [vmem:[%s1020_s0 + $0x98] sm:$0xff]  ;;  %v35_v26 = vld [vmem:[%s1020_s0 + $0xa8] sm:$0xff] }
   0xb   :  { %v345_v34 = vsel %vm217_vm3, %v153_v20, %v281_v28  ;;  %407 = vst [vmem:[%s1023_s3 + $0x8] sm:$0xff] %v343_v30  ;;  %v346_v37 = vsel %vm218_vm4, %v154_v21, %v282_v31  ;;  %vm219_vm5 = vcmp.ge.f32.partialorder %v155_v35, 0.0  ;;  %v283_v42 = vmul.f32 0.2, %v155_v35  ;;  %v32_v20 = vld [vmem:[%s1020_s0 + $0x90] sm:$0xff]  ;;  %v37_v31 = vld [vmem:[%s1020_s0 + $0xb8] sm:$0xff] }
   0xc   :  { %408 = vst [vmem:[%s1023_s3 + $0x10] sm:$0xff] %v344_v33  ;;  %vm220_vm6 = vcmp.ge.f32.partialorder %v156_v36, 0.0  ;;  %v92_v43 = vmul.f32 %v502_v1, %v24_v32  ;;  %v284_v44 = vmul.f32 0.2, %v156_v36  ;;  %vm221_vm7 = vcmp.ge.f32.partialorder %v157_v38, 0.0  ;;  %v36_v30 = vld [vmem:[%s1020_s0 + $0xb0] sm:$0xff] }
   0xd   :  { %409 = vst [vmem:[%s1023_s3 + $0x18] sm:$0xff] %v345_v34  ;;  %v285_v45 = vmul.f32 0.2, %v157_v38  ;;  %v158_v46 = vadd.f32 %v507_v2, %v90_v39  ;;  %v347_v47 = vsel %vm219_vm5, %v155_v35, %v283_v42  ;;  %v159_v48 = vadd.f32 %v507_v2, %v91_v40  ;;  %v38_v35 = vld [vmem:[%s1020_s0 + $0xc0] sm:$0xff] }
   0xe   :  { %410 = vst [vmem:[%s1023_s3 + $0x20] sm:$0xff] %v346_v37  ;;  %v160_v49 = vadd.f32 %v507_v2, %v92_v43  ;;  %v93_v50 = vmul.f32 %v502_v1, %v25_v41  ;;  %v348_v53 = vsel %vm220_vm6, %v156_v36, %v284_v44  ;;  %v94_v62 = vmul.f32 %v502_v1, %v26_v51  ;;  %v39_v51 = vld [vmem:[%s1020_s0 + $0xc8] sm:$0xff] }
   0xf   :  { %411 = vst [vmem:[%s1023_s3 + $0x28] sm:$0xff] %v347_v47  ;;  %v349_v54 = vsel %vm221_vm7, %v157_v38, %v285_v45  ;;  %vm222_vm8 = vcmp.ge.f32.partialorder %v158_v46, 0.0  ;;  %v286_v55 = vmul.f32 0.2, %v158_v46  ;;  %vm223_vm9 = vcmp.ge.f32.partialorder %v159_v48, 0.0 }
  0x10   :  { %412 = vst [vmem:[%s1023_s3 + $0x30] sm:$0xff] %v348_v53  ;;  %v287_v57 = vmul.f32 0.2, %v159_v48  ;;  %vm224_vm10 = vcmp.ge.f32.partialorder %v160_v49, 0.0  ;;  %v161_v58 = vadd.f32 %v507_v2, %v93_v50  ;;  %v288_v61 = vmul.f32 0.2, %v160_v49 }
  0x11   :  { %413 = vst [vmem:[%s1023_s3 + $0x38] sm:$0xff] %v349_v54  ;;  %v350_v60 = vsel %vm222_vm8, %v158_v46, %v286_v55  ;;  %v95_v63 = vmul.f32 %v502_v1, %v27_v52  ;;  %v96_v6 = vmul.f32 %v502_v1, %v28_v56  ;;  %v162_v8 = vadd.f32 %v507_v2, %v94_v62  ;;  %v40_v52 = vld [vmem:[%s1020_s0 + $0xd0] sm:$0xff] }
  0x12   :  { %414 = vst [vmem:[%s1023_s3 + $0x40] sm:$0xff] %v350_v60  ;;  %v351_v4 = vsel %vm223_vm9, %v159_v48, %v287_v57  ;;  %vm225_vm11 = vcmp.ge.f32.partialorder %v161_v58, 0.0  ;;  %v289_v5 = vmul.f32 0.2, %v161_v58  ;;  %v352_v7 = vsel %vm224_vm10, %v160_v49, %v288_v61  ;;  %v41_v57 = vld [vmem:[%s1020_s0 + $0xd8] sm:$0xff] }
  0x13   :  { %415 = vst [vmem:[%s1023_s3 + $0x48] sm:$0xff] %v351_v4  ;;  %v163_v9 = vadd.f32 %v507_v2, %v95_v63  ;;  %v97_v10 = vmul.f32 %v502_v1, %v29_v59  ;;  %v164_v12 = vadd.f32 %v507_v2, %v96_v6  ;;  %v98_v13 = vmul.f32 %v502_v1, %v30_v0  ;;  %v43_v4 = vld [vmem:[%s1020_s0 + $0xe8] sm:$0xff] }
  0x14   :  { %416 = vst [vmem:[%s1023_s3 + $0x50] sm:$0xff] %v352_v7  ;;  %v353_v11 = vsel %vm225_vm11, %v161_v58, %v289_v5  ;;  %v99_v14 = vmul.f32 %v502_v1, %v31_v3  ;;  %vm226_vm12 = vcmp.ge.f32.partialorder %v162_v8, 0.0  ;;  %v290_v15 = vmul.f32 0.2, %v162_v8  ;;  %v42_v58 = vld [vmem:[%s1020_s0 + $0xe0] sm:$0xff] }
  0x15   :  { %417 = vst [vmem:[%s1023_s3 + $0x58] sm:$0xff] %v353_v11  ;;  %vm227_vm13 = vcmp.ge.f32.partialorder %v163_v9, 0.0  ;;  %v165_v16 = vadd.f32 %v507_v2, %v97_v10  ;;  %v291_v17 = vmul.f32 0.2, %v163_v9  ;;  %vm228_vm14 = vcmp.ge.f32.partialorder %v164_v12, 0.0 }
  0x16   :  { %v292_v18 = vmul.f32 0.2, %v164_v12  ;;  %v166_v19 = vadd.f32 %v507_v2, %v98_v13  ;;  %v354_v21 = vsel %vm226_vm12, %v162_v8, %v290_v15  ;;  %v167_v23 = vadd.f32 %v507_v2, %v99_v14 }
  0x17   :  { %vm229_vm15 = vcmp.ge.f32.partialorder %v165_v16, 0.0  ;;  %v293_v22 = vmul.f32 0.2, %v165_v16  ;;  %418 = vst [vmem:[%s1023_s3 + $0x60] sm:$0xff] %v354_v21  ;;  %v355_v27 = vsel %vm227_vm13, %v163_v9, %v291_v17  ;;  %v100_v34 = vmul.f32 %v502_v1, %v32_v20  ;;  %v44_v9 = vld [vmem:[%s1020_s0 + $0xf0] sm:$0xff]  ;;  %v45_v20 = vld [vmem:[%s1020_s0 + $0xf8] sm:$0xff] }
  0x18   :  { %v356_v28 = vsel %vm228_vm14, %v164_v12, %v292_v18  ;;  %vm230_vm0 = vcmp.ge.f32.partialorder %v166_v19, 0.0  ;;  %v294_v29 = vmul.f32 0.2, %v166_v19  ;;  %419 = vst [vmem:[%s1023_s3 + $0x68] sm:$0xff] %v355_v27  ;;  %vm231_vm1 = vcmp.ge.f32.partialorder %v167_v23, 0.0  ;;  %v46_v21 = vld [vmem:[%s1020_s0 + $0x100] sm:$0xff] }
  0x19   :  { %v357_v32 = vsel %vm229_vm15, %v165_v16, %v293_v22  ;;  %v295_v33 = vmul.f32 0.2, %v167_v23  ;;  %420 = vst [vmem:[%s1023_s3 + $0x70] sm:$0xff] %v356_v28  ;;  %v101_v37 = vmul.f32 %v502_v1, %v33_v24  ;;  %v102_v38 = vmul.f32 %v502_v1, %v34_v25 }
  0x1a   :  { %v358_v36 = vsel %vm230_vm0, %v166_v19, %v294_v29  ;;  %v103_v39 = vmul.f32 %v502_v1, %v35_v26  ;;  %421 = vst [vmem:[%s1023_s3 + $0x78] sm:$0xff] %v357_v32  ;;  %v168_v41 = vadd.f32 %v507_v2, %v100_v34  ;;  %v104_v42 = vmul.f32 %v502_v1, %v36_v30  ;;  %v48_v32 = vld [vmem:[%s1020_s0 + $0x110] sm:$0xff] }
  0x1b   :  { %v359_v40 = vsel %vm231_vm1, %v167_v23, %v295_v33  ;;  %v105_v43 = vmul.f32 %v502_v1, %v37_v31  ;;  %422 = vst [vmem:[%s1023_s3 + $0x80] sm:$0xff] %v358_v36  ;;  %v169_v44 = vadd.f32 %v507_v2, %v101_v37  ;;  %v170_v45 = vadd.f32 %v507_v2, %v102_v38  ;;  %v47_v31 = vld [vmem:[%s1020_s0 + $0x108] sm:$0xff]  ;;  %v49_v33 = vld [vmem:[%s1020_s0 + $0x118] sm:$0xff] }
  0x1c   :  { %v171_v46 = vadd.f32 %v507_v2, %v103_v39  ;;  %v106_v47 = vmul.f32 %v502_v1, %v38_v35  ;;  %423 = vst [vmem:[%s1023_s3 + $0x88] sm:$0xff] %v359_v40  ;;  %vm232_vm2 = vcmp.ge.f32.partialorder %v168_v41, 0.0  ;;  %v296_v48 = vmul.f32 0.2, %v168_v41 }
  0x1d   :  { %v172_v49 = vadd.f32 %v507_v2, %v104_v42  ;;  %v173_v50 = vadd.f32 %v507_v2, %v105_v43  ;;  %vm233_vm3 = vcmp.ge.f32.partialorder %v169_v44, 0.0  ;;  %v297_v53 = vmul.f32 0.2, %v169_v44 }
  0x1e   :  { %vm234_vm4 = vcmp.ge.f32.partialorder %v170_v45, 0.0  ;;  %v298_v54 = vmul.f32 0.2, %v170_v45  ;;  %v360_v55 = vsel %vm232_vm2, %v168_v41, %v296_v48  ;;  %vm235_vm5 = vcmp.ge.f32.partialorder %v171_v46, 0.0 }
  0x1f   :  { %v299_v56 = vmul.f32 0.2, %v171_v46  ;;  %vm236_vm6 = vcmp.ge.f32.partialorder %v172_v49, 0.0  ;;  %424 = vst [vmem:[%s1023_s3 + $0x90] sm:$0xff] %v360_v55  ;;  %v361_v59 = vsel %vm233_vm3, %v169_v44, %v297_v53  ;;  %v300_v61 = vmul.f32 0.2, %v172_v49 }
  0x20   :  { %v362_v60 = vsel %vm234_vm4, %v170_v45, %v298_v54  ;;  %vm237_vm7 = vcmp.ge.f32.partialorder %v173_v50, 0.0  ;;  %425 = vst [vmem:[%s1023_s3 + $0x98] sm:$0xff] %v361_v59  ;;  %v301_v63 = vmul.f32 0.2, %v173_v50  ;;  %v174_v0 = vadd.f32 %v507_v2, %v106_v47  ;;  %v50_v44 = vld [vmem:[%s1020_s0 + $0x120] sm:$0xff]  ;;  %v51_v45 = vld [vmem:[%s1020_s0 + $0x128] sm:$0xff] }
  0x21   :  { %v363_v62 = vsel %vm235_vm5, %v171_v46, %v299_v56  ;;  %v107_v3 = vmul.f32 %v502_v1, %v39_v51  ;;  %426 = vst [vmem:[%s1023_s3 + $0xa0] sm:$0xff] %v362_v60  ;;  %v364_v5 = vsel %vm236_vm6, %v172_v49, %v300_v61  ;;  %v108_v6 = vmul.f32 %v502_v1, %v40_v52  ;;  %v52_v46 = vld [vmem:[%s1020_s0 + $0x130] sm:$0xff] }
  0x22   :  { %v109_v7 = vmul.f32 %v502_v1, %v41_v57  ;;  %v110_v8 = vmul.f32 %v502_v1, %v42_v58  ;;  %427 = vst [vmem:[%s1023_s3 + $0xa8] sm:$0xff] %v363_v62  ;;  %v365_v10 = vsel %vm237_vm7, %v173_v50, %v301_v63  ;;  %vm238_vm8 = vcmp.ge.f32.partialorder %v174_v0, 0.0  ;;  %v53_v57 = vld [vmem:[%s1020_s0 + $0x138] sm:$0xff] }
  0x23   :  { %v302_v11 = vmul.f32 0.2, %v174_v0  ;;  %v175_v12 = vadd.f32 %v507_v2, %v107_v3  ;;  %428 = vst [vmem:[%s1023_s3 + $0xb0] sm:$0xff] %v364_v5  ;;  %v176_v13 = vadd.f32 %v507_v2, %v108_v6  ;;  %v111_v16 = vmul.f32 %v502_v1, %v43_v4  ;;  %v54_v5 = vld [vmem:[%s1020_s0 + $0x140] sm:$0xff]  ;;  %v55_v6 = vld [vmem:[%s1020_s0 + $0x148] sm:$0xff] }
  0x24   :  { %v177_v14 = vadd.f32 %v507_v2, %v109_v7  ;;  %v178_v15 = vadd.f32 %v507_v2, %v110_v8  ;;  %429 = vst [vmem:[%s1023_s3 + $0xb8] sm:$0xff] %v365_v10  ;;  %v112_v19 = vmul.f32 %v502_v1, %v44_v9  ;;  %v113_v29 = vmul.f32 %v502_v1, %v45_v20  ;;  %v56_v10 = vld [vmem:[%s1020_s0 + $0x150] sm:$0xff] }
  0x25   :  { %v366_v17 = vsel %vm238_vm8, %v174_v0, %v302_v11  ;;  %vm239_vm9 = vcmp.ge.f32.partialorder %v175_v12, 0.0  ;;  %v303_v18 = vmul.f32 0.2, %v175_v12  ;;  %vm240_vm10 = vcmp.ge.f32.partialorder %v176_v13, 0.0 }
  0x26   :  { %430 = vst [vmem:[%s1023_s3 + $0xc0] sm:$0xff] %v366_v17  ;;  %v304_v22 = vmul.f32 0.2, %v176_v13  ;;  %vm241_vm11 = vcmp.ge.f32.partialorder %v177_v14, 0.0  ;;  %vm242_vm12 = vcmp.ge.f32.partialorder %v178_v15, 0.0  ;;  %v179_v26 = vadd.f32 %v507_v2, %v111_v16 }
  0x27   :  { %v367_v23 = vsel %vm239_vm9, %v175_v12, %v303_v18  ;;  %v305_v24 = vmul.f32 0.2, %v177_v14  ;;  %v306_v25 = vmul.f32 0.2, %v178_v15  ;;  %v180_v28 = vadd.f32 %v507_v2, %v112_v19  ;;  %v58_v18 = vld [vmem:[%s1020_s0 + $0x160] sm:$0xff]  ;;  %v59_v19 = vld [vmem:[%s1020_s0 + $0x168] sm:$0xff] }
  0x28   :  { %431 = vst [vmem:[%s1023_s3 + $0xc8] sm:$0xff] %v367_v23  ;;  %v368_v27 = vsel %vm240_vm10, %v176_v13, %v304_v22  ;;  %v114_v30 = vmul.f32 %v502_v1, %v46_v21  ;;  %vm243_vm13 = vcmp.ge.f32.partialorder %v179_v26, 0.0  ;;  %v307_v36 = vmul.f32 0.2, %v179_v26  ;;  %v57_v13 = vld [vmem:[%s1020_s0 + $0x158] sm:$0xff] }
  0x29   :  { %432 = vst [vmem:[%s1023_s3 + $0xd0] sm:$0xff] %v368_v27  ;;  %v369_v34 = vsel %vm241_vm11, %v177_v14, %v305_v24  ;;  %v370_v35 = vsel %vm242_vm12, %v178_v15, %v306_v25  ;;  %vm244_vm14 = vcmp.ge.f32.partialorder %v180_v28, 0.0  ;;  %v308_v37 = vmul.f32 0.2, %v180_v28 }
  0x2a   :  { %433 = vst [vmem:[%s1023_s3 + $0xd8] sm:$0xff] %v369_v34  ;;  %v181_v38 = vadd.f32 %v507_v2, %v113_v29  ;;  %v182_v39 = vadd.f32 %v507_v2, %v114_v30  ;;  %v371_v40 = vsel %vm243_vm13, %v179_v26, %v307_v36  ;;  %v115_v41 = vmul.f32 %v502_v1, %v47_v31  ;;  %v60_v36 = vld [vmem:[%s1020_s0 + $0x170] sm:$0xff] }
  0x2b   :  { %434 = vst [vmem:[%s1023_s3 + $0xe0] sm:$0xff] %v370_v35  ;;  %v116_v42 = vmul.f32 %v502_v1, %v48_v32  ;;  %v117_v43 = vmul.f32 %v502_v1, %v49_v33  ;;  %v372_v47 = vsel %vm244_vm14, %v180_v28, %v308_v37  ;;  %v118_v54 = vmul.f32 %v502_v1, %v50_v44 }
  0x2c   :  { %435 = vst [vmem:[%s1023_s3 + $0xe8] sm:$0xff] %v371_v40  ;;  %vm245_vm15 = vcmp.ge.f32.partialorder %v181_v38, 0.0  ;;  %v309_v48 = vmul.f32 0.2, %v181_v38  ;;  %vm246_vm0 = vcmp.ge.f32.partialorder %v182_v39, 0.0  ;;  %v183_v50 = vadd.f32 %v507_v2, %v115_v41  ;;  %v61_v40 = vld [vmem:[%s1020_s0 + $0x178] sm:$0xff] }
  0x2d   :  { %436 = vst [vmem:[%s1023_s3 + $0xf0] sm:$0xff] %v372_v47  ;;  %v310_v49 = vmul.f32 0.2, %v182_v39  ;;  %v184_v51 = vadd.f32 %v507_v2, %v116_v42  ;;  %v185_v52 = vadd.f32 %v507_v2, %v117_v43  ;;  %v119_v55 = vmul.f32 %v502_v1, %v51_v45  ;;  %v62_v41 = vld [vmem:[%s1020_s0 + $0x180] sm:$0xff]  ;;  %v63_v42 = vld [vmem:[%s1020_s0 + $0x188] sm:$0xff]  ;;  %v65_v47 = vld [vmem:[%s1020_s0 + $0x198] sm:$0xff] }
  0x2e   :  { %v373_v53 = vsel %vm245_vm15, %v181_v38, %v309_v48  ;;  %v120_v56 = vmul.f32 %v502_v1, %v52_v46  ;;  %vm247_vm1 = vcmp.ge.f32.partialorder %v183_v50, 0.0  ;;  %v311_v59 = vmul.f32 0.2, %v183_v50  ;;  %v64_v46 = vld [vmem:[%s1020_s0 + $0x190] sm:$0xff] }
  0x2f   :  { %437 = vst [vmem:[%s1023_s3 + $0xf8] sm:$0xff] %v373_v53  ;;  %v374_v58 = vsel %vm246_vm0, %v182_v39, %v310_v49  ;;  %vm248_vm2 = vcmp.ge.f32.partialorder %v184_v51, 0.0  ;;  %v312_v60 = vmul.f32 0.2, %v184_v51  ;;  %vm249_vm3 = vcmp.ge.f32.partialorder %v185_v52, 0.0 }
  0x30   :  { %438 = vst [vmem:[%s1023_s3 + $0x100] sm:$0xff] %v374_v58  ;;  %v313_v61 = vmul.f32 0.2, %v185_v52  ;;  %v186_v62 = vadd.f32 %v507_v2, %v118_v54  ;;  %v375_v63 = vsel %vm247_vm1, %v183_v50, %v311_v59  ;;  %v187_v0 = vadd.f32 %v507_v2, %v119_v55 }
  0x31   :  { %v188_v3 = vadd.f32 %v507_v2, %v120_v56  ;;  %v121_v4 = vmul.f32 %v502_v1, %v53_v57  ;;  %439 = vst [vmem:[%s1023_s3 + $0x108] sm:$0xff] %v375_v63  ;;  %v376_v7 = vsel %vm248_vm2, %v184_v51, %v312_v60  ;;  %v122_v16 = vmul.f32 %v502_v1, %v54_v5  ;;  %v66_v51 = vld [vmem:[%s1020_s0 + $0x1a0] sm:$0xff]  ;;  %v67_v5 = vld [vmem:[%s1020_s0 + $0x1a8] sm:$0xff] }
  0x32   :  { %v377_v8 = vsel %vm249_vm3, %v185_v52, %v313_v61  ;;  %vm250_vm4 = vcmp.ge.f32.partialorder %v186_v62, 0.0  ;;  %v314_v9 = vmul.f32 0.2, %v186_v62  ;;  %440 = vst [vmem:[%s1023_s3 + $0x110] sm:$0xff] %v376_v7  ;;  %vm251_vm5 = vcmp.ge.f32.partialorder %v187_v0, 0.0 }
  0x33   :  { %v315_v11 = vmul.f32 0.2, %v187_v0  ;;  %vm252_vm6 = vcmp.ge.f32.partialorder %v188_v3, 0.0  ;;  %v189_v12 = vadd.f32 %v507_v2, %v121_v4  ;;  %441 = vst [vmem:[%s1023_s3 + $0x118] sm:$0xff] %v377_v8  ;;  %v316_v15 = vmul.f32 0.2, %v188_v3 }
  0x34   :  { %v378_v14 = vsel %vm250_vm4, %v186_v62, %v314_v9  ;;  %v123_v17 = vmul.f32 %v502_v1, %v55_v6  ;;  %v124_v22 = vmul.f32 %v502_v1, %v56_v10  ;;  %v190_v24 = vadd.f32 %v507_v2, %v122_v16  ;;  %v68_v6 = vld [vmem:[%s1020_s0 + $0x1b0] sm:$0xff] }
  0x35   :  { %442 = vst [vmem:[%s1023_s3 + $0x120] sm:$0xff] %v378_v14  ;;  %v379_v20 = vsel %vm251_vm5, %v187_v0, %v315_v11  ;;  %vm253_vm7 = vcmp.ge.f32.partialorder %v189_v12, 0.0  ;;  %v317_v21 = vmul.f32 0.2, %v189_v12  ;;  %v380_v23 = vsel %vm252_vm6, %v188_v3, %v316_v15  ;;  %v69_v11 = vld [vmem:[%s1020_s0 + $0x1b8] sm:$0xff] }
  0x36   :  { %443 = vst [vmem:[%s1023_s3 + $0x128] sm:$0xff] %v379_v20  ;;  %v191_v25 = vadd.f32 %v507_v2, %v123_v17  ;;  %v125_v26 = vmul.f32 %v502_v1, %v57_v13  ;;  %v192_v28 = vadd.f32 %v507_v2, %v124_v22  ;;  %v126_v29 = vmul.f32 %v502_v1, %v58_v18  ;;  %v71_v20 = vld [vmem:[%s1020_s0 + $0x1c8] sm:$0xff] }
  0x37   :  { %444 = vst [vmem:[%s1023_s3 + $0x130] sm:$0xff] %v380_v23  ;;  %v381_v27 = vsel %vm253_vm7, %v189_v12, %v317_v21  ;;  %v127_v30 = vmul.f32 %v502_v1, %v59_v19  ;;  %vm254_vm8 = vcmp.ge.f32.partialorder %v190_v24, 0.0  ;;  %v318_v31 = vmul.f32 0.2, %v190_v24  ;;  %v70_v12 = vld [vmem:[%s1020_s0 + $0x1c0] sm:$0xff] }
  0x38   :  { %445 = vst [vmem:[%s1023_s3 + $0x138] sm:$0xff] %v381_v27  ;;  %vm255_vm9 = vcmp.ge.f32.partialorder %v191_v25, 0.0  ;;  %v193_v32 = vadd.f32 %v507_v2, %v125_v26  ;;  %v319_v33 = vmul.f32 0.2, %v191_v25  ;;  %vm256_vm10 = vcmp.ge.f32.partialorder %v192_v28, 0.0 }
  0x39   :  { %v320_v34 = vmul.f32 0.2, %v192_v28  ;;  %v194_v35 = vadd.f32 %v507_v2, %v126_v29  ;;  %v382_v37 = vsel %vm254_vm8, %v190_v24, %v318_v31  ;;  %v195_v39 = vadd.f32 %v507_v2, %v127_v30 }
  0x3a   :  { %vm257_vm11 = vcmp.ge.f32.partialorder %v193_v32, 0.0  ;;  %v321_v38 = vmul.f32 0.2, %v193_v32  ;;  %446 = vst [vmem:[%s1023_s3 + $0x140] sm:$0xff] %v382_v37  ;;  %v383_v43 = vsel %vm255_vm9, %v191_v25, %v319_v33  ;;  %v128_v50 = vmul.f32 %v502_v1, %v60_v36  ;;  %v72_v25 = vld [vmem:[%s1020_s0 + $0x1d0] sm:$0xff]  ;;  %v73_v36 = vld [vmem:[%s1020_s0 + $0x1d8] sm:$0xff] }
  0x3b   :  { %v384_v44 = vsel %vm256_vm10, %v192_v28, %v320_v34  ;;  %vm258_vm12 = vcmp.ge.f32.partialorder %v194_v35, 0.0  ;;  %v322_v45 = vmul.f32 0.2, %v194_v35  ;;  %447 = vst [vmem:[%s1023_s3 + $0x148] sm:$0xff] %v383_v43  ;;  %vm259_vm13 = vcmp.ge.f32.partialorder %v195_v39, 0.0  ;;  %v74_v37 = vld [vmem:[%s1020_s0 + $0x1e0] sm:$0xff] }
  0x3c   :  { %v385_v48 = vsel %vm257_vm11, %v193_v32, %v321_v38  ;;  %v323_v49 = vmul.f32 0.2, %v195_v39  ;;  %448 = vst [vmem:[%s1023_s3 + $0x150] sm:$0xff] %v384_v44  ;;  %v129_v53 = vmul.f32 %v502_v1, %v61_v40  ;;  %v130_v54 = vmul.f32 %v502_v1, %v62_v41 }
  0x3d   :  { %v386_v52 = vsel %vm258_vm12, %v194_v35, %v322_v45  ;;  %v131_v55 = vmul.f32 %v502_v1, %v63_v42  ;;  %449 = vst [vmem:[%s1023_s3 + $0x158] sm:$0xff] %v385_v48  ;;  %v196_v57 = vadd.f32 %v507_v2, %v128_v50  ;;  %v132_v58 = vmul.f32 %v502_v1, %v64_v46  ;;  %v76_v48 = vld [vmem:[%s1020_s0 + $0x1f0] sm:$0xff] }
  0x3e   :  { %v387_v56 = vsel %vm259_vm13, %v195_v39, %v323_v49  ;;  %v133_v59 = vmul.f32 %v502_v1, %v65_v47  ;;  %450 = vst [vmem:[%s1023_s3 + $0x160] sm:$0xff] %v386_v52  ;;  %v197_v60 = vadd.f32 %v507_v2, %v129_v53  ;;  %v198_v61 = vadd.f32 %v507_v2, %v130_v54  ;;  %v75_v47 = vld [vmem:[%s1020_s0 + $0x1e8] sm:$0xff]  ;;  %v77_v49 = vld [vmem:[%s1020_s0 + $0x1f8] sm:$0xff] }
  0x3f   :  { %v199_v62 = vadd.f32 %v507_v2, %v131_v55  ;;  %v134_v63 = vmul.f32 %v502_v1, %v66_v51  ;;  %451 = vst [vmem:[%s1023_s3 + $0x168] sm:$0xff] %v387_v56  ;;  %vm260_vm14 = vcmp.ge.f32.partialorder %v196_v57, 0.0  ;;  %v324_v0 = vmul.f32 0.2, %v196_v57 }
  0x40   :  { %v200_v3 = vadd.f32 %v507_v2, %v132_v58  ;;  %v201_v4 = vadd.f32 %v507_v2, %v133_v59  ;;  %vm261_vm15 = vcmp.ge.f32.partialorder %v197_v60, 0.0  ;;  %v325_v7 = vmul.f32 0.2, %v197_v60 }
  0x41   :  { %vm262_vm0 = vcmp.ge.f32.partialorder %v198_v61, 0.0  ;;  %v326_v8 = vmul.f32 0.2, %v198_v61  ;;  %v388_v9 = vsel %vm260_vm14, %v196_v57, %v324_v0  ;;  %vm263_vm1 = vcmp.ge.f32.partialorder %v199_v62, 0.0 }
  0x42   :  { %v327_v10 = vmul.f32 0.2, %v199_v62  ;;  %vm264_vm2 = vcmp.ge.f32.partialorder %v200_v3, 0.0  ;;  %452 = vst [vmem:[%s1023_s3 + $0x170] sm:$0xff] %v388_v9  ;;  %v389_v13 = vsel %vm261_vm15, %v197_v60, %v325_v7  ;;  %v328_v15 = vmul.f32 0.2, %v200_v3 }
  0x43   :  { %v390_v14 = vsel %vm262_vm0, %v198_v61, %v326_v8  ;;  %vm265_vm3 = vcmp.ge.f32.partialorder %v201_v4, 0.0  ;;  %453 = vst [vmem:[%s1023_s3 + $0x178] sm:$0xff] %v389_v13  ;;  %v329_v17 = vmul.f32 0.2, %v201_v4  ;;  %v202_v18 = vadd.f32 %v507_v2, %v134_v63 }
  0x44   :  { %v391_v16 = vsel %vm263_vm1, %v199_v62, %v327_v10  ;;  %v135_v19 = vmul.f32 %v502_v1, %v67_v5  ;;  %454 = vst [vmem:[%s1023_s3 + $0x180] sm:$0xff] %v390_v14  ;;  %v392_v21 = vsel %vm264_vm2, %v200_v3, %v328_v15  ;;  %v136_v22 = vmul.f32 %v502_v1, %v68_v6 }
  0x45   :  { %v137_v23 = vmul.f32 %v502_v1, %v69_v11  ;;  %v138_v24 = vmul.f32 %v502_v1, %v70_v12  ;;  %455 = vst [vmem:[%s1023_s3 + $0x188] sm:$0xff] %v391_v16  ;;  %v393_v26 = vsel %vm265_vm3, %v201_v4, %v329_v17  ;;  %vm266_vm4 = vcmp.ge.f32.partialorder %v202_v18, 0.0 }
  0x46   :  { %v330_v27 = vmul.f32 0.2, %v202_v18  ;;  %v203_v28 = vadd.f32 %v507_v2, %v135_v19  ;;  %456 = vst [vmem:[%s1023_s3 + $0x190] sm:$0xff] %v392_v21  ;;  %v204_v29 = vadd.f32 %v507_v2, %v136_v22  ;;  %v139_v32 = vmul.f32 %v502_v1, %v71_v20 }
  0x47   :  { %v205_v30 = vadd.f32 %v507_v2, %v137_v23  ;;  %v206_v31 = vadd.f32 %v507_v2, %v138_v24  ;;  %457 = vst [vmem:[%s1023_s3 + $0x198] sm:$0xff] %v393_v26  ;;  %v140_v35 = vmul.f32 %v502_v1, %v72_v25  ;;  %v141_v45 = vmul.f32 %v502_v1, %v73_v36 }
  0x48   :  { %v394_v33 = vsel %vm266_vm4, %v202_v18, %v330_v27  ;;  %vm267_vm5 = vcmp.ge.f32.partialorder %v203_v28, 0.0  ;;  %v331_v34 = vmul.f32 0.2, %v203_v28  ;;  %vm268_vm6 = vcmp.ge.f32.partialorder %v204_v29, 0.0 }
  0x49   :  { %458 = vst [vmem:[%s1023_s3 + $0x1a0] sm:$0xff] %v394_v33  ;;  %v332_v38 = vmul.f32 0.2, %v204_v29  ;;  %vm269_vm7 = vcmp.ge.f32.partialorder %v205_v30, 0.0  ;;  %vm270_vm8 = vcmp.ge.f32.partialorder %v206_v31, 0.0  ;;  %v207_v42 = vadd.f32 %v507_v2, %v139_v32 }
  0x4a   :  { %v395_v39 = vsel %vm267_vm5, %v203_v28, %v331_v34  ;;  %v333_v40 = vmul.f32 0.2, %v205_v30  ;;  %v334_v41 = vmul.f32 0.2, %v206_v31  ;;  %v208_v44 = vadd.f32 %v507_v2, %v140_v35 }
  0x4b   :  { %459 = vst [vmem:[%s1023_s3 + $0x1a8] sm:$0xff] %v395_v39  ;;  %v396_v43 = vsel %vm268_vm6, %v204_v29, %v332_v38  ;;  %v142_v46 = vmul.f32 %v502_v1, %v74_v37  ;;  %vm271_vm9 = vcmp.ge.f32.partialorder %v207_v42, 0.0  ;;  %v335_v52 = vmul.f32 0.2, %v207_v42 }
  0x4c   :  { %460 = vst [vmem:[%s1023_s3 + $0x1b0] sm:$0xff] %v396_v43  ;;  %v397_v50 = vsel %vm269_vm7, %v205_v30, %v333_v40  ;;  %v398_v51 = vsel %vm270_vm8, %v206_v31, %v334_v41  ;;  %vm272_vm10 = vcmp.ge.f32.partialorder %v208_v44, 0.0  ;;  %v336_v53 = vmul.f32 0.2, %v208_v44 }
  0x4d   :  { %461 = vst [vmem:[%s1023_s3 + $0x1b8] sm:$0xff] %v397_v50  ;;  %v209_v54 = vadd.f32 %v507_v2, %v141_v45  ;;  %v210_v55 = vadd.f32 %v507_v2, %v142_v46  ;;  %v399_v56 = vsel %vm271_vm9, %v207_v42, %v335_v52  ;;  %v143_v57 = vmul.f32 %v502_v1, %v75_v47 }
  0x4e   :  { %462 = vst [vmem:[%s1023_s3 + $0x1c0] sm:$0xff] %v398_v51  ;;  %v144_v58 = vmul.f32 %v502_v1, %v76_v48  ;;  %v145_v59 = vmul.f32 %v502_v1, %v77_v49  ;;  %v400_v60 = vsel %vm272_vm10, %v208_v44, %v336_v53 }
  0x4f   :  { %463 = vst [vmem:[%s1023_s3 + $0x1c8] sm:$0xff] %v399_v56  ;;  %vm273_vm11 = vcmp.ge.f32.partialorder %v209_v54, 0.0  ;;  %v337_v61 = vmul.f32 0.2, %v209_v54  ;;  %vm274_vm12 = vcmp.ge.f32.partialorder %v210_v55, 0.0  ;;  %v211_v63 = vadd.f32 %v507_v2, %v143_v57 }
  0x50   :  { %464 = vst [vmem:[%s1023_s3 + $0x1d0] sm:$0xff] %v400_v60  ;;  %v338_v62 = vmul.f32 0.2, %v210_v55  ;;  %v212_v0 = vadd.f32 %v507_v2, %v144_v58  ;;  %v213_v3 = vadd.f32 %v507_v2, %v145_v59 }
  0x51   :  { %v401_v1 = vsel %vm273_vm11, %v209_v54, %v337_v61  ;;  %vm275_vm13 = vcmp.ge.f32.partialorder %v211_v63, 0.0  ;;  %v339_v5 = vmul.f32 0.2, %v211_v63 }
  0x52   :  { %465 = vst [vmem:[%s1023_s3 + $0x1d8] sm:$0xff] %v401_v1  ;;  %v402_v4 = vsel %vm274_vm12, %v210_v55, %v338_v62  ;;  %vm276_vm14 = vcmp.ge.f32.partialorder %v212_v0, 0.0  ;;  %v340_v6 = vmul.f32 0.2, %v212_v0  ;;  %vm277_vm15 = vcmp.ge.f32.partialorder %v213_v3, 0.0 }
  0x53   :  { %466 = vst [vmem:[%s1023_s3 + $0x1e0] sm:$0xff] %v402_v4  ;;  %v341_v7 = vmul.f32 0.2, %v213_v3  ;;  %v403_v8 = vsel %vm275_vm13, %v211_v63, %v339_v5 }
  0x54   :  { %467 = vst [vmem:[%s1023_s3 + $0x1e8] sm:$0xff] %v403_v8  ;;  %v404_v2 = vsel %vm276_vm14, %v212_v0, %v340_v6 }
  0x55   :  { %v405_v9 = vsel %vm277_vm15, %v213_v3, %v341_v7  ;;  %468 = vst [vmem:[%s1023_s3 + $0x1f0] sm:$0xff] %v404_v2 }
  0x56   :  { %469 = vst [vmem:[%s1023_s3 + $0x1f8] sm:$0xff] %v405_v9 }

// kernel: image_discriminator_forward.11
= control target key start
LH: loop header
LB: loop body
LE: loop exit
PB: predicated region body
PF: predicated region fallthrough
CT: control target
= control target key end

     0   :  { %s298_s0 = inlined_call_operand.vmem [shape: f32[128,128], index: 0, kind: input, shape index: {}]   ;;  %s299_s1 = inlined_call_operand.vmem [shape: f32[1,128], index: 1, kind: input, shape index: {}]   ;;  %s300_s2 = inlined_call_operand.vmem [shape: f32[1,128], index: 2, kind: input, shape index: {}]   ;;  %s301_s3 = inlined_call_operand.vmem [shape: f32[128,128], index: 3, kind: output, shape index: {}]  }
   0x1   :  { %v14_v0 = vld [vmem:[%s298_s0] sm:$0xff]  ;;  %v15_v3 = vld [vmem:[%s298_s0 + $0x8] sm:$0xff]  ;;  %v16_v6 = vld [vmem:[%s298_s0 + $0x10] sm:$0xff] }
   0x2   :  { %v166_v1 = vld [vmem:[%s299_s1] ss:$0 sm:$0xff]  ;;  %v17_v7 = vld [vmem:[%s298_s0 + $0x18] sm:$0xff]  ;;  %v19_v12 = vld [vmem:[%s298_s0 + $0x28] sm:$0xff] }
   0x3   :  { %v171_v2 = vld [vmem:[%s300_s2] ss:$0 sm:$0xff]  ;;  %v34_v4 = vmul.f32 %v166_v1, %v14_v0  ;;  %v35_v5 = vmul.f32 %v166_v1, %v15_v3  ;;  %v36_v9 = vmul.f32 %v166_v1, %v16_v6  ;;  %v37_v10 = vmul.f32 %v166_v1, %v17_v7  ;;  %v20_v13 = vld [vmem:[%s298_s0 + $0x30] sm:$0xff]  ;;  %v21_v14 = vld [vmem:[%s298_s0 + $0x38] sm:$0xff] }
   0x4   :  { %v18_v8 = vld [vmem:[%s298_s0 + $0x20] sm:$0xff]  ;;  %v39_v17 = vmul.f32 %v166_v1, %v19_v12  ;;  %v40_v18 = vmul.f32 %v166_v1, %v20_v13  ;;  %v41_v22 = vmul.f32 %v166_v1, %v21_v14  ;;  %v23_v24 = vld [vmem:[%s298_s0 + $0x48] sm:$0xff]  ;;  %v24_v32 = vld [vmem:[%s298_s0 + $0x50] sm:$0xff] }
   0x5   :  { %v38_v11 = vmul.f32 %v166_v1, %v18_v8  ;;  %v54_v15 = vadd.f32 %v171_v2, %v34_v4  ;;  %v55_v16 = vadd.f32 %v171_v2, %v35_v5  ;;  %v56_v19 = vadd.f32 %v171_v2, %v36_v9  ;;  %v22_v23 = vld [vmem:[%s298_s0 + $0x40] sm:$0xff]  ;;  %v25_v41 = vld [vmem:[%s298_s0 + $0x58] sm:$0xff]  ;;  %v27_v52 = vld [vmem:[%s298_s0 + $0x68] sm:$0xff] }
   0x6   :  { %v57_v20 = vadd.f32 %v171_v2, %v37_v10  ;;  %v59_v35 = vadd.f32 %v171_v2, %v39_v17  ;;  %v60_v36 = vadd.f32 %v171_v2, %v40_v18  ;;  %v61_v38 = vadd.f32 %v171_v2, %v41_v22  ;;  %v26_v51 = vld [vmem:[%s298_s0 + $0x60] sm:$0xff]  ;;  %v28_v56 = vld [vmem:[%s298_s0 + $0x70] sm:$0xff]  ;;  %v29_v59 = vld [vmem:[%s298_s0 + $0x78] sm:$0xff] }
   0x7   :  { %v58_v21 = vadd.f32 %v171_v2, %v38_v11  ;;  %vm70_vm0 = vcmp.ge.f32.partialorder %v54_v15, 0.0  ;;  %v86_v25 = vmul.f32 0.2, %v54_v15  ;;  %vm71_vm1 = vcmp.ge.f32.partialorder %v55_v16, 0.0 }
   0x8   :  { %v87_v26 = vmul.f32 0.2, %v55_v16  ;;  %vm72_vm2 = vcmp.ge.f32.partialorder %v56_v19, 0.0  ;;  %v88_v27 = vmul.f32 0.2, %v56_v19  ;;  %vm73_vm3 = vcmp.ge.f32.partialorder %v57_v20, 0.0 }
   0x9   :  { %v89_v28 = vmul.f32 0.2, %v57_v20  ;;  %v102_v29 = vsel %vm70_vm0, %v54_v15, %v86_v25  ;;  %vm74_vm4 = vcmp.ge.f32.partialorder %v58_v21, 0.0  ;;  %v90_v31 = vmul.f32 0.2, %v58_v21 }
   0xa   :  { %v103_v30 = vsel %vm71_vm1, %v55_v16, %v87_v26  ;;  %118 = vst [vmem:[%s301_s3] sm:$0xff] %v102_v29  ;;  %v104_v33 = vsel %vm72_vm2, %v56_v19, %v88_v27  ;;  %v42_v39 = vmul.f32 %v166_v1, %v22_v23  ;;  %v43_v40 = vmul.f32 %v166_v1, %v23_v24 }
   0xb   :  { %v105_v34 = vsel %vm73_vm3, %v57_v20, %v89_v28  ;;  %119 = vst [vmem:[%s301_s3 + $0x8] sm:$0xff] %v103_v30  ;;  %v106_v37 = vsel %vm74_vm4, %v58_v21, %v90_v31  ;;  %vm75_vm5 = vcmp.ge.f32.partialorder %v59_v35, 0.0  ;;  %v91_v42 = vmul.f32 0.2, %v59_v35 }
   0xc   :  { %120 = vst [vmem:[%s301_s3 + $0x10] sm:$0xff] %v104_v33  ;;  %vm76_vm6 = vcmp.ge.f32.partialorder %v60_v36, 0.0  ;;  %v44_v43 = vmul.f32 %v166_v1, %v24_v32  ;;  %v92_v44 = vmul.f32 0.2, %v60_v36  ;;  %vm77_vm7 = vcmp.ge.f32.partialorder %v61_v38, 0.0 }
   0xd   :  { %121 = vst [vmem:[%s301_s3 + $0x18] sm:$0xff] %v105_v34  ;;  %v93_v45 = vmul.f32 0.2, %v61_v38  ;;  %v62_v46 = vadd.f32 %v171_v2, %v42_v39  ;;  %v107_v47 = vsel %vm75_vm5, %v59_v35, %v91_v42  ;;  %v63_v48 = vadd.f32 %v171_v2, %v43_v40 }
   0xe   :  { %122 = vst [vmem:[%s301_s3 + $0x20] sm:$0xff] %v106_v37  ;;  %v64_v49 = vadd.f32 %v171_v2, %v44_v43  ;;  %v45_v50 = vmul.f32 %v166_v1, %v25_v41  ;;  %v108_v53 = vsel %vm76_vm6, %v60_v36, %v92_v44  ;;  %v46_v62 = vmul.f32 %v166_v1, %v26_v51 }
   0xf   :  { %123 = vst [vmem:[%s301_s3 + $0x28] sm:$0xff] %v107_v47  ;;  %v109_v54 = vsel %vm77_vm7, %v61_v38, %v93_v45  ;;  %vm78_vm8 = vcmp.ge.f32.partialorder %v62_v46, 0.0  ;;  %v94_v55 = vmul.f32 0.2, %v62_v46  ;;  %vm79_vm9 = vcmp.ge.f32.partialorder %v63_v48, 0.0 }
  0x10   :  { %124 = vst [vmem:[%s301_s3 + $0x30] sm:$0xff] %v108_v53  ;;  %v95_v57 = vmul.f32 0.2, %v63_v48  ;;  %vm80_vm10 = vcmp.ge.f32.partialorder %v64_v49, 0.0  ;;  %v65_v58 = vadd.f32 %v171_v2, %v45_v50  ;;  %v96_v61 = vmul.f32 0.2, %v64_v49 }
  0x11   :  { %125 = vst [vmem:[%s301_s3 + $0x38] sm:$0xff] %v109_v54  ;;  %v110_v60 = vsel %vm78_vm8, %v62_v46, %v94_v55  ;;  %v47_v63 = vmul.f32 %v166_v1, %v27_v52  ;;  %v48_v4 = vmul.f32 %v166_v1, %v28_v56  ;;  %v66_v6 = vadd.f32 %v171_v2, %v46_v62 }
  0x12   :  { %126 = vst [vmem:[%s301_s3 + $0x40] sm:$0xff] %v110_v60  ;;  %v111_v0 = vsel %vm79_vm9, %v63_v48, %v95_v57  ;;  %vm81_vm11 = vcmp.ge.f32.partialorder %v65_v58, 0.0  ;;  %v97_v3 = vmul.f32 0.2, %v65_v58  ;;  %v112_v5 = vsel %vm80_vm10, %v64_v49, %v96_v61 }
  0x13   :  { %127 = vst [vmem:[%s301_s3 + $0x48] sm:$0xff] %v111_v0  ;;  %v67_v7 = vadd.f32 %v171_v2, %v47_v63  ;;  %v49_v8 = vmul.f32 %v166_v1, %v29_v59  ;;  %v68_v10 = vadd.f32 %v171_v2, %v48_v4  ;;  %vm82_vm12 = vcmp.ge.f32.partialorder %v66_v6, 0.0 }
  0x14   :  { %128 = vst [vmem:[%s301_s3 + $0x50] sm:$0xff] %v112_v5  ;;  %v113_v9 = vsel %vm81_vm11, %v65_v58, %v97_v3  ;;  %v98_v11 = vmul.f32 0.2, %v66_v6 }
  0x15   :  { %129 = vst [vmem:[%s301_s3 + $0x58] sm:$0xff] %v113_v9  ;;  %vm83_vm13 = vcmp.ge.f32.partialorder %v67_v7, 0.0  ;;  %v69_v12 = vadd.f32 %v171_v2, %v49_v8  ;;  %v99_v13 = vmul.f32 0.2, %v67_v7  ;;  %vm84_vm14 = vcmp.ge.f32.partialorder %v68_v10, 0.0 }
  0x16   :  { %v100_v14 = vmul.f32 0.2, %v68_v10  ;;  %v114_v1 = vsel %vm82_vm12, %v66_v6, %v98_v11 }
  0x17   :  { %vm85_vm15 = vcmp.ge.f32.partialorder %v69_v12, 0.0  ;;  %v101_v15 = vmul.f32 0.2, %v69_v12  ;;  %130 = vst [vmem:[%s301_s3 + $0x60] sm:$0xff] %v114_v1  ;;  %v115_v16 = vsel %vm83_vm13, %v67_v7, %v99_v13 }
  0x18   :  { %v116_v17 = vsel %vm84_vm14, %v68_v10, %v100_v14  ;;  %131 = vst [vmem:[%s301_s3 + $0x68] sm:$0xff] %v115_v16 }
  0x19   :  { %v117_v18 = vsel %vm85_vm15, %v69_v12, %v101_v15  ;;  %132 = vst [vmem:[%s301_s3 + $0x70] sm:$0xff] %v116_v17 }
  0x1a   :  { %133 = vst [vmem:[%s301_s3 + $0x78] sm:$0xff] %v117_v18 }

// kernel: image_discriminator_forward.10
= control target key start
LH: loop header
LB: loop body
LE: loop exit
PB: predicated region body
PF: predicated region fallthrough
CT: control target
= control target key end

     0   :  { %s1531_s1 = inlined_call_operand.vmem [shape: bf16[512,128], index: 1, kind: input, shape index: {}]   ;;  %s1532_s0 = inlined_call_operand.vmem [shape: bf16[128,512], index: 0, kind: input, shape index: {}]   ;;  %s1533_s2 = inlined_call_operand.vmem [shape: f32[128,128], index: 2, kind: output, shape index: {0}]   ;;  %s1534_s3 = inlined_call_operand.vmem [shape: f32[8,128], index: 3, kind: output, shape index: {1}]  }
   0x1   :  { %v1140_v0 = vld [vmem:[%s1531_s1 + $0x38] sm:$0xff]  ;;  %v1139_v4 = vld [vmem:[%s1531_s1 + $0x30] sm:$0xff]  ;;  %v1138_v8 = vld [vmem:[%s1531_s1 + $0x28] sm:$0xff] }
   0x2   :  { %v1148_v1 = vld [vmem:[%s1531_s1 + $0x78] sm:$0xff]  ;;  %503 = vmatpush.bf16.msra.mxu0 %v1140_v0  ;;  %v1147_v5 = vld [vmem:[%s1531_s1 + $0x70] sm:$0xff]  ;;  %v1146_v9 = vld [vmem:[%s1531_s1 + $0x68] sm:$0xff] }
   0x3   :  { %v1156_v2 = vld [vmem:[%s1531_s1 + $0xb8] sm:$0xff]  ;;  %552 = vmatpush.bf16.msra.mxu1 %v1148_v1  ;;  %v1155_v6 = vld [vmem:[%s1531_s1 + $0xb0] sm:$0xff]  ;;  %v1154_v10 = vld [vmem:[%s1531_s1 + $0xa8] sm:$0xff] }
   0x4   :  { %v1164_v3 = vld [vmem:[%s1531_s1 + $0xf8] sm:$0xff]  ;;  %601 = vmatpush.bf16.msra.mxu2 %v1156_v2  ;;  %v1163_v7 = vld [vmem:[%s1531_s1 + $0xf0] sm:$0xff]  ;;  %v1162_v11 = vld [vmem:[%s1531_s1 + $0xe8] sm:$0xff] }
   0x5   :  { %650 = vmatpush.bf16.msra.mxu3 %v1164_v3  ;;  %v1137_v12 = vld [vmem:[%s1531_s1 + $0x20] sm:$0xff]  ;;  %v1136_v16 = vld [vmem:[%s1531_s1 + $0x18] sm:$0xff]  ;;  %v1135_v20 = vld [vmem:[%s1531_s1 + $0x10] sm:$0xff] }
   0x6   :  { %504 = vmatpush.bf16.msra.mxu0 %v1139_v4  ;;  %v1145_v13 = vld [vmem:[%s1531_s1 + $0x60] sm:$0xff]  ;;  %v1144_v17 = vld [vmem:[%s1531_s1 + $0x58] sm:$0xff]  ;;  %v1143_v21 = vld [vmem:[%s1531_s1 + $0x50] sm:$0xff] }
   0x7   :  { %553 = vmatpush.bf16.msra.mxu1 %v1147_v5  ;;  %v1153_v14 = vld [vmem:[%s1531_s1 + $0xa0] sm:$0xff]  ;;  %v1152_v18 = vld [vmem:[%s1531_s1 + $0x98] sm:$0xff]  ;;  %v1151_v22 = vld [vmem:[%s1531_s1 + $0x90] sm:$0xff] }
   0x8   :  { %602 = vmatpush.bf16.msra.mxu2 %v1155_v6  ;;  %v1161_v15 = vld [vmem:[%s1531_s1 + $0xe0] sm:$0xff]  ;;  %v1160_v19 = vld [vmem:[%s1531_s1 + $0xd8] sm:$0xff]  ;;  %v1159_v23 = vld [vmem:[%s1531_s1 + $0xd0] sm:$0xff] }
   0x9   :  { %651 = vmatpush.bf16.msra.mxu3 %v1163_v7  ;;  %v1134_v24 = vld [vmem:[%s1531_s1 + $0x8] sm:$0xff]  ;;  %v1133_v28 = vld [vmem:[%s1531_s1] sm:$0xff]  ;;  %v1103_v33 = vld [vmem:[%s1532_s0 + $0xc] sm:$0xf0] }
   0xa   :  { %505 = vmatpush.bf16.msra.mxu0 %v1138_v8  ;;  %v1142_v25 = vld [vmem:[%s1531_s1 + $0x48] sm:$0xff]  ;;  %v1141_v29 = vld [vmem:[%s1531_s1 + $0x40] sm:$0xff]  ;;  %v849_v35 = vld [vmem:[%s1532_s0 + $0x10] sm:$0xf0] }
   0xb   :  { %554 = vmatpush.bf16.msra.mxu1 %v1146_v9  ;;  %v1150_v26 = vld [vmem:[%s1531_s1 + $0x88] sm:$0xff]  ;;  %v1149_v30 = vld [vmem:[%s1531_s1 + $0x80] sm:$0xff]  ;;  %v1104_v37 = vld [vmem:[%s1532_s0 + $0x14] sm:$0xf0] }
   0xc   :  { %603 = vmatpush.bf16.msra.mxu2 %v1154_v10  ;;  %v1158_v27 = vld [vmem:[%s1531_s1 + $0xc8] sm:$0xff]  ;;  %v1157_v31 = vld [vmem:[%s1531_s1 + $0xc0] sm:$0xff]  ;;  %v857_v39 = vld [vmem:[%s1532_s0 + $0x18] sm:$0xf0] }
   0xd   :  { %652 = vmatpush.bf16.msra.mxu3 %v1162_v11  ;;  %v847_v32 = vld [vmem:[%s1532_s0] sm:$0xf]  ;;  %v1101_v34 = vld [vmem:[%s1532_s0 + $0x4] sm:$0xf]  ;;  %v855_v36 = vld [vmem:[%s1532_s0 + $0x8] sm:$0xf] }
   0xe   :  { %506 = vmatpush.bf16.msra.mxu0 %v1137_v12  ;;  %v1102_v38 = vld [vmem:[%s1532_s0 + $0xc] sm:$0xf]  ;;  %v848_v40 = vor.u32 %v1103_v33, %v847_v32  ;;  %v852_v41 = vor.u32 %v1101_v34, %v849_v35  ;;  %v856_v42 = vor.u32 %v1104_v37, %v855_v36  ;;  %v863_v44 = vld [vmem:[%s1532_s0 + $0x20] sm:$0xf]  ;;  %v1107_v45 = vld [vmem:[%s1532_s0 + $0x2c] sm:$0xf0] }
   0xf   :  { %555 = vmatpush.bf16.msra.mxu1 %v1145_v13  ;;  %v860_v43 = vor.u32 %v1102_v38, %v857_v39  ;;  %v1105_v46 = vld [vmem:[%s1532_s0 + $0x24] sm:$0xf]  ;;  %v865_v47 = vld [vmem:[%s1532_s0 + $0x30] sm:$0xf0]  ;;  %v871_v48 = vld [vmem:[%s1532_s0 + $0x28] sm:$0xf]  ;;  %v864_v52 = vor.u32 %v1107_v45, %v863_v44 }
  0x10   :  { %604 = vmatpush.bf16.msra.mxu2 %v1153_v14  ;;  %v1108_v49 = vld [vmem:[%s1532_s0 + $0x34] sm:$0xf0]  ;;  %v1106_v50 = vld [vmem:[%s1532_s0 + $0x2c] sm:$0xf]  ;;  %v873_v51 = vld [vmem:[%s1532_s0 + $0x38] sm:$0xf0]  ;;  %v868_v53 = vor.u32 %v1105_v46, %v865_v47 }
  0x11   :  { %653 = vmatpush.bf16.msra.mxu3 %v1161_v15  ;;  %v872_v54 = vor.u32 %v1108_v49, %v871_v48  ;;  %v876_v55 = vor.u32 %v1106_v50, %v873_v51  ;;  %v879_v56 = vld [vmem:[%s1532_s0 + $0x40] sm:$0xf]  ;;  %v1111_v57 = vld [vmem:[%s1532_s0 + $0x4c] sm:$0xf0]  ;;  %v1109_v58 = vld [vmem:[%s1532_s0 + $0x44] sm:$0xf] }
  0x12   :  { %507 = vmatpush.bf16.msra.mxu0 %v1136_v16  ;;  %v881_v59 = vld [vmem:[%s1532_s0 + $0x50] sm:$0xf0]  ;;  %v887_v60 = vld [vmem:[%s1532_s0 + $0x48] sm:$0xf]  ;;  %v1112_v61 = vld [vmem:[%s1532_s0 + $0x54] sm:$0xf0]  ;;  %v880_v0 = vor.u32 %v1111_v57, %v879_v56 }
  0x13   :  { %556 = vmatpush.bf16.msra.mxu1 %v1144_v17  ;;  %v1110_v62 = vld [vmem:[%s1532_s0 + $0x4c] sm:$0xf]  ;;  %v889_v63 = vld [vmem:[%s1532_s0 + $0x58] sm:$0xf0]  ;;  %v884_v1 = vor.u32 %v1109_v58, %v881_v59  ;;  %v888_v2 = vor.u32 %v1112_v61, %v887_v60  ;;  %v895_v4 = vld [vmem:[%s1532_s0 + $0x60] sm:$0xf] }
  0x14   :  { %605 = vmatpush.bf16.msra.mxu2 %v1152_v18  ;;  %v892_v3 = vor.u32 %v1110_v62, %v889_v63  ;;  %v1115_v5 = vld [vmem:[%s1532_s0 + $0x6c] sm:$0xf0]  ;;  %v1113_v6 = vld [vmem:[%s1532_s0 + $0x64] sm:$0xf]  ;;  %v897_v7 = vld [vmem:[%s1532_s0 + $0x70] sm:$0xf0] }
  0x15   :  { %654 = vmatpush.bf16.msra.mxu3 %v1160_v19  ;;  %v903_v8 = vld [vmem:[%s1532_s0 + $0x68] sm:$0xf]  ;;  %v1116_v9 = vld [vmem:[%s1532_s0 + $0x74] sm:$0xf0]  ;;  %v1114_v10 = vld [vmem:[%s1532_s0 + $0x6c] sm:$0xf]  ;;  %v896_v12 = vor.u32 %v1115_v5, %v895_v4  ;;  %v900_v13 = vor.u32 %v1113_v6, %v897_v7 }
  0x16   :  { %508 = vmatpush.bf16.msra.mxu0 %v1135_v20  ;;  %v905_v11 = vld [vmem:[%s1532_s0 + $0x78] sm:$0xf0]  ;;  %v904_v14 = vor.u32 %v1116_v9, %v903_v8  ;;  %v911_v16 = vld [vmem:[%s1532_s0 + $0x80] sm:$0xf]  ;;  %v1119_v17 = vld [vmem:[%s1532_s0 + $0x8c] sm:$0xf0] }
  0x17   :  { %557 = vmatpush.bf16.msra.mxu1 %v1143_v21  ;;  %v908_v15 = vor.u32 %v1114_v10, %v905_v11  ;;  %v1117_v18 = vld [vmem:[%s1532_s0 + $0x84] sm:$0xf]  ;;  %v913_v19 = vld [vmem:[%s1532_s0 + $0x90] sm:$0xf0]  ;;  %v919_v20 = vld [vmem:[%s1532_s0 + $0x88] sm:$0xf] }
  0x18   :  { %606 = vmatpush.bf16.msra.mxu2 %v1151_v22  ;;  %v1120_v21 = vld [vmem:[%s1532_s0 + $0x94] sm:$0xf0]  ;;  %v1118_v22 = vld [vmem:[%s1532_s0 + $0x8c] sm:$0xf]  ;;  %v935_v32 = vld [vmem:[%s1532_s0 + $0xa8] sm:$0xf] }
  0x19   :  { %655 = vmatpush.bf16.msra.mxu3 %v1159_v23  ;;  %v921_v23 = vld [vmem:[%s1532_s0 + $0x98] sm:$0xf0]  ;;  %v1124_v33 = vld [vmem:[%s1532_s0 + $0xb4] sm:$0xf0]  ;;  %v1122_v34 = vld [vmem:[%s1532_s0 + $0xac] sm:$0xf] }
  0x1a   :  { %509 = vmatpush.bf16.msra.mxu0 %v1134_v24  ;;  %v912_v24 = vor.u32 %v1119_v17, %v911_v16  ;;  %v937_v35 = vld [vmem:[%s1532_s0 + $0xb8] sm:$0xf0]  ;;  %v936_v38 = vor.u32 %v1124_v33, %v935_v32  ;;  %v951_v44 = vld [vmem:[%s1532_s0 + $0xc8] sm:$0xf]  ;;  %v1128_v45 = vld [vmem:[%s1532_s0 + $0xd4] sm:$0xf0] }
  0x1b   :  { %558 = vmatpush.bf16.msra.mxu1 %v1142_v25  ;;  %v916_v25 = vor.u32 %v1117_v18, %v913_v19  ;;  %v940_v39 = vor.u32 %v1122_v34, %v937_v35  ;;  %v1126_v46 = vld [vmem:[%s1532_s0 + $0xcc] sm:$0xf]  ;;  %v953_v47 = vld [vmem:[%s1532_s0 + $0xd8] sm:$0xf0]  ;;  %v952_v50 = vor.u32 %v1128_v45, %v951_v44  ;;  %v967_v56 = vld [vmem:[%s1532_s0 + $0xe8] sm:$0xf] }
  0x1c   :  { %607 = vmatpush.bf16.msra.mxu2 %v1150_v26  ;;  %v920_v26 = vor.u32 %v1120_v21, %v919_v20  ;;  %v956_v51 = vor.u32 %v1126_v46, %v953_v47  ;;  %v1132_v57 = vld [vmem:[%s1532_s0 + $0xf4] sm:$0xf0]  ;;  %v1130_v58 = vld [vmem:[%s1532_s0 + $0xec] sm:$0xf]  ;;  %v969_v59 = vld [vmem:[%s1532_s0 + $0xf8] sm:$0xf0] }
  0x1d   :  { %656 = vmatpush.bf16.msra.mxu3 %v1158_v27  ;;  %v924_v27 = vor.u32 %v1118_v22, %v921_v23  ;;  %v968_v62 = vor.u32 %v1132_v57, %v967_v56  ;;  %v972_v63 = vor.u32 %v1130_v58, %v969_v59 }
  0x1e   :  { %510 = vmatpush.bf16.msra.mxu0 %v1133_v28  ;;  %v927_v28 = vld [vmem:[%s1532_s0 + $0xa0] sm:$0xf] }
  0x1f   :  { %559 = vmatpush.bf16.msra.mxu1 %v1141_v29  ;;  %v1123_v29 = vld [vmem:[%s1532_s0 + $0xac] sm:$0xf0] }
  0x20   :  { %608 = vmatpush.bf16.msra.mxu2 %v1149_v30  ;;  %v1121_v30 = vld [vmem:[%s1532_s0 + $0xa4] sm:$0xf]  ;;  %v928_v36 = vor.u32 %v1123_v29, %v927_v28 }
  0x21   :  { %657 = vmatpush.bf16.msra.mxu3 %v1157_v31  ;;  %511 = vmatmul.bf16.vlgmr.msra.gmra.mxu0 %v848_v40  ;;  %v929_v31 = vld [vmem:[%s1532_s0 + $0xb0] sm:$0xf0]  ;;  %v943_v40 = vld [vmem:[%s1532_s0 + $0xc0] sm:$0xf] }
  0x22   :  { %560 = vmatmul.bf16.vlgmr.msra.gmra.mxu1 %v852_v41  ;;  %v932_v37 = vor.u32 %v1121_v30, %v929_v31  ;;  %v1127_v41 = vld [vmem:[%s1532_s0 + $0xcc] sm:$0xf0] }
  0x23   :  { %609 = vmatmul.bf16.vlgmr.msra.gmra.mxu2 %v856_v42  ;;  %v1125_v42 = vld [vmem:[%s1532_s0 + $0xc4] sm:$0xf]  ;;  %v944_v48 = vor.u32 %v1127_v41, %v943_v40 }
  0x24   :  { %658 = vmatmul.bf16.vlgmr.msra.gmra.mxu3 %v860_v43  ;;  %v945_v43 = vld [vmem:[%s1532_s0 + $0xd0] sm:$0xf0] }
  0x25   :  { %v948_v49 = vor.u32 %v1125_v42, %v945_v43 }
  0x31   :  { %516 = vmatmul.bf16.gmra.mxu0 %v864_v52  ;;  %v959_v52 = vld [vmem:[%s1532_s0 + $0xe0] sm:$0xf] }
  0x32   :  { %565 = vmatmul.bf16.gmra.mxu1 %v868_v53  ;;  %v1131_v53 = vld [vmem:[%s1532_s0 + $0xec] sm:$0xf0] }
  0x33   :  { %614 = vmatmul.bf16.gmra.mxu2 %v872_v54  ;;  %v1129_v54 = vld [vmem:[%s1532_s0 + $0xe4] sm:$0xf]  ;;  %v960_v60 = vor.u32 %v1131_v53, %v959_v52 }
  0x34   :  { %663 = vmatmul.bf16.gmra.mxu3 %v876_v55  ;;  %v961_v55 = vld [vmem:[%s1532_s0 + $0xf0] sm:$0xf0] }
  0x35   :  { %v964_v61 = vor.u32 %v1129_v54, %v961_v55 }
  0x41   :  { %521 = vmatmul.bf16.gmra.mxu0 %v880_v0 }
  0x42   :  { %570 = vmatmul.bf16.gmra.mxu1 %v884_v1 }
  0x43   :  { %619 = vmatmul.bf16.gmra.mxu2 %v888_v2 }
  0x44   :  { %668 = vmatmul.bf16.gmra.mxu3 %v892_v3 }
  0x51   :  { %526 = vmatmul.bf16.gmra.mxu0 %v896_v12 }
  0x52   :  { %575 = vmatmul.bf16.gmra.mxu1 %v900_v13 }
  0x53   :  { %624 = vmatmul.bf16.gmra.mxu2 %v904_v14 }
  0x54   :  { %673 = vmatmul.bf16.gmra.mxu3 %v908_v15 }
  0x61   :  { %531 = vmatmul.bf16.gmra.mxu0 %v912_v24 }
  0x62   :  { %580 = vmatmul.bf16.gmra.mxu1 %v916_v25 }
  0x63   :  { %629 = vmatmul.bf16.gmra.mxu2 %v920_v26 }
  0x64   :  { %678 = vmatmul.bf16.gmra.mxu3 %v924_v27 }
  0x71   :  { %536 = vmatmul.bf16.gmra.mxu0 %v928_v36 }
  0x72   :  { %585 = vmatmul.bf16.gmra.mxu1 %v932_v37 }
  0x73   :  { %634 = vmatmul.bf16.gmra.mxu2 %v936_v38 }
  0x74   :  { %683 = vmatmul.bf16.gmra.mxu3 %v940_v39 }
  0x81   :  { %541 = vmatmul.bf16.gmra.mxu0 %v944_v48 }
  0x82   :  { %590 = vmatmul.bf16.gmra.mxu1 %v948_v49 }
  0x83   :  { %639 = vmatmul.bf16.gmra.mxu2 %v952_v50 }
  0x84   :  { %688 = vmatmul.bf16.gmra.mxu3 %v956_v51 }
  0x91   :  { %546 = vmatmul.bf16.gmra.mxu0 %v960_v60 }
  0x92   :  { %595 = vmatmul.bf16.gmra.mxu1 %v964_v61 }
  0x93   :  { %644 = vmatmul.bf16.gmra.mxu2 %v968_v62 }
  0x94   :  { %693 = vmatmul.bf16.gmra.mxu3 %v972_v63 }
  0x9e   :  { %v512_v0 = vpop.f32.mrf.mxu0 }
  0x9f   :  { %v561_v1 = vpop.f32.mrf.mxu1 }
  0xa0   :  { %v562_v2 = vadd.f32 %v561_v1, %v512_v0 }
  0xa6   :  { %v610_v3 = vpop.f32.mrf.mxu2  ;;  %v514_v6 = vpop.f32.mrf.mxu0 }
  0xa7   :  { %v659_v4 = vpop.f32.mrf.mxu3  ;;  %v611_v5 = vadd.f32 %v610_v3, %v562_v2  ;;  %v563_v7 = vpop.f32.mrf.mxu1 }
  0xa8   :  { %v564_v9 = vadd.f32 %v563_v7, %v514_v6 }
  0xa9   :  { %v660_v8 = vadd.f32 %v659_v4, %v611_v5 }
  0xab   :  { %750 = vst [vmem:[%s1533_s2] sm:$0xff] %v660_v8  ;;  %v787_v16 = vmul.f32 %v660_v8, %v660_v8 }
  0xae   :  { %v612_v10 = vpop.f32.mrf.mxu2  ;;  %v517_v13 = vpop.f32.mrf.mxu0 }
  0xaf   :  { %v661_v11 = vpop.f32.mrf.mxu3  ;;  %v613_v12 = vadd.f32 %v612_v10, %v564_v9  ;;  %v566_v14 = vpop.f32.mrf.mxu1 }
  0xb0   :  { %v567_v19 = vadd.f32 %v566_v14, %v517_v13 }
  0xb1   :  { %v662_v15 = vadd.f32 %v661_v11, %v613_v12 }
  0xb3   :  { %751 = vst [vmem:[%s1533_s2 + $0x8] sm:$0xff] %v662_v15  ;;  %v766_v17 = vadd.f32 %v662_v15, %v660_v8  ;;  %v788_v18 = vmul.f32 %v662_v15, %v662_v15 }
  0xb5   :  { %v803_v20 = vadd.f32 %v788_v18, %v787_v16 }
  0xb6   :  { %v615_v21 = vpop.f32.mrf.mxu2  ;;  %v519_v24 = vpop.f32.mrf.mxu0 }
  0xb7   :  { %v664_v22 = vpop.f32.mrf.mxu3  ;;  %v616_v23 = vadd.f32 %v615_v21, %v567_v19  ;;  %v568_v25 = vpop.f32.mrf.mxu1 }
  0xb8   :  { %v569_v30 = vadd.f32 %v568_v25, %v519_v24 }
  0xb9   :  { %v665_v26 = vadd.f32 %v664_v22, %v616_v23 }
  0xbb   :  { %752 = vst [vmem:[%s1533_s2 + $0x10] sm:$0xff] %v665_v26  ;;  %v767_v27 = vadd.f32 %v766_v17, %v665_v26  ;;  %v789_v28 = vmul.f32 %v665_v26, %v665_v26 }
  0xbd   :  { %v804_v29 = vadd.f32 %v803_v20, %v789_v28 }
  0xbe   :  { %v617_v31 = vpop.f32.mrf.mxu2  ;;  %v522_v34 = vpop.f32.mrf.mxu0 }
  0xbf   :  { %v666_v32 = vpop.f32.mrf.mxu3  ;;  %v618_v33 = vadd.f32 %v617_v31, %v569_v30  ;;  %v571_v35 = vpop.f32.mrf.mxu1 }
  0xc0   :  { %v572_v39 = vadd.f32 %v571_v35, %v522_v34 }
  0xc1   :  { %v667_v36 = vadd.f32 %v666_v32, %v618_v33 }
  0xc3   :  { %753 = vst [vmem:[%s1533_s2 + $0x18] sm:$0xff] %v667_v36  ;;  %v768_v37 = vadd.f32 %v767_v27, %v667_v36  ;;  %v790_v38 = vmul.f32 %v667_v36, %v667_v36 }
  0xc5   :  { %v805_v40 = vadd.f32 %v804_v29, %v790_v38 }
  0xc6   :  { %v620_v41 = vpop.f32.mrf.mxu2  ;;  %v524_v44 = vpop.f32.mrf.mxu0 }
  0xc7   :  { %v669_v42 = vpop.f32.mrf.mxu3  ;;  %v621_v43 = vadd.f32 %v620_v41, %v572_v39  ;;  %v573_v45 = vpop.f32.mrf.mxu1 }
  0xc8   :  { %v574_v50 = vadd.f32 %v573_v45, %v524_v44 }
  0xc9   :  { %v670_v46 = vadd.f32 %v669_v42, %v621_v43 }
  0xcb   :  { %754 = vst [vmem:[%s1533_s2 + $0x20] sm:$0xff] %v670_v46  ;;  %v769_v47 = vadd.f32 %v768_v37, %v670_v46  ;;  %v791_v48 = vmul.f32 %v670_v46, %v670_v46 }
  0xcd   :  { %v1489_v49 = vadd.f32 %v805_v40, %v791_v48 }
  0xce   :  { %v622_v51 = vpop.f32.mrf.mxu2  ;;  %v527_v54 = vpop.f32.mrf.mxu0 }
  0xcf   :  { %v671_v52 = vpop.f32.mrf.mxu3  ;;  %v623_v53 = vadd.f32 %v622_v51, %v574_v50  ;;  %v576_v55 = vpop.f32.mrf.mxu1 }
  0xd0   :  { %v577_v58 = vadd.f32 %v576_v55, %v527_v54 }
  0xd1   :  { %v672_v56 = vadd.f32 %v671_v52, %v623_v53 }
  0xd3   :  { %755 = vst [vmem:[%s1533_s2 + $0x28] sm:$0xff] %v672_v56  ;;  %v1494_v57 = vadd.f32 %v769_v47, %v672_v56  ;;  %v792_v43 = vmul.f32 %v672_v56, %v672_v56 }
  0xd5   :  { %v807_v52 = vadd.f32 %v1489_v49, %v792_v43 }
  0xd6   :  { %v625_v59 = vpop.f32.mrf.mxu2  ;;  %v529_v62 = vpop.f32.mrf.mxu0 }
  0xd7   :  { %v674_v60 = vpop.f32.mrf.mxu3  ;;  %v626_v61 = vadd.f32 %v625_v59, %v577_v58  ;;  %v578_v63 = vpop.f32.mrf.mxu1 }
  0xd8   :  { %v579_v1 = vadd.f32 %v578_v63, %v529_v62 }
  0xd9   :  { %v675_v0 = vadd.f32 %v674_v60, %v626_v61 }
  0xdb   :  { %756 = vst [vmem:[%s1533_s2 + $0x30] sm:$0xff] %v675_v0  ;;  %v793_v47 = vmul.f32 %v675_v0, %v675_v0  ;;  %v771_v53 = vadd.f32 %v1494_v57, %v675_v0 }
  0xdd   :  { %v808_v58 = vadd.f32 %v807_v52, %v793_v47 }
  0xde   :  { %v627_v2 = vpop.f32.mrf.mxu2  ;;  %v532_v5 = vpop.f32.mrf.mxu0 }
  0xdf   :  { %v676_v3 = vpop.f32.mrf.mxu3  ;;  %v628_v4 = vadd.f32 %v627_v2, %v579_v1  ;;  %v581_v6 = vpop.f32.mrf.mxu1 }
  0xe0   :  { %v582_v8 = vadd.f32 %v581_v6, %v532_v5 }
  0xe1   :  { %v677_v7 = vadd.f32 %v676_v3, %v628_v4 }
  0xe3   :  { %757 = vst [vmem:[%s1533_s2 + $0x38] sm:$0xff] %v677_v7  ;;  %v794_v54 = vmul.f32 %v677_v7, %v677_v7  ;;  %v772_v59 = vadd.f32 %v771_v53, %v677_v7 }
  0xe5   :  { %v809_v61 = vadd.f32 %v808_v58, %v794_v54 }
  0xe6   :  { %v630_v9 = vpop.f32.mrf.mxu2  ;;  %v534_v12 = vpop.f32.mrf.mxu0 }
  0xe7   :  { %v679_v10 = vpop.f32.mrf.mxu3  ;;  %v631_v11 = vadd.f32 %v630_v9, %v582_v8  ;;  %v583_v13 = vpop.f32.mrf.mxu1 }
  0xe8   :  { %v584_v15 = vadd.f32 %v583_v13, %v534_v12 }
  0xe9   :  { %v680_v14 = vadd.f32 %v679_v10, %v631_v11 }
  0xeb   :  { %758 = vst [vmem:[%s1533_s2 + $0x40] sm:$0xff] %v680_v14  ;;  %v795_v60 = vmul.f32 %v680_v14, %v680_v14  ;;  %v773_v62 = vadd.f32 %v772_v59, %v680_v14 }
  0xed   :  { %v810_v3 = vadd.f32 %v809_v61, %v795_v60 }
  0xee   :  { %v632_v16 = vpop.f32.mrf.mxu2  ;;  %v537_v19 = vpop.f32.mrf.mxu0 }
  0xef   :  { %v681_v17 = vpop.f32.mrf.mxu3  ;;  %v633_v18 = vadd.f32 %v632_v16, %v584_v15  ;;  %v586_v20 = vpop.f32.mrf.mxu1 }
  0xf0   :  { %v587_v22 = vadd.f32 %v586_v20, %v537_v19 }
  0xf1   :  { %v682_v21 = vadd.f32 %v681_v17, %v633_v18 }
  0xf3   :  { %759 = vst [vmem:[%s1533_s2 + $0x48] sm:$0xff] %v682_v21  ;;  %v796_v63 = vmul.f32 %v682_v21, %v682_v21  ;;  %v774_v4 = vadd.f32 %v773_v62, %v682_v21 }
  0xf5   :  { %v811_v57 = vadd.f32 %v810_v3, %v796_v63 }
  0xf6   :  { %v635_v23 = vpop.f32.mrf.mxu2  ;;  %v539_v26 = vpop.f32.mrf.mxu0 }
  0xf7   :  { %v684_v24 = vpop.f32.mrf.mxu3  ;;  %v636_v25 = vadd.f32 %v635_v23, %v587_v22  ;;  %v588_v27 = vpop.f32.mrf.mxu1 }
  0xf8   :  { %v589_v29 = vadd.f32 %v588_v27, %v539_v26 }
  0xf9   :  { %v685_v28 = vadd.f32 %v684_v24, %v636_v25 }
  0xfb   :  { %760 = vst [vmem:[%s1533_s2 + $0x50] sm:$0xff] %v685_v28  ;;  %v797_v49 = vmul.f32 %v685_v28, %v685_v28  ;;  %v775_v0 = vadd.f32 %v774_v4, %v685_v28 }
  0xfd   :  { %v812_v10 = vadd.f32 %v811_v57, %v797_v49 }
  0xfe   :  { %v637_v30 = vpop.f32.mrf.mxu2  ;;  %v542_v33 = vpop.f32.mrf.mxu0 }
  0xff   :  { %v686_v31 = vpop.f32.mrf.mxu3  ;;  %v638_v32 = vadd.f32 %v637_v30, %v589_v29  ;;  %v591_v34 = vpop.f32.mrf.mxu1 }
 0x100   :  { %v592_v36 = vadd.f32 %v591_v34, %v542_v33  ;;  %v824_v33 = vlaneseq }
 0x101   :  { %v687_v35 = vadd.f32 %v686_v31, %v638_v32 }
 0x103   :  { %761 = vst [vmem:[%s1533_s2 + $0x58] sm:$0xff] %v687_v35  ;;  %v798_v6 = vmul.f32 %v687_v35, %v687_v35  ;;  %v776_v11 = vadd.f32 %v775_v0, %v687_v35 }
 0x105   :  { %v813_v13 = vadd.f32 %v812_v10, %v798_v6 }
 0x106   :  { %v640_v37 = vpop.f32.mrf.mxu2  ;;  %v544_v40 = vpop.f32.mrf.mxu0 }
 0x107   :  { %v689_v38 = vpop.f32.mrf.mxu3  ;;  %v641_v39 = vadd.f32 %v640_v37, %v592_v36  ;;  %v593_v41 = vpop.f32.mrf.mxu1 }
 0x108   :  { %v594_v44 = vadd.f32 %v593_v41, %v544_v40 }
 0x109   :  { %v690_v42 = vadd.f32 %v689_v38, %v641_v39  ;;  %v825_v38 = vshrl.u32 %v824_v33, 7 }
 0x10b   :  { %762 = vst [vmem:[%s1533_s2 + $0x60] sm:$0xff] %v690_v42  ;;  %v799_v12 = vmul.f32 %v690_v42, %v690_v42  ;;  %v777_v14 = vadd.f32 %v776_v11, %v690_v42  ;;  %vm827_vm0 = vcmp.eq.s32.totalorder %v825_v38, 1  ;;  %vm826_vm1 = vcmp.eq.s32.totalorder %v825_v38, 0 }
 0x10d   :  { %v814_v18 = vadd.f32 %v813_v13, %v799_v12 }
 0x10e   :  { %v642_v45 = vpop.f32.mrf.mxu2  ;;  %v547_v50 = vpop.f32.mrf.mxu0 }
 0x10f   :  { %v691_v46 = vpop.f32.mrf.mxu3  ;;  %v643_v48 = vadd.f32 %v642_v45, %v594_v44  ;;  %v596_v51 = vpop.f32.mrf.mxu1 }
 0x110   :  { %v597_v56 = vadd.f32 %v596_v51, %v547_v50 }
 0x111   :  { %v692_v55 = vadd.f32 %v691_v46, %v643_v48 }
 0x113   :  { %763 = vst [vmem:[%s1533_s2 + $0x68] sm:$0xff] %v692_v55  ;;  %v800_v15 = vmul.f32 %v692_v55, %v692_v55  ;;  %v778_v19 = vadd.f32 %v777_v14, %v692_v55 }
 0x115   :  { %v815_v23 = vadd.f32 %v814_v18, %v800_v15 }
 0x116   :  { %v645_v1 = vpop.f32.mrf.mxu2  ;;  %v549_v7 = vpop.f32.mrf.mxu0 }
 0x117   :  { %v694_v2 = vpop.f32.mrf.mxu3  ;;  %v646_v5 = vadd.f32 %v645_v1, %v597_v56  ;;  %v598_v9 = vpop.f32.mrf.mxu1 }
 0x118   :  { %v599_v16 = vadd.f32 %v598_v9, %v549_v7 }
 0x119   :  { %v695_v8 = vadd.f32 %v694_v2, %v646_v5 }
 0x11b   :  { %764 = vst [vmem:[%s1533_s2 + $0x70] sm:$0xff] %v695_v8  ;;  %v801_v20 = vmul.f32 %v695_v8, %v695_v8  ;;  %v779_v24 = vadd.f32 %v778_v19, %v695_v8 }
 0x11d   :  { %v816_v26 = vadd.f32 %v815_v23, %v801_v20 }
 0x11e   :  { %v647_v17 = vpop.f32.mrf.mxu2 }
 0x11f   :  { %v648_v21 = vadd.f32 %v647_v17, %v599_v16  ;;  %v696_v22 = vpop.f32.mrf.mxu3 }
 0x121   :  { %v697_v25 = vadd.f32 %v696_v22, %v648_v21 }
 0x123   :  { %765 = vst [vmem:[%s1533_s2 + $0x78] sm:$0xff] %v697_v25  ;;  %v780_v27 = vadd.f32 %v779_v24, %v697_v25  ;;  %v802_v28 = vmul.f32 %v697_v25, %v697_v25 }
 0x125   :  { %v781_v29 = vrot.slane %v780_v27, 4  ;;  %v817_v30 = vadd.f32 %v816_v26, %v802_v28 }
 0x127   :  { %v782_v31 = vadd.f32 %v781_v29, %v780_v27  ;;  %v818_v32 = vrot.slane %v817_v30, 4 }
 0x129   :  { %v783_v34 = vrot.slane %v782_v31, 2  ;;  %v819_v35 = vadd.f32 %v818_v32, %v817_v30 }
 0x12b   :  { %v784_v36 = vadd.f32 %v783_v34, %v782_v31  ;;  %v820_v37 = vrot.slane %v819_v35, 2 }
 0x12d   :  { %v821_v39 = vadd.f32 %v820_v37, %v819_v35  ;;  %v785_v40 = vrot.slane %v784_v36, 1 }
 0x12f   :  { %v822_v41 = vrot.slane %v821_v39, 1  ;;  %v786_v43 = vadd.f32 %v785_v40, %v784_v36 }
 0x131   :  { %v823_v42 = vadd.f32 %v822_v41, %v821_v39 }
 0x133   :  { %v830_v44 = vsel %vm827_vm0, %v823_v42, 0.0 }
 0x134   :  { %v833_v45 = vsel %vm826_vm1, %v786_v43, %v830_v44 }
 0x135   :  { %836 = vst [vmem:[%s1534_s3] sm:$0xff] %v833_v45 }

// kernel: image_discriminator_forward.12
= control target key start
LH: loop header
LB: loop body
LE: loop exit
PB: predicated region body
PF: predicated region fallthrough
CT: control target
= control target key end

     0   :  { %s1728_s12 = smov 0   ;;  %s1730_s13 = smov 0   ;;  %s2023_s0 = inlined_call_operand.vmem [shape: bf16[128,1024], index: 0, kind: input, shape index: {}]   ;;  %s2024_s1 = inlined_call_operand.vmem [shape: bf16[1024,128], index: 1, kind: input, shape index: {}]   ;;  %s2025_s2 = inlined_call_operand.vmem [shape: f32[128,128], index: 2, kind: output, shape index: {0}]   ;;  %s2026_s3 = inlined_call_operand.vmem [shape: f32[8,128], index: 3, kind: output, shape index: {1}]  }
   0x1   :  { %s1732_s14 = smov 0   ;;  %s1734_s15 = smov 0  }
   0x2   :  { %s1736_s16 = smov 0  }
   0x3 LB: > { %s26_s17 = sadd.s32 1, %s1700_s15  ;;  %p49_p1 = scmp.ne.s32.totalorder %s1692_s13, %s1688_s12  ;;  %s1704_s16 = sphi %s1736_s16, %s14_s16   ;;  %s1700_s15 = sphi %s1734_s15, %s2030_s15   ;;  %s1696_s14 = sphi %s1732_s14, %s2029_s14   ;;  %s1692_s13 = sphi %s1730_s13, %s2028_s13   ;;  %s1688_s12 = sphi %s1728_s12, %s2027_s12  }
   0x4   : > { %p27_p0 = scmp.ge.s32.totalorder %s26_s17, 2  ;;  %p50_p2 = scmp.eq.s32.totalorder %s1704_s16, 0 }
   0x5   : > { %s42_s19 = sadd.s32 1, %s1692_s13  ;;  %p1286_p5 = scmp.ge.s32.totalorder %s1704_s16, 2 }
   0x6   : > { %s2032_s17 = smov (%p27_p0, %s26_s17), 0  ;;  %p51_p3 = por %p50_p2, %p49_p1 }
   0x7   : > { %s38_s18 = ssub.s32 %s1700_s15, %s2032_s17  ;;  %157 = sbr.rel (%p1286_p5) target bundleno = 48 (0x30), region = 16 }
   0x8   : > { %p40_p4 = scmp.eq.s32.totalorder %s38_s18, 0 }
   0xa   : > { %s1763_s20 = scalar_select %p40_p4, %s1692_s13, %s42_s19  }
   0xc   : > { %160 = sbr.rel (!%p51_p3) target bundleno = 48 (0x30), region = 20  ;;  %s162_s21 = sand.u32 (%p51_p3), 1, %s1692_s13  }
   0xd   : > { %s1558_s22 = sshll.u32 (%p51_p3), %s1700_s15, 4  ;;  %s1287_s23 = sshll.u32 (%p51_p3), %s162_s21, 8 }
   0xe   : > { %s1771_s26 = scalar_lea.vmem (%p51_p3), %s2023_s0, %s1558_s22  ;;  %s1776_s27 = scalar_lea.vmem (%p51_p3), [#allocation3], %s1287_s23 }
   0xf   : > { %v183_v0 = vld [vmem:[%s1771_s26] sm:$0xff] (%p51_p3)  ;;  %v185_v1 = vld [vmem:[%s1771_s26 + $0x8] sm:$0xff] (%p51_p3) }
  0x10   : > { %v187_v2 = vld [vmem:[%s1771_s26 + $0x20] sm:$0xff] (%p51_p3)  ;;  %184 = vst [vmem:[%s1776_s27] sm:$0xff] (%p51_p3), %v183_v0  ;;  %v189_v3 = vld [vmem:[%s1771_s26 + $0x28] sm:$0xff] (%p51_p3) }
  0x11   : > { %186 = vst [vmem:[%s1776_s27 + $0x8] sm:$0xff] %v185_v1  ;;  %v191_v4 = vld [vmem:[%s1771_s26 + $0x40] sm:$0xff]  ;;  %v193_v5 = vld [vmem:[%s1771_s26 + $0x48] sm:$0xff] }
  0x12   : > { %188 = vst [vmem:[%s1776_s27 + $0x10] sm:$0xff] %v187_v2  ;;  %v195_v6 = vld [vmem:[%s1771_s26 + $0x60] sm:$0xff]  ;;  %v197_v7 = vld [vmem:[%s1771_s26 + $0x68] sm:$0xff] }
  0x13   : > { %190 = vst [vmem:[%s1776_s27 + $0x18] sm:$0xff] %v189_v3  ;;  %v199_v8 = vld [vmem:[%s1771_s26 + $0x80] sm:$0xff]  ;;  %v201_v9 = vld [vmem:[%s1771_s26 + $0x88] sm:$0xff] }
  0x14   : > { %192 = vst [vmem:[%s1776_s27 + $0x20] sm:$0xff] %v191_v4  ;;  %v203_v10 = vld [vmem:[%s1771_s26 + $0xa0] sm:$0xff]  ;;  %v205_v11 = vld [vmem:[%s1771_s26 + $0xa8] sm:$0xff] }
  0x15   : > { %194 = vst [vmem:[%s1776_s27 + $0x28] sm:$0xff] %v193_v5  ;;  %v207_v12 = vld [vmem:[%s1771_s26 + $0xc0] sm:$0xff]  ;;  %v209_v13 = vld [vmem:[%s1771_s26 + $0xc8] sm:$0xff] }
  0x16   : > { %196 = vst [vmem:[%s1776_s27 + $0x30] sm:$0xff] %v195_v6  ;;  %v211_v14 = vld [vmem:[%s1771_s26 + $0xe0] sm:$0xff]  ;;  %v213_v15 = vld [vmem:[%s1771_s26 + $0xe8] sm:$0xff] }
  0x17   : > { %198 = vst [vmem:[%s1776_s27 + $0x38] sm:$0xff] %v197_v7  ;;  %v215_v16 = vld [vmem:[%s1771_s26 + $0x100] sm:$0xff]  ;;  %v217_v17 = vld [vmem:[%s1771_s26 + $0x108] sm:$0xff] }
  0x18   : > { %200 = vst [vmem:[%s1776_s27 + $0x40] sm:$0xff] %v199_v8  ;;  %v219_v18 = vld [vmem:[%s1771_s26 + $0x120] sm:$0xff]  ;;  %v221_v19 = vld [vmem:[%s1771_s26 + $0x128] sm:$0xff] }
  0x19   : > { %202 = vst [vmem:[%s1776_s27 + $0x48] sm:$0xff] %v201_v9  ;;  %v223_v20 = vld [vmem:[%s1771_s26 + $0x140] sm:$0xff]  ;;  %v225_v21 = vld [vmem:[%s1771_s26 + $0x148] sm:$0xff] }
  0x1a   : > { %204 = vst [vmem:[%s1776_s27 + $0x50] sm:$0xff] %v203_v10  ;;  %v227_v22 = vld [vmem:[%s1771_s26 + $0x160] sm:$0xff]  ;;  %v229_v23 = vld [vmem:[%s1771_s26 + $0x168] sm:$0xff] }
  0x1b   : > { %206 = vst [vmem:[%s1776_s27 + $0x58] sm:$0xff] %v205_v11  ;;  %v231_v24 = vld [vmem:[%s1771_s26 + $0x180] sm:$0xff]  ;;  %v233_v25 = vld [vmem:[%s1771_s26 + $0x188] sm:$0xff] }
  0x1c   : > { %208 = vst [vmem:[%s1776_s27 + $0x60] sm:$0xff] %v207_v12  ;;  %v235_v26 = vld [vmem:[%s1771_s26 + $0x1a0] sm:$0xff]  ;;  %v237_v27 = vld [vmem:[%s1771_s26 + $0x1a8] sm:$0xff] }
  0x1d   : > { %210 = vst [vmem:[%s1776_s27 + $0x68] sm:$0xff] %v209_v13  ;;  %v239_v28 = vld [vmem:[%s1771_s26 + $0x1c0] sm:$0xff]  ;;  %v241_v29 = vld [vmem:[%s1771_s26 + $0x1c8] sm:$0xff] }
  0x1e   : > { %212 = vst [vmem:[%s1776_s27 + $0x70] sm:$0xff] %v211_v14  ;;  %v243_v30 = vld [vmem:[%s1771_s26 + $0x1e0] sm:$0xff]  ;;  %v245_v31 = vld [vmem:[%s1771_s26 + $0x1e8] sm:$0xff] }
  0x1f   : > { %214 = vst [vmem:[%s1776_s27 + $0x78] sm:$0xff] %v213_v15 }
  0x20   : > { %216 = vst [vmem:[%s1776_s27 + $0x80] sm:$0xff] %v215_v16 }
  0x21   : > { %218 = vst [vmem:[%s1776_s27 + $0x88] sm:$0xff] %v217_v17 }
  0x22   : > { %220 = vst [vmem:[%s1776_s27 + $0x90] sm:$0xff] %v219_v18 }
  0x23   : > { %222 = vst [vmem:[%s1776_s27 + $0x98] sm:$0xff] %v221_v19 }
  0x24   : > { %224 = vst [vmem:[%s1776_s27 + $0xa0] sm:$0xff] %v223_v20 }
  0x25   : > { %226 = vst [vmem:[%s1776_s27 + $0xa8] sm:$0xff] %v225_v21 }
  0x26   : > { %228 = vst [vmem:[%s1776_s27 + $0xb0] sm:$0xff] %v227_v22 }
  0x27   : > { %230 = vst [vmem:[%s1776_s27 + $0xb8] sm:$0xff] %v229_v23 }
  0x28   : > { %232 = vst [vmem:[%s1776_s27 + $0xc0] sm:$0xff] %v231_v24 }
  0x29   : > { %234 = vst [vmem:[%s1776_s27 + $0xc8] sm:$0xff] %v233_v25 }
  0x2a   : > { %236 = vst [vmem:[%s1776_s27 + $0xd0] sm:$0xff] %v235_v26 }
  0x2b   : > { %238 = vst [vmem:[%s1776_s27 + $0xd8] sm:$0xff] %v237_v27 }
  0x2c   : > { %240 = vst [vmem:[%s1776_s27 + $0xe0] sm:$0xff] %v239_v28 }
  0x2d   : > { %242 = vst [vmem:[%s1776_s27 + $0xe8] sm:$0xff] %v241_v29 }
  0x2e   : > { %244 = vst [vmem:[%s1776_s27 + $0xf0] sm:$0xff] %v243_v30 }
  0x2f   : > { %246 = vst [vmem:[%s1776_s27 + $0xf8] sm:$0xff] %v245_v31 }
  0x30 PF: > { %p1290_p6 = scmp.ge.s32.totalorder %s1704_s16, 1  ;;  %p263_p7 = scmp.lt.s32.totalorder %s1704_s16, 3 }
  0x32   : > { %p264_p8 = pnand %p1290_p6, %p263_p7 }
  0x33   : > { %s270_s28 = sand.u32 (!%p264_p8), 1, %s1688_s12   ;;  %s1292_s29 = sshll.u32 (!%p264_p8), %s1696_s14, 6 }
  0x34   : > { %267 = sbr.rel (%p264_p8) target bundleno = 427 (0x1ab), region = 47  ;;  %s1291_s30 = sshll.u32 (!%p264_p8), %s270_s28, 8 }
  0x35   : > { %p311_p9 = scmp.lt.s32.totalorder (!%p264_p8), %s1292_s29, 127  ;;  %p332_p10 = scmp.eq.s32.totalorder (!%p264_p8), %s1696_s14, 0 }
  0x36   : > { %s1849_s8 = scalar_lea.vmem (!%p264_p8), [#allocation3], %s1291_s30  ;;  %p1294_p11 = scmp.ne.s32.totalorder (!%p264_p8), %s1696_s14, 0 }
  0x39   : > { %s2034_s29 = smov (!%p311_p9, %s1292_s29), 127  ;;  %335 = sbr.rel (%p1294_p11) target bundleno = 79 (0x4f), region = 55 }
  0x3a   : > { %s1293_s4 = sshll.u32 %s2034_s29, 2 }
  0x3b   : > { %s1847_s7 = scalar_lea.vmem %s2024_s1, %s1293_s4 }
  0x3e   : > { %v1706_v32 = vmov 0.0  }
  0x3f   : > { %336 = vst [vmem:[#allocation2 + $0x30] sm:$0xff] %v1706_v32 }
  0x40   : > { %337 = vst [vmem:[#allocation2] sm:$0xff] %v1706_v32 }
  0x41   : > { %338 = vst [vmem:[#allocation2 + $0x58] sm:$0xff] %v1706_v32 }
  0x42   : > { %339 = vst [vmem:[#allocation2 + $0x18] sm:$0xff] %v1706_v32 }
  0x43   : > { %340 = vst [vmem:[#allocation2 + $0x50] sm:$0xff] %v1706_v32 }
  0x44   : > { %341 = vst [vmem:[#allocation2 + $0x68] sm:$0xff] %v1706_v32 }
  0x45   : > { %342 = vst [vmem:[#allocation2 + $0x8] sm:$0xff] %v1706_v32 }
  0x46   : > { %343 = vst [vmem:[#allocation2 + $0x48] sm:$0xff] %v1706_v32 }
  0x47   : > { %344 = vst [vmem:[#allocation2 + $0x40] sm:$0xff] %v1706_v32 }
  0x48   : > { %345 = vst [vmem:[#allocation2 + $0x20] sm:$0xff] %v1706_v32 }
  0x49   : > { %346 = vst [vmem:[#allocation2 + $0x10] sm:$0xff] %v1706_v32 }
  0x4a   : > { %347 = vst [vmem:[#allocation2 + $0x38] sm:$0xff] %v1706_v32 }
  0x4b   : > { %348 = vst [vmem:[#allocation2 + $0x60] sm:$0xff] %v1706_v32 }
  0x4c   : > { %349 = vst [vmem:[#allocation2 + $0x70] sm:$0xff] %v1706_v32 }
  0x4d   : > { %350 = vst [vmem:[#allocation2 + $0x78] sm:$0xff] %v1706_v32 }
  0x4e   : > { %351 = vst [vmem:[#allocation2 + $0x28] sm:$0xff] %v1706_v32 }
  0x4f PF: > { %356 = sbr.rel (!%p332_p10) target bundleno = 84 (0x54), region = 59  ;;  %v1707_v33 = vmov (%p332_p10), 0.0  }
  0x50   : > { %357 = vst [vmem:[%s2026_s3] sm:$0xff] (%p332_p10), %v1707_v33 }
  0x54 PF: > { %v1599_v34 = vld [vmem:[%s1847_s7 + $0x38] sm:$0xff]  ;;  %v1598_v38 = vld [vmem:[%s1847_s7 + $0x30] sm:$0xff]  ;;  %v1597_v42 = vld [vmem:[%s1847_s7 + $0x28] sm:$0xff]  ;;  %p1552_p12 = scmp.ne.s32.totalorder %s1696_s14, 1 }
  0x55   : > { %v1607_v35 = vld [vmem:[%s1847_s7 + $0x78] sm:$0xff]  ;;  %822 = vmatpush.bf16.msra.mxu0 %v1599_v34  ;;  %v1606_v39 = vld [vmem:[%s1847_s7 + $0x70] sm:$0xff]  ;;  %v1605_v43 = vld [vmem:[%s1847_s7 + $0x68] sm:$0xff] }
  0x56   : > { %v1615_v36 = vld [vmem:[%s1847_s7 + $0xb8] sm:$0xff]  ;;  %871 = vmatpush.bf16.msra.mxu1 %v1607_v35  ;;  %v1614_v40 = vld [vmem:[%s1847_s7 + $0xb0] sm:$0xff]  ;;  %v1613_v44 = vld [vmem:[%s1847_s7 + $0xa8] sm:$0xff] }
  0x57   : > { %v1623_v37 = vld [vmem:[%s1847_s7 + $0xf8] sm:$0xff]  ;;  %920 = vmatpush.bf16.msra.mxu2 %v1615_v36  ;;  %v1622_v41 = vld [vmem:[%s1847_s7 + $0xf0] sm:$0xff]  ;;  %v1621_v45 = vld [vmem:[%s1847_s7 + $0xe8] sm:$0xff] }
  0x58   : > { %969 = vmatpush.bf16.msra.mxu3 %v1623_v37  ;;  %v1596_v46 = vld [vmem:[%s1847_s7 + $0x20] sm:$0xff]  ;;  %v1595_v50 = vld [vmem:[%s1847_s7 + $0x18] sm:$0xff]  ;;  %v1594_v54 = vld [vmem:[%s1847_s7 + $0x10] sm:$0xff] }
  0x59   : > { %823 = vmatpush.bf16.msra.mxu0 %v1598_v38  ;;  %v1604_v47 = vld [vmem:[%s1847_s7 + $0x60] sm:$0xff]  ;;  %v1603_v51 = vld [vmem:[%s1847_s7 + $0x58] sm:$0xff]  ;;  %v1602_v55 = vld [vmem:[%s1847_s7 + $0x50] sm:$0xff] }
  0x5a   : > { %872 = vmatpush.bf16.msra.mxu1 %v1606_v39  ;;  %v1612_v48 = vld [vmem:[%s1847_s7 + $0xa0] sm:$0xff]  ;;  %v1611_v52 = vld [vmem:[%s1847_s7 + $0x98] sm:$0xff]  ;;  %v1610_v56 = vld [vmem:[%s1847_s7 + $0x90] sm:$0xff] }
  0x5b   : > { %921 = vmatpush.bf16.msra.mxu2 %v1614_v40  ;;  %v1620_v49 = vld [vmem:[%s1847_s7 + $0xe0] sm:$0xff]  ;;  %v1619_v53 = vld [vmem:[%s1847_s7 + $0xd8] sm:$0xff]  ;;  %v1618_v57 = vld [vmem:[%s1847_s7 + $0xd0] sm:$0xff] }
  0x5c   : > { %970 = vmatpush.bf16.msra.mxu3 %v1622_v41  ;;  %v1593_v58 = vld [vmem:[%s1847_s7 + $0x8] sm:$0xff]  ;;  %v1592_v62 = vld [vmem:[%s1847_s7] sm:$0xff]  ;;  %v1562_v3 = vld [vmem:[%s1849_s8 + $0xc] sm:$0xf0] }
  0x5d   : > { %824 = vmatpush.bf16.msra.mxu0 %v1597_v42  ;;  %v1601_v59 = vld [vmem:[%s1847_s7 + $0x48] sm:$0xff]  ;;  %v1600_v63 = vld [vmem:[%s1847_s7 + $0x40] sm:$0xff]  ;;  %v1300_v5 = vld [vmem:[%s1849_s8 + $0x10] sm:$0xf0] }
  0x5e   : > { %873 = vmatpush.bf16.msra.mxu1 %v1605_v43  ;;  %v1609_v60 = vld [vmem:[%s1847_s7 + $0x88] sm:$0xff]  ;;  %v1608_v0 = vld [vmem:[%s1847_s7 + $0x80] sm:$0xff]  ;;  %v1563_v7 = vld [vmem:[%s1849_s8 + $0x14] sm:$0xf0] }
  0x5f   : > { %922 = vmatpush.bf16.msra.mxu2 %v1613_v44  ;;  %v1617_v61 = vld [vmem:[%s1847_s7 + $0xc8] sm:$0xff]  ;;  %v1616_v1 = vld [vmem:[%s1847_s7 + $0xc0] sm:$0xff]  ;;  %v1308_v9 = vld [vmem:[%s1849_s8 + $0x18] sm:$0xf0] }
  0x60   : > { %971 = vmatpush.bf16.msra.mxu3 %v1621_v45  ;;  %v1298_v2 = vld [vmem:[%s1849_s8] sm:$0xf]  ;;  %v1560_v4 = vld [vmem:[%s1849_s8 + $0x4] sm:$0xf]  ;;  %v1306_v6 = vld [vmem:[%s1849_s8 + $0x8] sm:$0xf] }
  0x61   : > { %825 = vmatpush.bf16.msra.mxu0 %v1596_v46  ;;  %v1561_v8 = vld [vmem:[%s1849_s8 + $0xc] sm:$0xf]  ;;  %v1299_v10 = vor.u32 %v1562_v3, %v1298_v2  ;;  %v1303_v11 = vor.u32 %v1560_v4, %v1300_v5  ;;  %v1307_v12 = vor.u32 %v1563_v7, %v1306_v6  ;;  %v1314_v14 = vld [vmem:[%s1849_s8 + $0x20] sm:$0xf]  ;;  %v1566_v15 = vld [vmem:[%s1849_s8 + $0x2c] sm:$0xf0] }
  0x62   : > { %874 = vmatpush.bf16.msra.mxu1 %v1604_v47  ;;  %v1311_v13 = vor.u32 %v1561_v8, %v1308_v9  ;;  %v1564_v16 = vld [vmem:[%s1849_s8 + $0x24] sm:$0xf]  ;;  %v1316_v17 = vld [vmem:[%s1849_s8 + $0x30] sm:$0xf0]  ;;  %v1322_v18 = vld [vmem:[%s1849_s8 + $0x28] sm:$0xf]  ;;  %v1315_v22 = vor.u32 %v1566_v15, %v1314_v14 }
  0x63   : > { %923 = vmatpush.bf16.msra.mxu2 %v1612_v48  ;;  %v1567_v19 = vld [vmem:[%s1849_s8 + $0x34] sm:$0xf0]  ;;  %v1565_v20 = vld [vmem:[%s1849_s8 + $0x2c] sm:$0xf]  ;;  %v1324_v21 = vld [vmem:[%s1849_s8 + $0x38] sm:$0xf0]  ;;  %v1319_v23 = vor.u32 %v1564_v16, %v1316_v17 }
  0x64   : > { %972 = vmatpush.bf16.msra.mxu3 %v1620_v49  ;;  %v1323_v24 = vor.u32 %v1567_v19, %v1322_v18  ;;  %v1327_v25 = vor.u32 %v1565_v20, %v1324_v21  ;;  %v1330_v26 = vld [vmem:[%s1849_s8 + $0x40] sm:$0xf]  ;;  %v1570_v27 = vld [vmem:[%s1849_s8 + $0x4c] sm:$0xf0]  ;;  %v1568_v28 = vld [vmem:[%s1849_s8 + $0x44] sm:$0xf] }
  0x65   : > { %826 = vmatpush.bf16.msra.mxu0 %v1595_v50  ;;  %v1332_v29 = vld [vmem:[%s1849_s8 + $0x50] sm:$0xf0]  ;;  %v1338_v30 = vld [vmem:[%s1849_s8 + $0x48] sm:$0xf]  ;;  %v1571_v31 = vld [vmem:[%s1849_s8 + $0x54] sm:$0xf0]  ;;  %v1331_v34 = vor.u32 %v1570_v27, %v1330_v26 }
  0x66   : > { %875 = vmatpush.bf16.msra.mxu1 %v1603_v51  ;;  %v1569_v32 = vld [vmem:[%s1849_s8 + $0x4c] sm:$0xf]  ;;  %v1340_v33 = vld [vmem:[%s1849_s8 + $0x58] sm:$0xf0]  ;;  %v1335_v35 = vor.u32 %v1568_v28, %v1332_v29  ;;  %v1339_v36 = vor.u32 %v1571_v31, %v1338_v30  ;;  %v1346_v38 = vld [vmem:[%s1849_s8 + $0x60] sm:$0xf] }
  0x67   : > { %924 = vmatpush.bf16.msra.mxu2 %v1611_v52  ;;  %v1343_v37 = vor.u32 %v1569_v32, %v1340_v33  ;;  %v1574_v39 = vld [vmem:[%s1849_s8 + $0x6c] sm:$0xf0]  ;;  %v1572_v40 = vld [vmem:[%s1849_s8 + $0x64] sm:$0xf]  ;;  %v1348_v41 = vld [vmem:[%s1849_s8 + $0x70] sm:$0xf0] }
  0x68   : > { %973 = vmatpush.bf16.msra.mxu3 %v1619_v53  ;;  %v1354_v42 = vld [vmem:[%s1849_s8 + $0x68] sm:$0xf]  ;;  %v1575_v43 = vld [vmem:[%s1849_s8 + $0x74] sm:$0xf0]  ;;  %v1573_v44 = vld [vmem:[%s1849_s8 + $0x6c] sm:$0xf]  ;;  %v1347_v46 = vor.u32 %v1574_v39, %v1346_v38  ;;  %v1351_v47 = vor.u32 %v1572_v40, %v1348_v41 }
  0x69   : > { %827 = vmatpush.bf16.msra.mxu0 %v1594_v54  ;;  %v1356_v45 = vld [vmem:[%s1849_s8 + $0x78] sm:$0xf0]  ;;  %v1355_v48 = vor.u32 %v1575_v43, %v1354_v42  ;;  %v1362_v50 = vld [vmem:[%s1849_s8 + $0x80] sm:$0xf]  ;;  %v1578_v51 = vld [vmem:[%s1849_s8 + $0x8c] sm:$0xf0] }
  0x6a   : > { %876 = vmatpush.bf16.msra.mxu1 %v1602_v55  ;;  %v1359_v49 = vor.u32 %v1573_v44, %v1356_v45  ;;  %v1576_v52 = vld [vmem:[%s1849_s8 + $0x84] sm:$0xf]  ;;  %v1364_v53 = vld [vmem:[%s1849_s8 + $0x90] sm:$0xf0]  ;;  %v1370_v54 = vld [vmem:[%s1849_s8 + $0x88] sm:$0xf] }
  0x6b   : > { %925 = vmatpush.bf16.msra.mxu2 %v1610_v56  ;;  %v1579_v55 = vld [vmem:[%s1849_s8 + $0x94] sm:$0xf0]  ;;  %v1577_v56 = vld [vmem:[%s1849_s8 + $0x8c] sm:$0xf]  ;;  %v1386_v2 = vld [vmem:[%s1849_s8 + $0xa8] sm:$0xf] }
  0x6c   : > { %974 = vmatpush.bf16.msra.mxu3 %v1618_v57  ;;  %v1372_v57 = vld [vmem:[%s1849_s8 + $0x98] sm:$0xf0]  ;;  %v1583_v3 = vld [vmem:[%s1849_s8 + $0xb4] sm:$0xf0]  ;;  %v1581_v4 = vld [vmem:[%s1849_s8 + $0xac] sm:$0xf] }
  0x6d   : > { %828 = vmatpush.bf16.msra.mxu0 %v1593_v58  ;;  %v1363_v58 = vor.u32 %v1578_v51, %v1362_v50  ;;  %v1388_v5 = vld [vmem:[%s1849_s8 + $0xb8] sm:$0xf0]  ;;  %v1387_v8 = vor.u32 %v1583_v3, %v1386_v2  ;;  %v1402_v14 = vld [vmem:[%s1849_s8 + $0xc8] sm:$0xf]  ;;  %v1587_v15 = vld [vmem:[%s1849_s8 + $0xd4] sm:$0xf0] }
  0x6e   : > { %877 = vmatpush.bf16.msra.mxu1 %v1601_v59  ;;  %v1367_v59 = vor.u32 %v1576_v52, %v1364_v53  ;;  %v1391_v9 = vor.u32 %v1581_v4, %v1388_v5  ;;  %v1585_v16 = vld [vmem:[%s1849_s8 + $0xcc] sm:$0xf]  ;;  %v1404_v17 = vld [vmem:[%s1849_s8 + $0xd8] sm:$0xf0]  ;;  %v1403_v20 = vor.u32 %v1587_v15, %v1402_v14  ;;  %v1418_v26 = vld [vmem:[%s1849_s8 + $0xe8] sm:$0xf] }
  0x6f   : > { %926 = vmatpush.bf16.msra.mxu2 %v1609_v60  ;;  %v1371_v60 = vor.u32 %v1579_v55, %v1370_v54  ;;  %v1407_v21 = vor.u32 %v1585_v16, %v1404_v17  ;;  %v1591_v27 = vld [vmem:[%s1849_s8 + $0xf4] sm:$0xf0]  ;;  %v1589_v28 = vld [vmem:[%s1849_s8 + $0xec] sm:$0xf]  ;;  %v1420_v29 = vld [vmem:[%s1849_s8 + $0xf8] sm:$0xf0] }
  0x70   : > { %975 = vmatpush.bf16.msra.mxu3 %v1617_v61  ;;  %v1375_v61 = vor.u32 %v1577_v56, %v1372_v57  ;;  %v1419_v32 = vor.u32 %v1591_v27, %v1418_v26  ;;  %v1423_v33 = vor.u32 %v1589_v28, %v1420_v29  ;;  %v358_v42 = vld [vmem:[#allocation2 + $0x30] sm:$0xff]  ;;  %v359_v51 = vld [vmem:[#allocation2] sm:$0xff]  ;;  %v361_v5 = vld [vmem:[#allocation2 + $0x18] sm:$0xff] }
  0x71   : > { %829 = vmatpush.bf16.msra.mxu0 %v1592_v62  ;;  %v1378_v62 = vld [vmem:[%s1849_s8 + $0xa0] sm:$0xf]  ;;  %v362_v14 = vld [vmem:[#allocation2 + $0x50] sm:$0xff] }
  0x72   : > { %878 = vmatpush.bf16.msra.mxu1 %v1600_v63  ;;  %v1582_v63 = vld [vmem:[%s1849_s8 + $0xac] sm:$0xf0] }
  0x73   : > { %927 = vmatpush.bf16.msra.mxu2 %v1608_v0  ;;  %v1580_v0 = vld [vmem:[%s1849_s8 + $0xa4] sm:$0xf]  ;;  %v1379_v6 = vor.u32 %v1582_v63, %v1378_v62 }
  0x74   : > { %976 = vmatpush.bf16.msra.mxu3 %v1616_v1  ;;  %830 = vmatmul.bf16.vlgmr.msra.gmra.mxu0 %v1299_v10  ;;  %v1380_v1 = vld [vmem:[%s1849_s8 + $0xb0] sm:$0xf0]  ;;  %v1394_v10 = vld [vmem:[%s1849_s8 + $0xc0] sm:$0xf] }
  0x75   : > { %879 = vmatmul.bf16.vlgmr.msra.gmra.mxu1 %v1303_v11  ;;  %v1383_v7 = vor.u32 %v1580_v0, %v1380_v1  ;;  %v1586_v11 = vld [vmem:[%s1849_s8 + $0xcc] sm:$0xf0] }
  0x76   : > { %928 = vmatmul.bf16.vlgmr.msra.gmra.mxu2 %v1307_v12  ;;  %v1584_v12 = vld [vmem:[%s1849_s8 + $0xc4] sm:$0xf]  ;;  %v1395_v18 = vor.u32 %v1586_v11, %v1394_v10 }
  0x77   : > { %977 = vmatmul.bf16.vlgmr.msra.gmra.mxu3 %v1311_v13  ;;  %v1396_v13 = vld [vmem:[%s1849_s8 + $0xd0] sm:$0xf0] }
  0x78   : > { %v1399_v19 = vor.u32 %v1584_v12, %v1396_v13 }
  0x84   : > { %835 = vmatmul.bf16.gmra.mxu0 %v1315_v22  ;;  %v1410_v22 = vld [vmem:[%s1849_s8 + $0xe0] sm:$0xf] }
  0x85   : > { %884 = vmatmul.bf16.gmra.mxu1 %v1319_v23  ;;  %v1590_v23 = vld [vmem:[%s1849_s8 + $0xec] sm:$0xf0] }
  0x86   : > { %933 = vmatmul.bf16.gmra.mxu2 %v1323_v24  ;;  %v1588_v24 = vld [vmem:[%s1849_s8 + $0xe4] sm:$0xf]  ;;  %v1411_v30 = vor.u32 %v1590_v23, %v1410_v22  ;;  %v363_v23 = vld [vmem:[#allocation2 + $0x68] sm:$0xff] }
  0x87   : > { %982 = vmatmul.bf16.gmra.mxu3 %v1327_v25  ;;  %v1412_v25 = vld [vmem:[%s1849_s8 + $0xf0] sm:$0xf0] }
  0x88   : > { %v1415_v31 = vor.u32 %v1588_v24, %v1412_v25 }
  0x94   : > { %840 = vmatmul.bf16.gmra.mxu0 %v1331_v34 }
  0x95   : > { %889 = vmatmul.bf16.gmra.mxu1 %v1335_v35 }
  0x96   : > { %938 = vmatmul.bf16.gmra.mxu2 %v1339_v36 }
  0x97   : > { %987 = vmatmul.bf16.gmra.mxu3 %v1343_v37 }
  0xa4   : > { %845 = vmatmul.bf16.gmra.mxu0 %v1347_v46 }
  0xa5   : > { %894 = vmatmul.bf16.gmra.mxu1 %v1351_v47 }
  0xa6   : > { %943 = vmatmul.bf16.gmra.mxu2 %v1355_v48 }
  0xa7   : > { %992 = vmatmul.bf16.gmra.mxu3 %v1359_v49 }
  0xb4   : > { %850 = vmatmul.bf16.gmra.mxu0 %v1363_v58 }
  0xb5   : > { %899 = vmatmul.bf16.gmra.mxu1 %v1367_v59 }
  0xb6   : > { %948 = vmatmul.bf16.gmra.mxu2 %v1371_v60  ;;  %v360_v60 = vld [vmem:[#allocation2 + $0x58] sm:$0xff] }
  0xb7   : > { %997 = vmatmul.bf16.gmra.mxu3 %v1375_v61 }
  0xc4   : > { %855 = vmatmul.bf16.gmra.mxu0 %v1379_v6 }
  0xc5   : > { %904 = vmatmul.bf16.gmra.mxu1 %v1383_v7 }
  0xc6   : > { %953 = vmatmul.bf16.gmra.mxu2 %v1387_v8 }
  0xc7   : > { %1002 = vmatmul.bf16.gmra.mxu3 %v1391_v9 }
  0xd4   : > { %860 = vmatmul.bf16.gmra.mxu0 %v1395_v18 }
  0xd5   : > { %909 = vmatmul.bf16.gmra.mxu1 %v1399_v19 }
  0xd6   : > { %958 = vmatmul.bf16.gmra.mxu2 %v1403_v20 }
  0xd7   : > { %1007 = vmatmul.bf16.gmra.mxu3 %v1407_v21 }
  0xe4   : > { %865 = vmatmul.bf16.gmra.mxu0 %v1411_v30 }
  0xe5   : > { %914 = vmatmul.bf16.gmra.mxu1 %v1415_v31 }
  0xe6   : > { %963 = vmatmul.bf16.gmra.mxu2 %v1419_v32  ;;  %v364_v32 = vld [vmem:[#allocation2 + $0x8] sm:$0xff] }
  0xe7   : > { %1012 = vmatmul.bf16.gmra.mxu3 %v1423_v33 }
  0xf1   : > { %v831_v34 = vpop.f32.mrf.mxu0 }
  0xf2   : > { %v880_v35 = vpop.f32.mrf.mxu1 }
  0xf3   : > { %v881_v36 = vadd.f32 %v880_v35, %v831_v34 }
  0xf9   : > { %v929_v37 = vpop.f32.mrf.mxu2  ;;  %v833_v40 = vpop.f32.mrf.mxu0 }
  0xfa   : > { %v978_v38 = vpop.f32.mrf.mxu3  ;;  %v930_v39 = vadd.f32 %v929_v37, %v881_v36  ;;  %v882_v41 = vpop.f32.mrf.mxu1 }
  0xfb   : > { %v883_v45 = vadd.f32 %v882_v41, %v833_v40  ;;  %v365_v41 = vld [vmem:[#allocation2 + $0x48] sm:$0xff] }
  0xfc   : > { %v979_v43 = vadd.f32 %v978_v38, %v930_v39 }
  0xfe   : > { %v1018_v44 = vadd.f32 %v979_v43, %v358_v42 }
 0x100   : > { %1034 = vst [vmem:[#allocation2 + $0x30] sm:$0xff] %v1018_v44 }
 0x101   : > { %v931_v46 = vpop.f32.mrf.mxu2  ;;  %v836_v49 = vpop.f32.mrf.mxu0 }
 0x102   : > { %v980_v47 = vpop.f32.mrf.mxu3  ;;  %v932_v48 = vadd.f32 %v931_v46, %v883_v45  ;;  %v885_v50 = vpop.f32.mrf.mxu1 }
 0x103   : > { %v886_v54 = vadd.f32 %v885_v50, %v836_v49  ;;  %v366_v50 = vld [vmem:[#allocation2 + $0x40] sm:$0xff] }
 0x104   : > { %v981_v52 = vadd.f32 %v980_v47, %v932_v48 }
 0x106   : > { %v1019_v53 = vadd.f32 %v981_v52, %v359_v51 }
 0x108   : > { %1035 = vst [vmem:[#allocation2] sm:$0xff] %v1019_v53 }
 0x109   : > { %v934_v55 = vpop.f32.mrf.mxu2  ;;  %v838_v58 = vpop.f32.mrf.mxu0 }
 0x10a   : > { %v983_v56 = vpop.f32.mrf.mxu3  ;;  %v935_v57 = vadd.f32 %v934_v55, %v886_v54  ;;  %v887_v59 = vpop.f32.mrf.mxu1 }
 0x10b   : > { %v888_v63 = vadd.f32 %v887_v59, %v838_v58  ;;  %v367_v59 = vld [vmem:[#allocation2 + $0x20] sm:$0xff] }
 0x10c   : > { %v984_v61 = vadd.f32 %v983_v56, %v935_v57 }
 0x10e   : > { %v1020_v62 = vadd.f32 %v984_v61, %v360_v60 }
 0x110   : > { %1036 = vst [vmem:[#allocation2 + $0x58] sm:$0xff] %v1020_v62 }
 0x111   : > { %v936_v0 = vpop.f32.mrf.mxu2  ;;  %v841_v3 = vpop.f32.mrf.mxu0 }
 0x112   : > { %v985_v1 = vpop.f32.mrf.mxu3  ;;  %v937_v2 = vadd.f32 %v936_v0, %v888_v63  ;;  %v890_v4 = vpop.f32.mrf.mxu1 }
 0x113   : > { %v891_v8 = vadd.f32 %v890_v4, %v841_v3  ;;  %v368_v4 = vld [vmem:[#allocation2 + $0x10] sm:$0xff] }
 0x114   : > { %v986_v6 = vadd.f32 %v985_v1, %v937_v2 }
 0x116   : > { %v1021_v7 = vadd.f32 %v986_v6, %v361_v5 }
 0x118   : > { %1037 = vst [vmem:[#allocation2 + $0x18] sm:$0xff] %v1021_v7 }
 0x119   : > { %v939_v9 = vpop.f32.mrf.mxu2  ;;  %v843_v12 = vpop.f32.mrf.mxu0 }
 0x11a   : > { %v988_v10 = vpop.f32.mrf.mxu3  ;;  %v940_v11 = vadd.f32 %v939_v9, %v891_v8  ;;  %v892_v13 = vpop.f32.mrf.mxu1 }
 0x11b   : > { %v893_v17 = vadd.f32 %v892_v13, %v843_v12  ;;  %v369_v13 = vld [vmem:[#allocation2 + $0x38] sm:$0xff] }
 0x11c   : > { %v989_v15 = vadd.f32 %v988_v10, %v940_v11 }
 0x11e   : > { %v1022_v16 = vadd.f32 %v989_v15, %v362_v14 }
 0x120   : > { %1038 = vst [vmem:[#allocation2 + $0x50] sm:$0xff] %v1022_v16 }
 0x121   : > { %v941_v18 = vpop.f32.mrf.mxu2  ;;  %v846_v21 = vpop.f32.mrf.mxu0 }
 0x122   : > { %v990_v19 = vpop.f32.mrf.mxu3  ;;  %v942_v20 = vadd.f32 %v941_v18, %v893_v17  ;;  %v895_v22 = vpop.f32.mrf.mxu1 }
 0x123   : > { %v896_v26 = vadd.f32 %v895_v22, %v846_v21  ;;  %v370_v22 = vld [vmem:[#allocation2 + $0x60] sm:$0xff] }
 0x124   : > { %v991_v24 = vadd.f32 %v990_v19, %v942_v20 }
 0x126   : > { %v1023_v25 = vadd.f32 %v991_v24, %v363_v23 }
 0x128   : > { %1039 = vst [vmem:[#allocation2 + $0x68] sm:$0xff] %v1023_v25 }
 0x129   : > { %v944_v27 = vpop.f32.mrf.mxu2  ;;  %v848_v30 = vpop.f32.mrf.mxu0 }
 0x12a   : > { %v993_v28 = vpop.f32.mrf.mxu3  ;;  %v945_v29 = vadd.f32 %v944_v27, %v896_v26  ;;  %v897_v31 = vpop.f32.mrf.mxu1 }
 0x12b   : > { %v898_v35 = vadd.f32 %v897_v31, %v848_v30 }
 0x12c   : > { %v994_v33 = vadd.f32 %v993_v28, %v945_v29  ;;  %v371_v29 = vld [vmem:[#allocation2 + $0x70] sm:$0xff] }
 0x12e   : > { %v1024_v34 = vadd.f32 %v994_v33, %v364_v32 }
 0x130   : > { %1040 = vst [vmem:[#allocation2 + $0x8] sm:$0xff] %v1024_v34 }
 0x131   : > { %v946_v36 = vpop.f32.mrf.mxu2  ;;  %v851_v39 = vpop.f32.mrf.mxu0 }
 0x132   : > { %v995_v37 = vpop.f32.mrf.mxu3  ;;  %v947_v38 = vadd.f32 %v946_v36, %v898_v35  ;;  %v900_v40 = vpop.f32.mrf.mxu1 }
 0x133   : > { %v901_v44 = vadd.f32 %v900_v40, %v851_v39 }
 0x134   : > { %v996_v42 = vadd.f32 %v995_v37, %v947_v38  ;;  %v372_v38 = vld [vmem:[#allocation2 + $0x78] sm:$0xff] }
 0x136   : > { %v1025_v43 = vadd.f32 %v996_v42, %v365_v41 }
 0x138   : > { %1041 = vst [vmem:[#allocation2 + $0x48] sm:$0xff] %v1025_v43 }
 0x139   : > { %v949_v45 = vpop.f32.mrf.mxu2  ;;  %v853_v48 = vpop.f32.mrf.mxu0 }
 0x13a   : > { %v998_v46 = vpop.f32.mrf.mxu3  ;;  %v950_v47 = vadd.f32 %v949_v45, %v901_v44  ;;  %v902_v49 = vpop.f32.mrf.mxu1 }
 0x13b   : > { %v903_v53 = vadd.f32 %v902_v49, %v853_v48 }
 0x13c   : > { %v999_v51 = vadd.f32 %v998_v46, %v950_v47  ;;  %v373_v46 = vld [vmem:[#allocation2 + $0x28] sm:$0xff] }
 0x13e   : > { %v1026_v52 = vadd.f32 %v999_v51, %v366_v50 }
 0x140   : > { %1042 = vst [vmem:[#allocation2 + $0x40] sm:$0xff] %v1026_v52 }
 0x141   : > { %v951_v54 = vpop.f32.mrf.mxu2  ;;  %v856_v57 = vpop.f32.mrf.mxu0 }
 0x142   : > { %v1000_v55 = vpop.f32.mrf.mxu3  ;;  %v952_v56 = vadd.f32 %v951_v54, %v903_v53  ;;  %v905_v58 = vpop.f32.mrf.mxu1 }
 0x143   : > { %v906_v62 = vadd.f32 %v905_v58, %v856_v57 }
 0x144   : > { %v1001_v60 = vadd.f32 %v1000_v55, %v952_v56 }
 0x146   : > { %v1027_v61 = vadd.f32 %v1001_v60, %v367_v59 }
 0x148   : > { %1043 = vst [vmem:[#allocation2 + $0x20] sm:$0xff] %v1027_v61 }
 0x149   : > { %v954_v63 = vpop.f32.mrf.mxu2  ;;  %v858_v2 = vpop.f32.mrf.mxu0 }
 0x14a   : > { %v1003_v0 = vpop.f32.mrf.mxu3  ;;  %v955_v1 = vadd.f32 %v954_v63, %v906_v62  ;;  %v907_v3 = vpop.f32.mrf.mxu1 }
 0x14b   : > { %v908_v7 = vadd.f32 %v907_v3, %v858_v2 }
 0x14c   : > { %v1004_v5 = vadd.f32 %v1003_v0, %v955_v1 }
 0x14e   : > { %v1028_v6 = vadd.f32 %v1004_v5, %v368_v4 }
 0x150   : > { %1044 = vst [vmem:[#allocation2 + $0x10] sm:$0xff] %v1028_v6 }
 0x151   : > { %v956_v8 = vpop.f32.mrf.mxu2  ;;  %v861_v11 = vpop.f32.mrf.mxu0 }
 0x152   : > { %v1005_v9 = vpop.f32.mrf.mxu3  ;;  %v957_v10 = vadd.f32 %v956_v8, %v908_v7  ;;  %v910_v12 = vpop.f32.mrf.mxu1 }
 0x153   : > { %v911_v16 = vadd.f32 %v910_v12, %v861_v11 }
 0x154   : > { %v1006_v14 = vadd.f32 %v1005_v9, %v957_v10 }
 0x156   : > { %v1029_v15 = vadd.f32 %v1006_v14, %v369_v13 }
 0x158   : > { %1045 = vst [vmem:[#allocation2 + $0x38] sm:$0xff] %v1029_v15 }
 0x159   : > { %v959_v17 = vpop.f32.mrf.mxu2  ;;  %v863_v20 = vpop.f32.mrf.mxu0 }
 0x15a   : > { %v1008_v18 = vpop.f32.mrf.mxu3  ;;  %v960_v19 = vadd.f32 %v959_v17, %v911_v16  ;;  %v912_v21 = vpop.f32.mrf.mxu1 }
 0x15b   : > { %v913_v25 = vadd.f32 %v912_v21, %v863_v20 }
 0x15c   : > { %v1009_v23 = vadd.f32 %v1008_v18, %v960_v19 }
 0x15e   : > { %v1030_v24 = vadd.f32 %v1009_v23, %v370_v22 }
 0x160   : > { %1046 = vst [vmem:[#allocation2 + $0x60] sm:$0xff] %v1030_v24 }
 0x161   : > { %v961_v26 = vpop.f32.mrf.mxu2  ;;  %v866_v30 = vpop.f32.mrf.mxu0 }
 0x162   : > { %v1010_v27 = vpop.f32.mrf.mxu3  ;;  %v962_v28 = vadd.f32 %v961_v26, %v913_v25  ;;  %v915_v31 = vpop.f32.mrf.mxu1 }
 0x163   : > { %v916_v34 = vadd.f32 %v915_v31, %v866_v30 }
 0x164   : > { %v1011_v32 = vadd.f32 %v1010_v27, %v962_v28 }
 0x166   : > { %v1031_v33 = vadd.f32 %v1011_v32, %v371_v29 }
 0x168   : > { %1047 = vst [vmem:[#allocation2 + $0x70] sm:$0xff] %v1031_v33 }
 0x169   : > { %v964_v35 = vpop.f32.mrf.mxu2  ;;  %v868_v40 = vpop.f32.mrf.mxu0 }
 0x16a   : > { %v1013_v36 = vpop.f32.mrf.mxu3  ;;  %v965_v37 = vadd.f32 %v964_v35, %v916_v34  ;;  %v917_v41 = vpop.f32.mrf.mxu1 }
 0x16b   : > { %v918_v43 = vadd.f32 %v917_v41, %v868_v40 }
 0x16c   : > { %v1014_v39 = vadd.f32 %v1013_v36, %v965_v37 }
 0x16e   : > { %v1032_v42 = vadd.f32 %v1014_v39, %v372_v38 }
 0x170   : > { %1048 = vst [vmem:[#allocation2 + $0x78] sm:$0xff] %v1032_v42 }
 0x171   : > { %v966_v44 = vpop.f32.mrf.mxu2 }
 0x172   : > { %v967_v45 = vadd.f32 %v966_v44, %v918_v43  ;;  %v1015_v47 = vpop.f32.mrf.mxu3 }
 0x174   : > { %v1016_v48 = vadd.f32 %v1015_v47, %v967_v45  ;;  %1053 = sbr.rel (%p1552_p12) target bundleno = 427 (0x1ab), region = 63 }
 0x176   : > { %v1033_v49 = vadd.f32 %v1016_v48, %v373_v46 }
 0x178   : > { %1049 = vst [vmem:[#allocation2 + $0x28] sm:$0xff] %v1033_v49 }
 0x179   : > { %v1054_v50 = vld [vmem:[#allocation2 + $0x30] sm:$0xff]  ;;  %v1055_v51 = vld [vmem:[#allocation2] sm:$0xff]  ;;  %v1056_v52 = vld [vmem:[#allocation2 + $0x58] sm:$0xff] }
 0x17a   : > { %1070 = vst [vmem:[%s2025_s2] sm:$0xff] %v1054_v50  ;;  %v1107_v53 = vmul.f32 %v1054_v50, %v1054_v50  ;;  %v1086_v54 = vadd.f32 %v1055_v51, %v1054_v50  ;;  %v1108_v55 = vmul.f32 %v1055_v51, %v1055_v51  ;;  %v1109_v56 = vmul.f32 %v1056_v52, %v1056_v52  ;;  %v1057_v57 = vld [vmem:[#allocation2 + $0x18] sm:$0xff]  ;;  %v1058_v58 = vld [vmem:[#allocation2 + $0x50] sm:$0xff]  ;;  %v1059_v62 = vld [vmem:[#allocation2 + $0x68] sm:$0xff] }
 0x17b   : > { %1071 = vst [vmem:[%s2025_s2 + $0x8] sm:$0xff] %v1055_v51  ;;  %v1110_v61 = vmul.f32 %v1057_v57, %v1057_v57  ;;  %v1111_v1 = vmul.f32 %v1058_v58, %v1058_v58  ;;  %v1060_v2 = vld [vmem:[#allocation2 + $0x8] sm:$0xff]  ;;  %v1112_v5 = vmul.f32 %v1059_v62, %v1059_v62  ;;  %v1062_v7 = vld [vmem:[#allocation2 + $0x40] sm:$0xff]  ;;  %v1064_v12 = vld [vmem:[#allocation2 + $0x10] sm:$0xff]  ;;  %v1144_v51 = vlaneseq }
 0x17c   : > { %v1123_v59 = vadd.f32 %v1108_v55, %v1107_v53  ;;  %1072 = vst [vmem:[%s2025_s2 + $0x10] sm:$0xff] %v1056_v52  ;;  %v1087_v60 = vadd.f32 %v1086_v54, %v1056_v52  ;;  %v1061_v6 = vld [vmem:[#allocation2 + $0x48] sm:$0xff]  ;;  %v1113_v10 = vmul.f32 %v1060_v2, %v1060_v2  ;;  %v1063_v11 = vld [vmem:[#allocation2 + $0x20] sm:$0xff]  ;;  %v1065_v16 = vld [vmem:[#allocation2 + $0x38] sm:$0xff]  ;;  %v1115_v20 = vmul.f32 %v1062_v7, %v1062_v7 }
 0x17d   : > { %1073 = vst [vmem:[%s2025_s2 + $0x18] sm:$0xff] %v1057_v57  ;;  %v1114_v15 = vmul.f32 %v1061_v6, %v1061_v6  ;;  %v1066_v17 = vld [vmem:[#allocation2 + $0x60] sm:$0xff]  ;;  %v1067_v21 = vld [vmem:[#allocation2 + $0x70] sm:$0xff]  ;;  %v1068_v22 = vld [vmem:[#allocation2 + $0x78] sm:$0xff]  ;;  %v1116_v25 = vmul.f32 %v1063_v11, %v1063_v11  ;;  %v1117_v29 = vmul.f32 %v1064_v12, %v1064_v12  ;;  %v1118_v32 = vmul.f32 %v1065_v16, %v1065_v16 }
 0x17e   : > { %v1124_v63 = vadd.f32 %v1123_v59, %v1109_v56  ;;  %v1088_v0 = vadd.f32 %v1087_v60, %v1057_v57  ;;  %1074 = vst [vmem:[%s2025_s2 + $0x20] sm:$0xff] %v1058_v58  ;;  %v1119_v35 = vmul.f32 %v1066_v17, %v1066_v17  ;;  %v1120_v38 = vmul.f32 %v1067_v21, %v1067_v21 }
 0x17f   : > { %1075 = vst [vmem:[%s2025_s2 + $0x28] sm:$0xff] %v1059_v62  ;;  %v1069_v26 = vld [vmem:[#allocation2 + $0x28] sm:$0xff]  ;;  %v1121_v41 = vmul.f32 %v1068_v22, %v1068_v22  ;;  %v1145_v56 = vshrl.u32 %v1144_v51, 7 }
 0x180   : > { %v1125_v3 = vadd.f32 %v1124_v63, %v1110_v61  ;;  %v1089_v4 = vadd.f32 %v1088_v0, %v1058_v58  ;;  %1076 = vst [vmem:[%s2025_s2 + $0x30] sm:$0xff] %v1060_v2  ;;  %v1122_v44 = vmul.f32 %v1069_v26, %v1069_v26 }
 0x181   : > { %1077 = vst [vmem:[%s2025_s2 + $0x38] sm:$0xff] %v1061_v6  ;;  %vm1147_vm0 = vcmp.eq.s32.totalorder %v1145_v56, 1  ;;  %vm1146_vm1 = vcmp.eq.s32.totalorder %v1145_v56, 0 }
 0x182   : > { %v1126_v8 = vadd.f32 %v1125_v3, %v1111_v1  ;;  %v1090_v9 = vadd.f32 %v1089_v4, %v1059_v62  ;;  %1078 = vst [vmem:[%s2025_s2 + $0x40] sm:$0xff] %v1062_v7  ;;  %v1154_v62 = vld [vmem:[%s2026_s3] sm:$0xff] }
 0x183   : > { %1079 = vst [vmem:[%s2025_s2 + $0x48] sm:$0xff] %v1063_v11 }
 0x184   : > { %v1127_v13 = vadd.f32 %v1126_v8, %v1112_v5  ;;  %v1091_v14 = vadd.f32 %v1090_v9, %v1060_v2  ;;  %1080 = vst [vmem:[%s2025_s2 + $0x50] sm:$0xff] %v1064_v12 }
 0x185   : > { %1081 = vst [vmem:[%s2025_s2 + $0x58] sm:$0xff] %v1065_v16 }
 0x186   : > { %v1128_v18 = vadd.f32 %v1127_v13, %v1113_v10  ;;  %v1092_v19 = vadd.f32 %v1091_v14, %v1061_v6  ;;  %1082 = vst [vmem:[%s2025_s2 + $0x60] sm:$0xff] %v1066_v17 }
 0x187   : > { %1083 = vst [vmem:[%s2025_s2 + $0x68] sm:$0xff] %v1067_v21 }
 0x188   : > { %v1129_v23 = vadd.f32 %v1128_v18, %v1114_v15  ;;  %v1093_v24 = vadd.f32 %v1092_v19, %v1062_v7  ;;  %1084 = vst [vmem:[%s2025_s2 + $0x70] sm:$0xff] %v1068_v22 }
 0x189   : > { %1085 = vst [vmem:[%s2025_s2 + $0x78] sm:$0xff] %v1069_v26 }
 0x18a   : > { %v1130_v27 = vadd.f32 %v1129_v23, %v1115_v20  ;;  %v1094_v28 = vadd.f32 %v1093_v24, %v1063_v11 }
 0x18c   : > { %v1131_v30 = vadd.f32 %v1130_v27, %v1116_v25  ;;  %v1095_v31 = vadd.f32 %v1094_v28, %v1064_v12 }
 0x18e   : > { %v1132_v33 = vadd.f32 %v1131_v30, %v1117_v29  ;;  %v1096_v34 = vadd.f32 %v1095_v31, %v1065_v16 }
 0x190   : > { %v1133_v36 = vadd.f32 %v1132_v33, %v1118_v32  ;;  %v1097_v37 = vadd.f32 %v1096_v34, %v1066_v17 }
 0x192   : > { %v1134_v39 = vadd.f32 %v1133_v36, %v1119_v35  ;;  %v1098_v40 = vadd.f32 %v1097_v37, %v1067_v21 }
 0x194   : > { %v1135_v42 = vadd.f32 %v1134_v39, %v1120_v38  ;;  %v1099_v43 = vadd.f32 %v1098_v40, %v1068_v22 }
 0x196   : > { %v1136_v45 = vadd.f32 %v1135_v42, %v1121_v41  ;;  %v1100_v46 = vadd.f32 %v1099_v43, %v1069_v26 }
 0x198   : > { %v1101_v47 = vrot.slane %v1100_v46, 4  ;;  %v1137_v48 = vadd.f32 %v1136_v45, %v1122_v44 }
 0x19a   : > { %v1102_v49 = vadd.f32 %v1101_v47, %v1100_v46  ;;  %v1138_v50 = vrot.slane %v1137_v48, 4 }
 0x19c   : > { %v1103_v52 = vrot.slane %v1102_v49, 2  ;;  %v1139_v53 = vadd.f32 %v1138_v50, %v1137_v48 }
 0x19e   : > { %v1104_v54 = vadd.f32 %v1103_v52, %v1102_v49  ;;  %v1140_v55 = vrot.slane %v1139_v53, 2 }
 0x1a0   : > { %v1105_v57 = vrot.slane %v1104_v54, 1  ;;  %v1141_v58 = vadd.f32 %v1140_v55, %v1139_v53 }
 0x1a2   : > { %v1142_v59 = vrot.slane %v1141_v58, 1  ;;  %v1106_v60 = vadd.f32 %v1105_v57, %v1104_v54 }
 0x1a4   : > { %v1143_v61 = vadd.f32 %v1142_v59, %v1141_v58 }
 0x1a6   : > { %v1150_v63 = vsel %vm1147_vm0, %v1143_v61, 0.0 }
 0x1a7   : > { %v1153_v0 = vsel %vm1146_vm1, %v1106_v60, %v1150_v63 }
 0x1a8   : > { %v1155_v1 = vadd.f32 %v1154_v62, %v1153_v0 }
 0x1aa   : > { %1156 = vst [vmem:[%s2026_s3] sm:$0xff] %v1155_v1 }
 0x1ab PF: > { %s14_s16 = sadd.s32 1, %s1704_s16   ;;  %s2027_s12 = smov %s1692_s13 }
 0x1ac   : > { %p11_p13 = scmp.ge.s32.totalorder %s14_s16, 4   ;;  %s2028_s13 = smov %s1763_s20 }
 0x1ad   : > { %s2029_s14 = smov %s1700_s15  ;;  %s2030_s15 = smov %s2032_s17 }
 0x1ae   :  { %13 = sbr.rel (!%p11_p13) target bundleno = 3 (0x3), region = 113 }

</bundles_post_ra>
